<compile_context>
chip_gen: v6e
topology: v6e:2x2x1
jax: 0.10.0
libtpu: 0.0.40
codegen_flags: <defaults>
</compile_context>

<pallas_src>
import functools

import jax
import jax.numpy as jnp
import numpy as np
from jax.experimental import pallas as pl
from jax.experimental.pallas import tpu as pltpu

_BN_EPS = 1e-5


# ----------------------------------------------------------------------------
# Host-side constant builders (pure numpy, tiny)
# ----------------------------------------------------------------------------
def bilinear_matrix(n_in, n_out):
    """1-D bilinear interpolation matrix (align_corners=True), (n_out, n_in)."""
    A = np.zeros((n_out, n_in), dtype=np.float32)
    if n_out == 1:
        A[0, 0] = 1.0
        return A
    scale = (n_in - 1) / (n_out - 1)
    for o in range(n_out):
        src = o * scale
        i0 = min(int(np.floor(src)), n_in - 1)
        i1 = min(i0 + 1, n_in - 1)
        f = src - i0
        A[o, i0] += 1.0 - f
        A[o, i1] += f
    return A


def _tap_masks(N, H, W):
    """(9, 1, N*H*W) 0/1 masks: in-bounds pixels for each 3x3 conv tap."""
    hh, ww = np.meshgrid(np.arange(H), np.arange(W), indexing="ij")
    m = np.zeros((9, 1, N * H * W), dtype=np.float32)
    for k in range(9):
        oy, ox = k // 3 - 1, k % 3 - 1
        valid = ((hh + oy >= 0) & (hh + oy < H) &
                 (ww + ox >= 0) & (ww + ox < W)).astype(np.float32)
        m[k, 0] = np.tile(valid.reshape(-1), N)
    return m


# ----------------------------------------------------------------------------
# Fused kernel: conv1 -> BN(batch stats) -> ReLU -> conv2 -> bilinear upsample
# Single program; all operands / intermediates resident in VMEM.
# ----------------------------------------------------------------------------
def _ao_fused_kernel(x_ref, w1_ref, b1_ref, g_ref, be_ref, w2_ref, b2_ref,
                     masks_ref, up_ref, o_ref, xc_ref, yc_ref, *, W):
    # x_ref:     (Cin, P)          activations, P = N*H*W flat pixels on lanes
    # w1_ref:    (Cmid, 9*Cin)     conv1 weights (im2col-transposed)
    # w2_ref:    (Cout, 9*Cmid)    conv2 weights (im2col-transposed)
    # b*/g/be:   (C, 1)            bias / BN gamma / BN beta
    # masks_ref: (9, 1, P)         per-tap 0/1 border masks
    # up_ref:    (H*W, Hout*Wout)  kron(Ah, Aw)^T bilinear matrix
    # o_ref:     (N, Cout, Hout*Wout)
    # xc_ref:    (9, Cin, P)       VMEM scratch: conv1 im2col
    # yc_ref:    (9, Cmid, P)      VMEM scratch: conv2 im2col
    Cin, P = x_ref.shape
    HW = up_ref.shape[0]
    N = o_ref.shape[0]

    def im2col(a, col_ref, C):
        # a: (C, P) f32.  Build the 9 shifted/masked taps in a VMEM scratch,
        # then return them stacked as a single (9*C, P) matmul operand.
        for k in range(9):
            oy, ox = k // 3 - 1, k % 3 - 1
            s = oy * W + ox                      # flat-pixel shift of this tap
            if s == 0:
                col_ref[k] = a                   # center tap: no shift, mask==1
            else:
                rolled = pltpu.roll(a, shift=(-s) % P, axis=1)
                col_ref[k] = rolled * masks_ref[k]
        return col_ref[...].reshape(9 * C, P)

    x = x_ref[...].astype(jnp.float32)

    # --- conv1: one im2col matmul, lane-dense (Cmid, P) result ---------------
    y1 = jnp.dot(w1_ref[...], im2col(x, xc_ref, Cin),
                 preferred_element_type=jnp.float32) + b1_ref[...]

    # --- BatchNorm (training-mode batch stats over N,H,W) + ReLU, one pass ---
    inv_p = 1.0 / P
    mean = jnp.sum(y1, axis=1, keepdims=True) * inv_p
    msq = jnp.sum(y1 * y1, axis=1, keepdims=True) * inv_p
    var = msq - mean * mean
    scale = g_ref[...] * jax.lax.rsqrt(var + _BN_EPS)
    y1 = jnp.maximum((y1 - mean) * scale + be_ref[...], 0.0)

    # --- conv2: one im2col matmul, lane-dense (Cout, P) result ---------------
    Cmid = y1.shape[0]
    y2 = jnp.dot(w2_ref[...], im2col(y1, yc_ref, Cmid),
                 preferred_element_type=jnp.float32) + b2_ref[...]

    # --- bilinear upsample (align_corners=True): Kronecker matmul per image --
    up = up_ref[...]
    for n in range(N):
        o_ref[n] = jnp.dot(y2[:, n * HW:(n + 1) * HW], up,
                           preferred_element_type=jnp.float32).astype(o_ref.dtype)


# ----------------------------------------------------------------------------
# Public wrapper: NCHW in / NCHW out.  Host side only does layout plumbing.
# ----------------------------------------------------------------------------
def ao_forward(x_nchw, w1, b1, gamma, beta, w2, b2, upfactor=2):
    """AO forward.  x: (N, Cin, H, W); w1: (3,3,Cin,Cin//2), w2: (3,3,Cin//2,Cout) HWIO."""
    N, Cin, H, W = x_nchw.shape
    Cmid = w1.shape[-1]
    Cout = w2.shape[-1]
    Hout, Wout = H * upfactor, W * upfactor
    P, HW = N * H * W, H * W

    # Wrapper-side layout plumbing (tiny): flat pixels (n, h, w) on lanes,
    # channels on rows; weights pre-transposed to (Cout, 9*Cin) so matmul
    # outputs inside the kernel are lane-dense.
    x_flat = jnp.transpose(x_nchw, (1, 0, 2, 3)).reshape(Cin, P)
    w1m = jnp.transpose(w1.reshape(9 * Cin, Cmid))          # (Cmid, 9*Cin)
    w2m = jnp.transpose(w2.reshape(9 * Cmid, Cout))         # (Cout, 9*Cmid)
    b1c = b1.reshape(Cmid, 1).astype(jnp.float32)
    b2c = b2.reshape(Cout, 1).astype(jnp.float32)
    g = gamma.reshape(Cmid, 1).astype(jnp.float32)
    be = beta.reshape(Cmid, 1).astype(jnp.float32)
    masks = jnp.asarray(_tap_masks(N, H, W))                 # (9, 1, P)
    up = jnp.asarray(
        np.kron(bilinear_matrix(H, Hout), bilinear_matrix(W, Wout)).T)  # (HW, Hout*Wout)

    kernel = functools.partial(_ao_fused_kernel, W=W)
    grid_spec = pltpu.PrefetchScalarGridSpec(
        num_scalar_prefetch=0,
        grid=(1,),
        in_specs=[
            pl.BlockSpec((Cin, P), lambda i: (0, 0)),
            pl.BlockSpec((Cmid, 9 * Cin), lambda i: (0, 0)),
            pl.BlockSpec((Cmid, 1), lambda i: (0, 0)),
            pl.BlockSpec((Cmid, 1), lambda i: (0, 0)),
            pl.BlockSpec((Cmid, 1), lambda i: (0, 0)),
            pl.BlockSpec((Cout, 9 * Cmid), lambda i: (0, 0)),
            pl.BlockSpec((Cout, 1), lambda i: (0, 0)),
            pl.BlockSpec((9, 1, P), lambda i: (0, 0, 0)),
            pl.BlockSpec((HW, Hout * Wout), lambda i: (0, 0)),
        ],
        out_specs=pl.BlockSpec((N, Cout, Hout * Wout), lambda i: (0, 0, 0)),
        scratch_shapes=[
            pltpu.VMEM((9, Cin, P), jnp.float32),
            pltpu.VMEM((9, Cmid, P), jnp.float32),
        ],
    )
    out = pl.pallas_call(
        kernel,
        out_shape=jax.ShapeDtypeStruct((N, Cout, Hout * Wout), jnp.float32),
        grid_spec=grid_spec,
        compiler_params=pltpu.CompilerParams(dimension_semantics=("arbitrary",)),
    )(x_flat, w1m, b1c, g, be, w2m, b2c, masks, up)
    return out.reshape(N, Cout, Hout, Wout)


# ----------------------------------------------------------------------------
# Pure-JAX reference (for validation only)
# ----------------------------------------------------------------------------
def ref_forward(x_nchw, w1, b1, gamma, beta, w2, b2, upfactor=2):
    def conv(x, w_hwio, b):
        w_oihw = jnp.transpose(w_hwio, (3, 2, 0, 1))
        y = jax.lax.conv_general_dilated(
            x, w_oihw, (1, 1), 'SAME',
            dimension_numbers=('NCHW', 'OIHW', 'NCHW'))
        return y + b.reshape(1, -1, 1, 1)

    y = conv(x_nchw, w1, b1)
    mean = jnp.mean(y, axis=(0, 2, 3), keepdims=True)
    var = jnp.mean((y - mean) ** 2, axis=(0, 2, 3), keepdims=True)
    y = (y - mean) * jax.lax.rsqrt(var + _BN_EPS)
    y = y * gamma.reshape(1, -1, 1, 1) + beta.reshape(1, -1, 1, 1)
    y = jnp.maximum(y, 0.0)
    y = conv(y, w2, b2)
    _, _, H, W = y.shape
    Ah = jnp.asarray(bilinear_matrix(H, H * upfactor))
    Aw = jnp.asarray(bilinear_matrix(W, W * upfactor))
    return jnp.einsum('ph,qw,nchw->ncpq', Ah, Aw, y)


if __name__ == "__main__":
    key = jax.random.PRNGKey(0)
    N, Cin, H, W = 2, 8, 16, 16          # small shapes consistent with the module
    Cout, upfactor = 4, 2
    Cmid = Cin // 2

    k_x, k_w1, k_w2 = jax.random.split(key, 3)
    x = jax.random.normal(k_x, (N, Cin, H, W), jnp.float32)

    # Deterministic init mirroring AO.init_params():
    #   conv weights ~ N(0, 0.01), conv bias = 0, BN gamma = 1, BN beta = 0.
    w1 = 0.01 * jax.random.normal(k_w1, (3, 3, Cin, Cmid), jnp.float32)   # HWIO
    b1 = jnp.zeros((Cmid,), jnp.float32)
    gamma = jnp.ones((Cmid,), jnp.float32)
    beta = jnp.zeros((Cmid,), jnp.float32)
    w2 = 0.01 * jax.random.normal(k_w2, (3, 3, Cmid, Cout), jnp.float32)  # HWIO
    b2 = jnp.zeros((Cout,), jnp.float32)

    out = ao_forward(x, w1, b1, gamma, beta, w2, b2, upfactor)
    out = jax.block_until_ready(out)

    assert out.shape == (N, Cout, H * upfactor, W * upfactor), out.shape

    ref = ref_forward(x, w1, b1, gamma, beta, w2, b2, upfactor)
    np.testing.assert_allclose(np.asarray(out), np.asarray(ref),
                               rtol=5e-2, atol=5e-3)
    print("KERNEL_OK")
</pallas_src>

<mosaic_0001>
module attributes {stable_mosaic.version = 11 : i64} {
  func.func @_ao_fused_kernel(%arg0: i32, %arg1: memref<8x512xf32, #tpu.memory_space<vmem>>, %arg2: memref<4x72xf32, #tpu.memory_space<vmem>>, %arg3: memref<4x1xf32, #tpu.memory_space<vmem>>, %arg4: memref<4x1xf32, #tpu.memory_space<vmem>>, %arg5: memref<4x1xf32, #tpu.memory_space<vmem>>, %arg6: memref<4x36xf32, #tpu.memory_space<vmem>>, %arg7: memref<4x1xf32, #tpu.memory_space<vmem>>, %arg8: memref<9x1x512xf32, #tpu.memory_space<vmem>>, %arg9: memref<256x1024xf32, #tpu.memory_space<vmem>>, %arg10: memref<2x4x1024xf32, #tpu.memory_space<vmem>>, %arg11: memref<9x8x512xf32, #tpu.memory_space<vmem>>, %arg12: memref<9x4x512xf32, #tpu.memory_space<vmem>>) attributes {dimension_semantics = [#tpu.dimension_semantics<arbitrary>], iteration_bounds = array<i64: 1>, scalar_prefetch = 0 : i64, scratch_operands = 2 : i64, tpu.core_type = #tpu.core_type<tc>, window_params = [{pipeline_mode = #tpu.pipeline_mode<synchronous>, transform_indices = @transform_0, window_bounds = array<i64: 8, 512>}, {pipeline_mode = #tpu.pipeline_mode<synchronous>, transform_indices = @transform_1, window_bounds = array<i64: 4, 72>}, {pipeline_mode = #tpu.pipeline_mode<synchronous>, transform_indices = @transform_2, window_bounds = array<i64: 4, 1>}, {pipeline_mode = #tpu.pipeline_mode<synchronous>, transform_indices = @transform_3, window_bounds = array<i64: 4, 1>}, {pipeline_mode = #tpu.pipeline_mode<synchronous>, transform_indices = @transform_4, window_bounds = array<i64: 4, 1>}, {pipeline_mode = #tpu.pipeline_mode<synchronous>, transform_indices = @transform_5, window_bounds = array<i64: 4, 36>}, {pipeline_mode = #tpu.pipeline_mode<synchronous>, transform_indices = @transform_6, window_bounds = array<i64: 4, 1>}, {pipeline_mode = #tpu.pipeline_mode<synchronous>, transform_indices = @transform_7, window_bounds = array<i64: 9, 1, 512>}, {pipeline_mode = #tpu.pipeline_mode<synchronous>, transform_indices = @transform_8, window_bounds = array<i64: 256, 1024>}, {pipeline_mode = #tpu.pipeline_mode<synchronous>, transform_indices = @transform_9, window_bounds = array<i64: 2, 4, 1024>}]} {
    %c0 = arith.constant 0 : index
    %c0_0 = arith.constant 0 : index
    %0 = vector.load %arg1[%c0, %c0_0] : memref<8x512xf32, #tpu.memory_space<vmem>>, vector<8x512xf32>
    %c0_1 = arith.constant 0 : index
    %c0_2 = arith.constant 0 : index
    %1 = vector.load %arg2[%c0_1, %c0_2] : memref<4x72xf32, #tpu.memory_space<vmem>>, vector<4x72xf32>
    %c17_i32 = arith.constant 17 : i32
    %2 = tpu.dynamic_rotate %0 by %c17_i32 dim 1 : vector<8x512xf32>, i32 -> vector<8x512xf32>
    %c0_3 = arith.constant 0 : index
    %c0_4 = arith.constant 0 : index
    %c0_5 = arith.constant 0 : index
    %3 = vector.load %arg8[%c0_3, %c0_4, %c0_5] : memref<9x1x512xf32, #tpu.memory_space<vmem>>, vector<1x1x512xf32>
    %4 = vector.shape_cast %3 : vector<1x1x512xf32> to vector<1x512xf32>
    %5 = vector.broadcast %4 : vector<1x512xf32> to vector<8x512xf32>
    %6 = arith.mulf %2, %5 : vector<8x512xf32>
    %c0_6 = arith.constant 0 : index
    %c0_7 = arith.constant 0 : index
    %c0_8 = arith.constant 0 : index
    %7 = vector.load %arg11[%c0_6, %c0_7, %c0_8] : memref<9x8x512xf32, #tpu.memory_space<vmem>>, vector<1x8x512xf32>
    %8 = vector.shape_cast %7 : vector<1x8x512xf32> to vector<8x512xf32>
    %9 = vector.shape_cast %6 : vector<8x512xf32> to vector<1x8x512xf32>
    tpu.vector_store %arg11[%c0_6, %c0_7, %c0_8], %9 {strides = array<i32>} : memref<9x8x512xf32, #tpu.memory_space<vmem>>, vector<1x8x512xf32>,
    %c16_i32 = arith.constant 16 : i32
    %10 = tpu.dynamic_rotate %0 by %c16_i32 dim 1 : vector<8x512xf32>, i32 -> vector<8x512xf32>
    %c1 = arith.constant 1 : index
    %c0_9 = arith.constant 0 : index
    %c0_10 = arith.constant 0 : index
    %11 = vector.load %arg8[%c1, %c0_9, %c0_10] : memref<9x1x512xf32, #tpu.memory_space<vmem>>, vector<1x1x512xf32>
    %12 = vector.shape_cast %11 : vector<1x1x512xf32> to vector<1x512xf32>
    %13 = vector.broadcast %12 : vector<1x512xf32> to vector<8x512xf32>
    %14 = arith.mulf %10, %13 : vector<8x512xf32>
    %c1_11 = arith.constant 1 : index
    %c0_12 = arith.constant 0 : index
    %c0_13 = arith.constant 0 : index
    %15 = vector.load %arg11[%c1_11, %c0_12, %c0_13] : memref<9x8x512xf32, #tpu.memory_space<vmem>>, vector<1x8x512xf32>
    %16 = vector.shape_cast %15 : vector<1x8x512xf32> to vector<8x512xf32>
    %17 = vector.shape_cast %14 : vector<8x512xf32> to vector<1x8x512xf32>
    tpu.vector_store %arg11[%c1_11, %c0_12, %c0_13], %17 {strides = array<i32>} : memref<9x8x512xf32, #tpu.memory_space<vmem>>, vector<1x8x512xf32>,
    %c15_i32 = arith.constant 15 : i32
    %18 = tpu.dynamic_rotate %0 by %c15_i32 dim 1 : vector<8x512xf32>, i32 -> vector<8x512xf32>
    %c2 = arith.constant 2 : index
    %c0_14 = arith.constant 0 : index
    %c0_15 = arith.constant 0 : index
    %19 = vector.load %arg8[%c2, %c0_14, %c0_15] : memref<9x1x512xf32, #tpu.memory_space<vmem>>, vector<1x1x512xf32>
    %20 = vector.shape_cast %19 : vector<1x1x512xf32> to vector<1x512xf32>
    %21 = vector.broadcast %20 : vector<1x512xf32> to vector<8x512xf32>
    %22 = arith.mulf %18, %21 : vector<8x512xf32>
    %c2_16 = arith.constant 2 : index
    %c0_17 = arith.constant 0 : index
    %c0_18 = arith.constant 0 : index
    %23 = vector.load %arg11[%c2_16, %c0_17, %c0_18] : memref<9x8x512xf32, #tpu.memory_space<vmem>>, vector<1x8x512xf32>
    %24 = vector.shape_cast %23 : vector<1x8x512xf32> to vector<8x512xf32>
    %25 = vector.shape_cast %22 : vector<8x512xf32> to vector<1x8x512xf32>
    tpu.vector_store %arg11[%c2_16, %c0_17, %c0_18], %25 {strides = array<i32>} : memref<9x8x512xf32, #tpu.memory_space<vmem>>, vector<1x8x512xf32>,
    %c1_i32 = arith.constant 1 : i32
    %26 = tpu.dynamic_rotate %0 by %c1_i32 dim 1 : vector<8x512xf32>, i32 -> vector<8x512xf32>
    %c3 = arith.constant 3 : index
    %c0_19 = arith.constant 0 : index
    %c0_20 = arith.constant 0 : index
    %27 = vector.load %arg8[%c3, %c0_19, %c0_20] : memref<9x1x512xf32, #tpu.memory_space<vmem>>, vector<1x1x512xf32>
    %28 = vector.shape_cast %27 : vector<1x1x512xf32> to vector<1x512xf32>
    %29 = vector.broadcast %28 : vector<1x512xf32> to vector<8x512xf32>
    %30 = arith.mulf %26, %29 : vector<8x512xf32>
    %c3_21 = arith.constant 3 : index
    %c0_22 = arith.constant 0 : index
    %c0_23 = arith.constant 0 : index
    %31 = vector.load %arg11[%c3_21, %c0_22, %c0_23] : memref<9x8x512xf32, #tpu.memory_space<vmem>>, vector<1x8x512xf32>
    %32 = vector.shape_cast %31 : vector<1x8x512xf32> to vector<8x512xf32>
    %33 = vector.shape_cast %30 : vector<8x512xf32> to vector<1x8x512xf32>
    tpu.vector_store %arg11[%c3_21, %c0_22, %c0_23], %33 {strides = array<i32>} : memref<9x8x512xf32, #tpu.memory_space<vmem>>, vector<1x8x512xf32>,
    %c4 = arith.constant 4 : index
    %c0_24 = arith.constant 0 : index
    %c0_25 = arith.constant 0 : index
    %34 = vector.load %arg11[%c4, %c0_24, %c0_25] : memref<9x8x512xf32, #tpu.memory_space<vmem>>, vector<1x8x512xf32>
    %35 = vector.shape_cast %34 : vector<1x8x512xf32> to vector<8x512xf32>
    %36 = vector.shape_cast %0 : vector<8x512xf32> to vector<1x8x512xf32>
    tpu.vector_store %arg11[%c4, %c0_24, %c0_25], %36 {strides = array<i32>} : memref<9x8x512xf32, #tpu.memory_space<vmem>>, vector<1x8x512xf32>,
    %c511_i32 = arith.constant 511 : i32
    %37 = tpu.dynamic_rotate %0 by %c511_i32 dim 1 : vector<8x512xf32>, i32 -> vector<8x512xf32>
    %c5 = arith.constant 5 : index
    %c0_26 = arith.constant 0 : index
    %c0_27 = arith.constant 0 : index
    %38 = vector.load %arg8[%c5, %c0_26, %c0_27] : memref<9x1x512xf32, #tpu.memory_space<vmem>>, vector<1x1x512xf32>
    %39 = vector.shape_cast %38 : vector<1x1x512xf32> to vector<1x512xf32>
    %40 = vector.broadcast %39 : vector<1x512xf32> to vector<8x512xf32>
    %41 = arith.mulf %37, %40 : vector<8x512xf32>
    %c5_28 = arith.constant 5 : index
    %c0_29 = arith.constant 0 : index
    %c0_30 = arith.constant 0 : index
    %42 = vector.load %arg11[%c5_28, %c0_29, %c0_30] : memref<9x8x512xf32, #tpu.memory_space<vmem>>, vector<1x8x512xf32>
    %43 = vector.shape_cast %42 : vector<1x8x512xf32> to vector<8x512xf32>
    %44 = vector.shape_cast %41 : vector<8x512xf32> to vector<1x8x512xf32>
    tpu.vector_store %arg11[%c5_28, %c0_29, %c0_30], %44 {strides = array<i32>} : memref<9x8x512xf32, #tpu.memory_space<vmem>>, vector<1x8x512xf32>,
    %c497_i32 = arith.constant 497 : i32
    %45 = tpu.dynamic_rotate %0 by %c497_i32 dim 1 : vector<8x512xf32>, i32 -> vector<8x512xf32>
    %c6 = arith.constant 6 : index
    %c0_31 = arith.constant 0 : index
    %c0_32 = arith.constant 0 : index
    %46 = vector.load %arg8[%c6, %c0_31, %c0_32] : memref<9x1x512xf32, #tpu.memory_space<vmem>>, vector<1x1x512xf32>
    %47 = vector.shape_cast %46 : vector<1x1x512xf32> to vector<1x512xf32>
    %48 = vector.broadcast %47 : vector<1x512xf32> to vector<8x512xf32>
    %49 = arith.mulf %45, %48 : vector<8x512xf32>
    %c6_33 = arith.constant 6 : index
    %c0_34 = arith.constant 0 : index
    %c0_35 = arith.constant 0 : index
    %50 = vector.load %arg11[%c6_33, %c0_34, %c0_35] : memref<9x8x512xf32, #tpu.memory_space<vmem>>, vector<1x8x512xf32>
    %51 = vector.shape_cast %50 : vector<1x8x512xf32> to vector<8x512xf32>
    %52 = vector.shape_cast %49 : vector<8x512xf32> to vector<1x8x512xf32>
    tpu.vector_store %arg11[%c6_33, %c0_34, %c0_35], %52 {strides = array<i32>} : memref<9x8x512xf32, #tpu.memory_space<vmem>>, vector<1x8x512xf32>,
    %c496_i32 = arith.constant 496 : i32
    %53 = tpu.dynamic_rotate %0 by %c496_i32 dim 1 : vector<8x512xf32>, i32 -> vector<8x512xf32>
    %c7 = arith.constant 7 : index
    %c0_36 = arith.constant 0 : index
    %c0_37 = arith.constant 0 : index
    %54 = vector.load %arg8[%c7, %c0_36, %c0_37] : memref<9x1x512xf32, #tpu.memory_space<vmem>>, vector<1x1x512xf32>
    %55 = vector.shape_cast %54 : vector<1x1x512xf32> to vector<1x512xf32>
    %56 = vector.broadcast %55 : vector<1x512xf32> to vector<8x512xf32>
    %57 = arith.mulf %53, %56 : vector<8x512xf32>
    %c7_38 = arith.constant 7 : index
    %c0_39 = arith.constant 0 : index
    %c0_40 = arith.constant 0 : index
    %58 = vector.load %arg11[%c7_38, %c0_39, %c0_40] : memref<9x8x512xf32, #tpu.memory_space<vmem>>, vector<1x8x512xf32>
    %59 = vector.shape_cast %58 : vector<1x8x512xf32> to vector<8x512xf32>
    %60 = vector.shape_cast %57 : vector<8x512xf32> to vector<1x8x512xf32>
    tpu.vector_store %arg11[%c7_38, %c0_39, %c0_40], %60 {strides = array<i32>} : memref<9x8x512xf32, #tpu.memory_space<vmem>>, vector<1x8x512xf32>,
    %c495_i32 = arith.constant 495 : i32
    %61 = tpu.dynamic_rotate %0 by %c495_i32 dim 1 : vector<8x512xf32>, i32 -> vector<8x512xf32>
    %c8 = arith.constant 8 : index
    %c0_41 = arith.constant 0 : index
    %c0_42 = arith.constant 0 : index
    %62 = vector.load %arg8[%c8, %c0_41, %c0_42] : memref<9x1x512xf32, #tpu.memory_space<vmem>>, vector<1x1x512xf32>
    %63 = vector.shape_cast %62 : vector<1x1x512xf32> to vector<1x512xf32>
    %64 = vector.broadcast %63 : vector<1x512xf32> to vector<8x512xf32>
    %65 = arith.mulf %61, %64 : vector<8x512xf32>
    %c8_43 = arith.constant 8 : index
    %c0_44 = arith.constant 0 : index
    %c0_45 = arith.constant 0 : index
    %66 = vector.load %arg11[%c8_43, %c0_44, %c0_45] : memref<9x8x512xf32, #tpu.memory_space<vmem>>, vector<1x8x512xf32>
    %67 = vector.shape_cast %66 : vector<1x8x512xf32> to vector<8x512xf32>
    %68 = vector.shape_cast %65 : vector<8x512xf32> to vector<1x8x512xf32>
    tpu.vector_store %arg11[%c8_43, %c0_44, %c0_45], %68 {strides = array<i32>} : memref<9x8x512xf32, #tpu.memory_space<vmem>>, vector<1x8x512xf32>,
    %c0_46 = arith.constant 0 : index
    %c0_47 = arith.constant 0 : index
    %c0_48 = arith.constant 0 : index
    %69 = vector.load %arg11[%c0_46, %c0_47, %c0_48] : memref<9x8x512xf32, #tpu.memory_space<vmem>>, vector<9x8x512xf32>
    %70 = vector.shape_cast %69 : vector<9x8x512xf32> to vector<72x512xf32>
    %cst = arith.constant dense<0.000000e+00> : vector<4x512xf32>
    %71 = tpu.matmul %1, %70, %cst {dimension_numbers = #tpu.dot_dimension_numbers<[1], [0], [0], [1], [0, 0, 1, 1], [], []>} : vector<4x72xf32>, vector<72x512xf32>, vector<4x512xf32> -> vector<4x512xf32>
    %c0_49 = arith.constant 0 : index
    %c0_50 = arith.constant 0 : index
    %72 = vector.load %arg3[%c0_49, %c0_50] : memref<4x1xf32, #tpu.memory_space<vmem>>, vector<4x1xf32>
    %73 = vector.broadcast %72 : vector<4x1xf32> to vector<4x512xf32>
    %74 = arith.addf %71, %73 : vector<4x512xf32>
    %cst_51 = arith.constant dense<0.000000e+00> : vector<4xf32>
    %75 = vector.multi_reduction <add>, %74, %cst_51 [1] : vector<4x512xf32> to vector<4xf32>
    %76 = vector.shape_cast %75 : vector<4xf32> to vector<4x1xf32>
    %cst_52 = arith.constant 0.001953125 : f32
    %77 = vector.broadcast %cst_52 : f32 to vector<4x1xf32>
    %78 = arith.mulf %76, %77 : vector<4x1xf32>
    %79 = arith.mulf %74, %74 : vector<4x512xf32>
    %cst_53 = arith.constant dense<0.000000e+00> : vector<4xf32>
    %80 = vector.multi_reduction <add>, %79, %cst_53 [1] : vector<4x512xf32> to vector<4xf32>
    %81 = vector.shape_cast %80 : vector<4xf32> to vector<4x1xf32>
    %cst_54 = arith.constant 0.001953125 : f32
    %82 = vector.broadcast %cst_54 : f32 to vector<4x1xf32>
    %83 = arith.mulf %81, %82 : vector<4x1xf32>
    %84 = arith.mulf %78, %78 : vector<4x1xf32>
    %85 = arith.subf %83, %84 : vector<4x1xf32>
    %c0_55 = arith.constant 0 : index
    %c0_56 = arith.constant 0 : index
    %86 = vector.load %arg4[%c0_55, %c0_56] : memref<4x1xf32, #tpu.memory_space<vmem>>, vector<4x1xf32>
    %cst_57 = arith.constant 9.99999974E-6 : f32
    %87 = vector.broadcast %cst_57 : f32 to vector<4x1xf32>
    %88 = arith.addf %85, %87 : vector<4x1xf32>
    %89 = math.rsqrt %88 : vector<4x1xf32>
    %90 = arith.mulf %86, %89 : vector<4x1xf32>
    %91 = vector.broadcast %78 : vector<4x1xf32> to vector<4x512xf32>
    %92 = arith.subf %74, %91 : vector<4x512xf32>
    %93 = vector.broadcast %90 : vector<4x1xf32> to vector<4x512xf32>
    %94 = arith.mulf %92, %93 : vector<4x512xf32>
    %c0_58 = arith.constant 0 : index
    %c0_59 = arith.constant 0 : index
    %95 = vector.load %arg5[%c0_58, %c0_59] : memref<4x1xf32, #tpu.memory_space<vmem>>, vector<4x1xf32>
    %96 = vector.broadcast %95 : vector<4x1xf32> to vector<4x512xf32>
    %97 = arith.addf %94, %96 : vector<4x512xf32>
    %cst_60 = arith.constant 0.000000e+00 : f32
    %98 = vector.broadcast %cst_60 : f32 to vector<4x512xf32>
    %99 = arith.maximumf %97, %98 : vector<4x512xf32>
    %c0_61 = arith.constant 0 : index
    %c0_62 = arith.constant 0 : index
    %100 = vector.load %arg6[%c0_61, %c0_62] : memref<4x36xf32, #tpu.memory_space<vmem>>, vector<4x36xf32>
    %c17_i32_63 = arith.constant 17 : i32
    %101 = tpu.dynamic_rotate %99 by %c17_i32_63 dim 1 : vector<4x512xf32>, i32 -> vector<4x512xf32>
    %c0_64 = arith.constant 0 : index
    %c0_65 = arith.constant 0 : index
    %c0_66 = arith.constant 0 : index
    %102 = vector.load %arg8[%c0_64, %c0_65, %c0_66] : memref<9x1x512xf32, #tpu.memory_space<vmem>>, vector<1x1x512xf32>
    %103 = vector.shape_cast %102 : vector<1x1x512xf32> to vector<1x512xf32>
    %104 = vector.broadcast %103 : vector<1x512xf32> to vector<4x512xf32>
    %105 = arith.mulf %101, %104 : vector<4x512xf32>
    %c0_67 = arith.constant 0 : index
    %c0_68 = arith.constant 0 : index
    %c0_69 = arith.constant 0 : index
    %106 = vector.load %arg12[%c0_67, %c0_68, %c0_69] : memref<9x4x512xf32, #tpu.memory_space<vmem>>, vector<1x4x512xf32>
    %107 = vector.shape_cast %106 : vector<1x4x512xf32> to vector<4x512xf32>
    %108 = vector.shape_cast %105 : vector<4x512xf32> to vector<1x4x512xf32>
    tpu.vector_store %arg12[%c0_67, %c0_68, %c0_69], %108 {strides = array<i32>} : memref<9x4x512xf32, #tpu.memory_space<vmem>>, vector<1x4x512xf32>,
    %c16_i32_70 = arith.constant 16 : i32
    %109 = tpu.dynamic_rotate %99 by %c16_i32_70 dim 1 : vector<4x512xf32>, i32 -> vector<4x512xf32>
    %c1_71 = arith.constant 1 : index
    %c0_72 = arith.constant 0 : index
    %c0_73 = arith.constant 0 : index
    %110 = vector.load %arg8[%c1_71, %c0_72, %c0_73] : memref<9x1x512xf32, #tpu.memory_space<vmem>>, vector<1x1x512xf32>
    %111 = vector.shape_cast %110 : vector<1x1x512xf32> to vector<1x512xf32>
    %112 = vector.broadcast %111 : vector<1x512xf32> to vector<4x512xf32>
    %113 = arith.mulf %109, %112 : vector<4x512xf32>
    %c1_74 = arith.constant 1 : index
    %c0_75 = arith.constant 0 : index
    %c0_76 = arith.constant 0 : index
    %114 = vector.load %arg12[%c1_74, %c0_75, %c0_76] : memref<9x4x512xf32, #tpu.memory_space<vmem>>, vector<1x4x512xf32>
    %115 = vector.shape_cast %114 : vector<1x4x512xf32> to vector<4x512xf32>
    %116 = vector.shape_cast %113 : vector<4x512xf32> to vector<1x4x512xf32>
    tpu.vector_store %arg12[%c1_74, %c0_75, %c0_76], %116 {strides = array<i32>} : memref<9x4x512xf32, #tpu.memory_space<vmem>>, vector<1x4x512xf32>,
    %c15_i32_77 = arith.constant 15 : i32
    %117 = tpu.dynamic_rotate %99 by %c15_i32_77 dim 1 : vector<4x512xf32>, i32 -> vector<4x512xf32>
    %c2_78 = arith.constant 2 : index
    %c0_79 = arith.constant 0 : index
    %c0_80 = arith.constant 0 : index
    %118 = vector.load %arg8[%c2_78, %c0_79, %c0_80] : memref<9x1x512xf32, #tpu.memory_space<vmem>>, vector<1x1x512xf32>
    %119 = vector.shape_cast %118 : vector<1x1x512xf32> to vector<1x512xf32>
    %120 = vector.broadcast %119 : vector<1x512xf32> to vector<4x512xf32>
    %121 = arith.mulf %117, %120 : vector<4x512xf32>
    %c2_81 = arith.constant 2 : index
    %c0_82 = arith.constant 0 : index
    %c0_83 = arith.constant 0 : index
    %122 = vector.load %arg12[%c2_81, %c0_82, %c0_83] : memref<9x4x512xf32, #tpu.memory_space<vmem>>, vector<1x4x512xf32>
    %123 = vector.shape_cast %122 : vector<1x4x512xf32> to vector<4x512xf32>
    %124 = vector.shape_cast %121 : vector<4x512xf32> to vector<1x4x512xf32>
    tpu.vector_store %arg12[%c2_81, %c0_82, %c0_83], %124 {strides = array<i32>} : memref<9x4x512xf32, #tpu.memory_space<vmem>>, vector<1x4x512xf32>,
    %c1_i32_84 = arith.constant 1 : i32
    %125 = tpu.dynamic_rotate %99 by %c1_i32_84 dim 1 : vector<4x512xf32>, i32 -> vector<4x512xf32>
    %c3_85 = arith.constant 3 : index
    %c0_86 = arith.constant 0 : index
    %c0_87 = arith.constant 0 : index
    %126 = vector.load %arg8[%c3_85, %c0_86, %c0_87] : memref<9x1x512xf32, #tpu.memory_space<vmem>>, vector<1x1x512xf32>
    %127 = vector.shape_cast %126 : vector<1x1x512xf32> to vector<1x512xf32>
    %128 = vector.broadcast %127 : vector<1x512xf32> to vector<4x512xf32>
    %129 = arith.mulf %125, %128 : vector<4x512xf32>
    %c3_88 = arith.constant 3 : index
    %c0_89 = arith.constant 0 : index
    %c0_90 = arith.constant 0 : index
    %130 = vector.load %arg12[%c3_88, %c0_89, %c0_90] : memref<9x4x512xf32, #tpu.memory_space<vmem>>, vector<1x4x512xf32>
    %131 = vector.shape_cast %130 : vector<1x4x512xf32> to vector<4x512xf32>
    %132 = vector.shape_cast %129 : vector<4x512xf32> to vector<1x4x512xf32>
    tpu.vector_store %arg12[%c3_88, %c0_89, %c0_90], %132 {strides = array<i32>} : memref<9x4x512xf32, #tpu.memory_space<vmem>>, vector<1x4x512xf32>,
    %c4_91 = arith.constant 4 : index
    %c0_92 = arith.constant 0 : index
    %c0_93 = arith.constant 0 : index
    %133 = vector.load %arg12[%c4_91, %c0_92, %c0_93] : memref<9x4x512xf32, #tpu.memory_space<vmem>>, vector<1x4x512xf32>
    %134 = vector.shape_cast %133 : vector<1x4x512xf32> to vector<4x512xf32>
    %135 = vector.shape_cast %99 : vector<4x512xf32> to vector<1x4x512xf32>
    tpu.vector_store %arg12[%c4_91, %c0_92, %c0_93], %135 {strides = array<i32>} : memref<9x4x512xf32, #tpu.memory_space<vmem>>, vector<1x4x512xf32>,
    %c511_i32_94 = arith.constant 511 : i32
    %136 = tpu.dynamic_rotate %99 by %c511_i32_94 dim 1 : vector<4x512xf32>, i32 -> vector<4x512xf32>
    %c5_95 = arith.constant 5 : index
    %c0_96 = arith.constant 0 : index
    %c0_97 = arith.constant 0 : index
    %137 = vector.load %arg8[%c5_95, %c0_96, %c0_97] : memref<9x1x512xf32, #tpu.memory_space<vmem>>, vector<1x1x512xf32>
    %138 = vector.shape_cast %137 : vector<1x1x512xf32> to vector<1x512xf32>
    %139 = vector.broadcast %138 : vector<1x512xf32> to vector<4x512xf32>
    %140 = arith.mulf %136, %139 : vector<4x512xf32>
    %c5_98 = arith.constant 5 : index
    %c0_99 = arith.constant 0 : index
    %c0_100 = arith.constant 0 : index
    %141 = vector.load %arg12[%c5_98, %c0_99, %c0_100] : memref<9x4x512xf32, #tpu.memory_space<vmem>>, vector<1x4x512xf32>
    %142 = vector.shape_cast %141 : vector<1x4x512xf32> to vector<4x512xf32>
    %143 = vector.shape_cast %140 : vector<4x512xf32> to vector<1x4x512xf32>
    tpu.vector_store %arg12[%c5_98, %c0_99, %c0_100], %143 {strides = array<i32>} : memref<9x4x512xf32, #tpu.memory_space<vmem>>, vector<1x4x512xf32>,
    %c497_i32_101 = arith.constant 497 : i32
    %144 = tpu.dynamic_rotate %99 by %c497_i32_101 dim 1 : vector<4x512xf32>, i32 -> vector<4x512xf32>
    %c6_102 = arith.constant 6 : index
    %c0_103 = arith.constant 0 : index
    %c0_104 = arith.constant 0 : index
    %145 = vector.load %arg8[%c6_102, %c0_103, %c0_104] : memref<9x1x512xf32, #tpu.memory_space<vmem>>, vector<1x1x512xf32>
    %146 = vector.shape_cast %145 : vector<1x1x512xf32> to vector<1x512xf32>
    %147 = vector.broadcast %146 : vector<1x512xf32> to vector<4x512xf32>
    %148 = arith.mulf %144, %147 : vector<4x512xf32>
    %c6_105 = arith.constant 6 : index
    %c0_106 = arith.constant 0 : index
    %c0_107 = arith.constant 0 : index
    %149 = vector.load %arg12[%c6_105, %c0_106, %c0_107] : memref<9x4x512xf32, #tpu.memory_space<vmem>>, vector<1x4x512xf32>
    %150 = vector.shape_cast %149 : vector<1x4x512xf32> to vector<4x512xf32>
    %151 = vector.shape_cast %148 : vector<4x512xf32> to vector<1x4x512xf32>
    tpu.vector_store %arg12[%c6_105, %c0_106, %c0_107], %151 {strides = array<i32>} : memref<9x4x512xf32, #tpu.memory_space<vmem>>, vector<1x4x512xf32>,
    %c496_i32_108 = arith.constant 496 : i32
    %152 = tpu.dynamic_rotate %99 by %c496_i32_108 dim 1 : vector<4x512xf32>, i32 -> vector<4x512xf32>
    %c7_109 = arith.constant 7 : index
    %c0_110 = arith.constant 0 : index
    %c0_111 = arith.constant 0 : index
    %153 = vector.load %arg8[%c7_109, %c0_110, %c0_111] : memref<9x1x512xf32, #tpu.memory_space<vmem>>, vector<1x1x512xf32>
    %154 = vector.shape_cast %153 : vector<1x1x512xf32> to vector<1x512xf32>
    %155 = vector.broadcast %154 : vector<1x512xf32> to vector<4x512xf32>
    %156 = arith.mulf %152, %155 : vector<4x512xf32>
    %c7_112 = arith.constant 7 : index
    %c0_113 = arith.constant 0 : index
    %c0_114 = arith.constant 0 : index
    %157 = vector.load %arg12[%c7_112, %c0_113, %c0_114] : memref<9x4x512xf32, #tpu.memory_space<vmem>>, vector<1x4x512xf32>
    %158 = vector.shape_cast %157 : vector<1x4x512xf32> to vector<4x512xf32>
    %159 = vector.shape_cast %156 : vector<4x512xf32> to vector<1x4x512xf32>
    tpu.vector_store %arg12[%c7_112, %c0_113, %c0_114], %159 {strides = array<i32>} : memref<9x4x512xf32, #tpu.memory_space<vmem>>, vector<1x4x512xf32>,
    %c495_i32_115 = arith.constant 495 : i32
    %160 = tpu.dynamic_rotate %99 by %c495_i32_115 dim 1 : vector<4x512xf32>, i32 -> vector<4x512xf32>
    %c8_116 = arith.constant 8 : index
    %c0_117 = arith.constant 0 : index
    %c0_118 = arith.constant 0 : index
    %161 = vector.load %arg8[%c8_116, %c0_117, %c0_118] : memref<9x1x512xf32, #tpu.memory_space<vmem>>, vector<1x1x512xf32>
    %162 = vector.shape_cast %161 : vector<1x1x512xf32> to vector<1x512xf32>
    %163 = vector.broadcast %162 : vector<1x512xf32> to vector<4x512xf32>
    %164 = arith.mulf %160, %163 : vector<4x512xf32>
    %c8_119 = arith.constant 8 : index
    %c0_120 = arith.constant 0 : index
    %c0_121 = arith.constant 0 : index
    %165 = vector.load %arg12[%c8_119, %c0_120, %c0_121] : memref<9x4x512xf32, #tpu.memory_space<vmem>>, vector<1x4x512xf32>
    %166 = vector.shape_cast %165 : vector<1x4x512xf32> to vector<4x512xf32>
    %167 = vector.shape_cast %164 : vector<4x512xf32> to vector<1x4x512xf32>
    tpu.vector_store %arg12[%c8_119, %c0_120, %c0_121], %167 {strides = array<i32>} : memref<9x4x512xf32, #tpu.memory_space<vmem>>, vector<1x4x512xf32>,
    %c0_122 = arith.constant 0 : index
    %c0_123 = arith.constant 0 : index
    %c0_124 = arith.constant 0 : index
    %168 = vector.load %arg12[%c0_122, %c0_123, %c0_124] : memref<9x4x512xf32, #tpu.memory_space<vmem>>, vector<9x4x512xf32>
    %169 = vector.shape_cast %168 : vector<9x4x512xf32> to vector<36x512xf32>
    %cst_125 = arith.constant dense<0.000000e+00> : vector<4x512xf32>
    %170 = tpu.matmul %100, %169, %cst_125 {dimension_numbers = #tpu.dot_dimension_numbers<[1], [0], [0], [1], [0, 0, 1, 1], [], []>} : vector<4x36xf32>, vector<36x512xf32>, vector<4x512xf32> -> vector<4x512xf32>
    %c0_126 = arith.constant 0 : index
    %c0_127 = arith.constant 0 : index
    %171 = vector.load %arg7[%c0_126, %c0_127] : memref<4x1xf32, #tpu.memory_space<vmem>>, vector<4x1xf32>
    %172 = vector.broadcast %171 : vector<4x1xf32> to vector<4x512xf32>
    %173 = arith.addf %170, %172 : vector<4x512xf32>
    %c0_128 = arith.constant 0 : index
    %c0_129 = arith.constant 0 : index
    %174 = vector.load %arg9[%c0_128, %c0_129] : memref<256x1024xf32, #tpu.memory_space<vmem>>, vector<256x1024xf32>
    %175 = vector.extract_strided_slice %173 {offsets = [0, 0], sizes = [4, 256], strides = [1, 1]} : vector<4x512xf32> to vector<4x256xf32>
    %cst_130 = arith.constant dense<0.000000e+00> : vector<4x1024xf32>
    %176 = tpu.matmul %175, %174, %cst_130 {dimension_numbers = #tpu.dot_dimension_numbers<[1], [0], [0], [1], [0, 0, 1, 1], [], []>} : vector<4x256xf32>, vector<256x1024xf32>, vector<4x1024xf32> -> vector<4x1024xf32>
    %c0_131 = arith.constant 0 : index
    %c0_132 = arith.constant 0 : index
    %c0_133 = arith.constant 0 : index
    %177 = vector.load %arg10[%c0_131, %c0_132, %c0_133] : memref<2x4x1024xf32, #tpu.memory_space<vmem>>, vector<1x4x1024xf32>
    %178 = vector.shape_cast %177 : vector<1x4x1024xf32> to vector<4x1024xf32>
    %179 = vector.shape_cast %176 : vector<4x1024xf32> to vector<1x4x1024xf32>
    tpu.vector_store %arg10[%c0_131, %c0_132, %c0_133], %179 {strides = array<i32>} : memref<2x4x1024xf32, #tpu.memory_space<vmem>>, vector<1x4x1024xf32>,
    %180 = vector.extract_strided_slice %173 {offsets = [0, 256], sizes = [4, 256], strides = [1, 1]} : vector<4x512xf32> to vector<4x256xf32>
    %cst_134 = arith.constant dense<0.000000e+00> : vector<4x1024xf32>
    %181 = tpu.matmul %180, %174, %cst_134 {dimension_numbers = #tpu.dot_dimension_numbers<[1], [0], [0], [1], [0, 0, 1, 1], [], []>} : vector<4x256xf32>, vector<256x1024xf32>, vector<4x1024xf32> -> vector<4x1024xf32>
    %c1_135 = arith.constant 1 : index
    %c0_136 = arith.constant 0 : index
    %c0_137 = arith.constant 0 : index
    %182 = vector.load %arg10[%c1_135, %c0_136, %c0_137] : memref<2x4x1024xf32, #tpu.memory_space<vmem>>, vector<1x4x1024xf32>
    %183 = vector.shape_cast %182 : vector<1x4x1024xf32> to vector<4x1024xf32>
    %184 = vector.shape_cast %181 : vector<4x1024xf32> to vector<1x4x1024xf32>
    tpu.vector_store %arg10[%c1_135, %c0_136, %c0_137], %184 {strides = array<i32>} : memref<2x4x1024xf32, #tpu.memory_space<vmem>>, vector<1x4x1024xf32>,
    return
  }
  func.func @transform_0(%arg0: i32) -> (i32, i32) {
    %c0_i32 = arith.constant 0 : i32
    %c0_i32_0 = arith.constant 0 : i32
    %c0_i32_1 = arith.constant 0 : i32
    return %c0_i32, %c0_i32_0 : i32, i32
  }
  func.func @transform_1(%arg0: i32) -> (i32, i32) {
    %c0_i32 = arith.constant 0 : i32
    %c0_i32_0 = arith.constant 0 : i32
    %c0_i32_1 = arith.constant 0 : i32
    return %c0_i32, %c0_i32_0 : i32, i32
  }
  func.func @transform_2(%arg0: i32) -> (i32, i32) {
    %c0_i32 = arith.constant 0 : i32
    %c0_i32_0 = arith.constant 0 : i32
    %c0_i32_1 = arith.constant 0 : i32
    return %c0_i32, %c0_i32_0 : i32, i32
  }
  func.func @transform_3(%arg0: i32) -> (i32, i32) {
    %c0_i32 = arith.constant 0 : i32
    %c0_i32_0 = arith.constant 0 : i32
    %c0_i32_1 = arith.constant 0 : i32
    return %c0_i32, %c0_i32_0 : i32, i32
  }
  func.func @transform_4(%arg0: i32) -> (i32, i32) {
    %c0_i32 = arith.constant 0 : i32
    %c0_i32_0 = arith.constant 0 : i32
    %c0_i32_1 = arith.constant 0 : i32
    return %c0_i32, %c0_i32_0 : i32, i32
  }
  func.func @transform_5(%arg0: i32) -> (i32, i32) {
    %c0_i32 = arith.constant 0 : i32
    %c0_i32_0 = arith.constant 0 : i32
    %c0_i32_1 = arith.constant 0 : i32
    return %c0_i32, %c0_i32_0 : i32, i32
  }
  func.func @transform_6(%arg0: i32) -> (i32, i32) {
    %c0_i32 = arith.constant 0 : i32
    %c0_i32_0 = arith.constant 0 : i32
    %c0_i32_1 = arith.constant 0 : i32
    return %c0_i32, %c0_i32_0 : i32, i32
  }
  func.func @transform_7(%arg0: i32) -> (i32, i32, i32) {
    %c0_i32 = arith.constant 0 : i32
    %c0_i32_0 = arith.constant 0 : i32
    %c0_i32_1 = arith.constant 0 : i32
    %c0_i32_2 = arith.constant 0 : i32
    return %c0_i32, %c0_i32_0, %c0_i32_1 : i32, i32, i32
  }
  func.func @transform_8(%arg0: i32) -> (i32, i32) {
    %c0_i32 = arith.constant 0 : i32
    %c0_i32_0 = arith.constant 0 : i32
    %c0_i32_1 = arith.constant 0 : i32
    return %c0_i32, %c0_i32_0 : i32, i32
  }
  func.func @transform_9(%arg0: i32) -> (i32, i32, i32) {
    %c0_i32 = arith.constant 0 : i32
    %c0_i32_0 = arith.constant 0 : i32
    %c0_i32_1 = arith.constant 0 : i32
    %c0_i32_2 = arith.constant 0 : i32
    return %c0_i32, %c0_i32_0, %c0_i32_1 : i32, i32, i32
  }
}

</mosaic_0001>

<bundles_post_ra>
// kernel: tpu_custom_call.1
= control target key start
LH: loop header
LB: loop body
LE: loop exit
PB: predicated region body
PF: predicated region fallthrough
CT: control target
= control target key end

     0   :  { %14 = vsyncpa [#allocation5], 0  ;;  %s3933_s0 = inlined_call_operand.hbm [shape: f32[8,512], index: 0, kind: input, shape index: {}]   ;;  %s3934_s1 = inlined_call_operand.vmem [shape: f32[4,72], index: 1, kind: input, shape index: {}]   ;;  %s3935_s2 = inlined_call_operand.vmem [shape: f32[4,1], index: 2, kind: input, shape index: {}]   ;;  %s3936_s3 = inlined_call_operand.vmem [shape: f32[4,1], index: 3, kind: input, shape index: {}]   ;;  %s3937_s4 = inlined_call_operand.vmem [shape: f32[4,1], index: 4, kind: input, shape index: {}]   ;;  %s3938_s5 = inlined_call_operand.vmem [shape: f32[4,36], index: 5, kind: input, shape index: {}]   ;;  %s3939_s6 = inlined_call_operand.vmem [shape: f32[4,1], index: 6, kind: input, shape index: {}]   ;;  %s3940_s7 = inlined_call_operand.hbm [shape: f32[9,1,512], index: 7, kind: input, shape index: {}]   ;;  %s3941_s8 = inlined_call_operand.hbm [shape: f32[256,1024], index: 8, kind: input, shape index: {}]   ;;  %s3942_s9 = inlined_call_operand.hbm [shape: f32[2,4,1024], index: 9, kind: output, shape index: {}]  }
   0x1   :  { %15 = vsyncpa [#allocation8], 0 }
   0x2   :  { %16 = vsyncpa [#allocation6], 0  ;;  %s2366_s30 = smov [#allocation7]  }
   0x3   :  { %s44_s10 = sshll.u32 %s2366_s30, 4  ;;  %s45_s10 = int_to_ptr.vmem [resolvable:$true] %s44_s10 }
   0x4   :  { %s2288_s11 = scalar_lea.vmem %s45_s10, 576  ;;  %p2293_p1 = scmp.lt.s32.totalorder %s45_s10, %s45_s10 }
   0x5   :  { %p2289_p0 = scmp.ne.s32.totalorder %s45_s10, %s2288_s11  ;;  %p2294_p2 = scmp.lt.s32.totalorder %s2288_s11, %s2288_s11 }
   0x7   :  { %p2295_p3 = por %p2294_p2, %p2293_p1 }
   0x9   :  { %p2296_p4 = pnand %p2295_p3, %p2289_p0 }
   0xb   :  { %2299 = shalt.err (!%p2296_p4)
}
   0xc   :  { %s2367_s12 = smov 64   ;;  %s2368_s13 = smov 4  }
   0xd   :  { %50 = dma.hbm_to_vmem [thread:$0]  %s3940_s7, 576, %s45_s10, [#allocation8], %s2367_s12, %s2367_s12, %s2368_s13  }
   0xe   :  { %s2369_s16 = smov [#allocation4]   ;;  %s2370_s18 = smov [#allocation9]  }
   0xf   :  { %s23_s17 = sshll.u32 %s2369_s16, 4  ;;  %s56_s19 = sshll.u32 %s2370_s18, 4  ;;  %s24_s17 = int_to_ptr.vmem [resolvable:$true] %s23_s17  ;;  %s57_s19 = int_to_ptr.vmem [resolvable:$true] %s56_s19 }
  0x10   :  { %s2308_s20 = scalar_lea.vmem %s24_s17, 512  ;;  %p2313_p6 = scmp.lt.s32.totalorder %s24_s17, %s24_s17 }
  0x11   :  { %p2309_p5 = scmp.ne.s32.totalorder %s24_s17, %s2308_s20  ;;  %p2314_p7 = scmp.lt.s32.totalorder %s2308_s20, %s2308_s20 }
  0x13   :  { %p2315_p8 = por %p2314_p7, %p2313_p6 }
  0x15   :  { %p2316_p9 = pnand %p2315_p8, %p2309_p5 }
  0x17   :  { %2319 = shalt.err (!%p2316_p9)
}
  0x18   :  { %26 = dma.hbm_to_vmem [thread:$0]  %s3933_s0, 512, %s24_s17, [#allocation5]  }
  0x19   :  { %s2328_s23 = scalar_lea.vmem %s57_s19, 32768  ;;  %p2333_p11 = scmp.lt.s32.totalorder %s57_s19, %s57_s19 }
  0x1a   :  { %p2329_p10 = scmp.ne.s32.totalorder %s57_s19, %s2328_s23  ;;  %p2334_p12 = scmp.lt.s32.totalorder %s2328_s23, %s2328_s23 }
  0x1c   :  { %p2335_p13 = por %p2334_p12, %p2333_p11 }
  0x1e   :  { %p2336_p0 = pnand %p2335_p13, %p2329_p10 }
  0x20   :  { %2339 = shalt.err (!%p2336_p0)
}
  0x21   :  { %s2371_s7 = smov 1024  }
  0x22   :  { %62 = dma.hbm_to_vmem [thread:$0]  %s3941_s8, 32768, %s57_s19, [#allocation8], %s2371_s7, %s2371_s7, %s2367_s12  }
  0x23   :  { %2360 = dma.done.wait [#allocation5], 512  }
  0x24   :  { %2361 = vsyncadd [#allocation5], 4294966784 }
  0x25   :  { %2362 = dma.done.wait [#allocation8], 33344  }
  0x26   :  { %2363 = vsyncadd [#allocation8], 4294933952  ;;  %v2444_v0 = vld [vmem:[#allocation4 + $0x8] sm:$0xff]  ;;  %v2446_v1 = vld [vmem:[#allocation4] sm:$0xff]  ;;  %s2372_s0 = smov 111   ;;  %s2373_s8 = smov 112   ;;  %v85_v7 = vlaneseq }
  0x27   :  { %399 = vrot.lane.b32.xlu0 %v2444_v0, %s2372_s0  ;;  %397 = vrot.lane.b32.xlu1 %v2446_v1, %s2372_s0  ;;  %v2452_v2 = vld [vmem:[#allocation4 + $0x10] sm:$0xff]  ;;  %s2374_s26 = smov 113   ;;  %v2466_v3 = vld [vmem:[#allocation4 + $0x18] sm:$0xff]  ;;  %s2375_s27 = smov 127   ;;  %v2379_v4 = vmov 0.0   ;;  %v2381_v5 = vmov 0  }
  0x28   :  { %s2376_s28 = smov 1   ;;  %s2377_s29 = smov 15   ;;  %552 = vmatprep.mubr.f32.mxu0 %v2379_v4  ;;  %623 = vmatprep.mubr.f32.mxu1 %v2379_v4  ;;  %v478_v6 = vld [vmem:[%s3935_s2] sm:$0xf]  ;;  %v95_v8 = vshrl.u32 %v85_v7, 7  ;;  %v2521_v9 = vand.u32 127, %v85_v7 }
  0x29   :  { %s2378_s30 = smov 16   ;;  %s2380_s10 = smov 17   ;;  %2249 = vset.pattern.permute.xlu0 %v2381_v5  ;;  %2250 = vset.pattern.permute.xlu1 %v2381_v5  ;;  %v411_v14 = vld [vmem:[#allocation7 + $0x20] sm:$0xf]  ;;  %v2529_v16 = vld [vmem:[#allocation7 + $0x1c] sm:$0xf] }
  0x2a   :  { %v2523_v10 = vsub.s32 1, %v95_v8  ;;  %v2525_v11 = vsub.s32 0, %v95_v8  ;;  %vm405_vm0 = vcmp.lt.s32.totalorder %v2521_v9, 111  ;;  %vm360_vm1 = vcmp.lt.s32.totalorder %v2521_v9, 112  ;;  %v2541_v26 = vld [vmem:[#allocation7 + $0x18] sm:$0xf] }
  0x2b   :  { %401 = vrot.lane.b32.xlu0 %v2452_v2, %s2372_s0  ;;  %354 = vrot.lane.b32.xlu1 %v2444_v0, %s2373_s8  ;;  %v2543_v29 = vsub.s32 2, %v95_v8  ;;  %v2545_v30 = vsub.s32 3, %v95_v8  ;;  %vm315_vm2 = vcmp.lt.s32.totalorder %v2521_v9, 113  ;;  %v276_v43 = vld [vmem:[#allocation7 + $0x14] sm:$0xf]  ;;  %vm270_vm3 = vcmp.lt.s32.totalorder %v2521_v9, 127 }
  0x2c   :  { %v420_v15 = vrot.slane %v411_v14, %v2523_v10  ;;  %v416_v17 = vrot.slane %v411_v14, %v2525_v11  ;;  %v375_v23 = vrot.slane %v2529_v16, %v2523_v10  ;;  %v371_v24 = vrot.slane %v2529_v16, %v2525_v11 }
  0x2d   :  { %v330_v35 = vrot.slane %v2541_v26, %v2523_v10  ;;  %v326_v40 = vrot.slane %v2541_v26, %v2525_v11  ;;  %v428_v41 = vrot.slane %v411_v14, %v2545_v30  ;;  %v424_v42 = vrot.slane %v411_v14, %v2543_v29  ;;  %v2585_v14 = vld [vmem:[#allocation7 + $0xc] sm:$0xf] }
  0x2e   :  { %v285_v51 = vrot.slane %v276_v43, %v2523_v10  ;;  %v379_v57 = vrot.slane %v2529_v16, %v2543_v29  ;;  %v383_v58 = vrot.slane %v2529_v16, %v2545_v30  ;;  %v281_v59 = vrot.slane %v276_v43, %v2525_v11 }
  0x2f   :  { %356 = vrot.lane.b32.xlu0 %v2452_v2, %s2373_s8  ;;  %352 = vrot.lane.b32.xlu1 %v2446_v1, %s2373_s8  ;;  %vm220_vm4 = vcmp.lt.s32.totalorder %v2521_v9, 1  ;;  %vm175_vm5 = vcmp.lt.s32.totalorder %v2521_v9, 15  ;;  %vm130_vm6 = vcmp.lt.s32.totalorder %v2521_v9, 16  ;;  %vm87_vm7 = vcmp.lt.s32.totalorder %v2521_v9, 17  ;;  %v2990_v9 = vld [vmem:[#allocation9 + $0x3d0] sm:$0xff] }
  0x30   :  { %vm484_vm8 = vcmask 588800   ;;  %vm630_vm9 = vcmask 1043456   ;;  %vm1167_vm10 = vcmask 293888  }
  0x33   :  { %309 = vrot.lane.b32.xlu0 %v2444_v0, %s2374_s26  ;;  %311 = vrot.lane.b32.xlu1 %v2452_v2, %s2374_s26 }
  0x37   :  { %403 = vrot.lane.b32.xlu0 %v2466_v3, %s2372_s0  ;;  %307 = vrot.lane.b32.xlu1 %v2446_v1, %s2374_s26 }
  0x3b   :  { %264 = vrot.lane.b32.xlu0 %v2444_v0, %s2375_s27  ;;  %266 = vrot.lane.b32.xlu1 %v2452_v2, %s2375_s27 }
  0x3f   :  { %358 = vrot.lane.b32.xlu0 %v2466_v3, %s2373_s8  ;;  %262 = vrot.lane.b32.xlu1 %v2446_v1, %s2375_s27 }
  0x43   :  { %313 = vrot.lane.b32.xlu0 %v2466_v3, %s2374_s26  ;;  %212 = vrot.lane.b32.xlu1 %v2446_v1, %s2376_s28 }
  0x47   :  { %214 = vrot.lane.b32.xlu0 %v2444_v0, %s2376_s28  ;;  %268 = vrot.lane.b32.xlu1 %v2466_v3, %s2375_s27 }
  0x4b   :  { %218 = vrot.lane.b32.xlu0 %v2466_v3, %s2376_s28  ;;  %167 = vrot.lane.b32.xlu1 %v2446_v1, %s2377_s29 }
  0x4f   :  { %169 = vrot.lane.b32.xlu0 %v2444_v0, %s2377_s29  ;;  %173 = vrot.lane.b32.xlu1 %v2466_v3, %s2377_s29 }
  0x53   :  { %122 = vrot.lane.b32.xlu0 %v2446_v1, %s2378_s30  ;;  %124 = vrot.lane.b32.xlu1 %v2444_v0, %s2378_s30 }
  0x57   :  { %216 = vrot.lane.b32.xlu0 %v2452_v2, %s2376_s28  ;;  %128 = vrot.lane.b32.xlu1 %v2466_v3, %s2378_s30 }
  0x5b   :  { %77 = vrot.lane.b32.xlu0 %v2446_v1, %s2380_s10  ;;  %79 = vrot.lane.b32.xlu1 %v2444_v0, %s2380_s10 }
  0x5f   :  { %171 = vrot.lane.b32.xlu0 %v2452_v2, %s2377_s29  ;;  %83 = vrot.lane.b32.xlu1 %v2466_v3, %s2380_s10 }
  0x63   :  { %126 = vrot.lane.b32.xlu0 %v2452_v2, %s2378_s30  ;;  %81 = vrot.lane.b32.xlu1 %v2452_v2, %s2380_s10 }
  0x67   :  { %481 = vperm.xlu0 %2249, %v478_v6   ;;  %v334_v6 = vrot.slane %v2541_v26, %v2543_v29 }
  0x99   :  { %v400_v12 = vpop.permute.xlu0 %399  ;;  %v398_v13 = vpop.permute.xlu1 %397 }
  0x9a   :  { %v408_v18 = vsel %vm405_vm0, %v398_v13, %v400_v12 }
  0x9b   :  { %v433_v25 = vmul.f32 %v416_v17, %v408_v18 }
  0x9d   :  { %v402_v19 = vpop.permute.xlu0 %401  ;;  %v355_v20 = vpop.permute.xlu1 %354 }
  0x9e   :  { %v407_v21 = vsel %vm405_vm0, %v400_v12, %v402_v19 }
  0x9f   :  { %v434_v22 = vmul.f32 %v420_v15, %v407_v21 }
  0xa1   :  { %502 = vmatprep.subr.mxu0 %v434_v22  ;;  %v357_v27 = vpop.permute.xlu0 %356  ;;  %v353_v28 = vpop.permute.xlu1 %352  ;;  %v289_v22 = vrot.slane %v276_v43, %v2543_v29 }
  0xa2   :  { %v362_v31 = vsel %vm360_vm1, %v355_v20, %v357_v27  ;;  %v363_v32 = vsel %vm360_vm1, %v353_v28, %v355_v20  ;;  %503 = vmatpush1.msra.mxu0 %v433_v25 }
  0xa3   :  { %v389_v33 = vmul.f32 %v375_v23, %v362_v31  ;;  %v388_v34 = vmul.f32 %v371_v24, %v363_v32  ;;  %v293_v23 = vrot.slane %v276_v43, %v2545_v30 }
  0xa5   :  { %v310_v36 = vpop.permute.xlu0 %309  ;;  %504 = vmatprep.subr.mxu0 %v389_v33  ;;  %v312_v37 = vpop.permute.xlu1 %311  ;;  %v231_v33 = vrot.slane %v2585_v14, %v2525_v11 }
  0xa6   :  { %v317_v38 = vsel %vm315_vm2, %v310_v36, %v312_v37  ;;  %505 = vmatpush1.msra.mxu0 %v388_v34 }
  0xa7   :  { %v344_v39 = vmul.f32 %v330_v35, %v317_v38 }
  0xa9   :  { %v404_v44 = vpop.permute.xlu0 %403  ;;  %506 = vmatprep.subr.mxu0 %v344_v39  ;;  %v308_v45 = vpop.permute.xlu1 %307 }
  0xaa   :  { %v406_v46 = vsel %vm405_vm0, %v402_v19, %v404_v44  ;;  %v318_v47 = vsel %vm315_vm2, %v308_v45, %v310_v36  ;;  %v409_v48 = vsel %vm405_vm0, %v404_v44, %v398_v13  ;;  %v338_v13 = vrot.slane %v2541_v26, %v2545_v30 }
  0xab   :  { %v343_v49 = vmul.f32 %v326_v40, %v318_v47  ;;  %v436_v50 = vmul.f32 %v428_v41, %v409_v48  ;;  %v435_v52 = vmul.f32 %v424_v42, %v406_v46  ;;  %v235_v19 = vrot.slane %v2585_v14, %v2523_v10  ;;  %v2616_v40 = vld [vmem:[#allocation7 + $0x4] sm:$0xf] }
  0xad   :  { %v265_v53 = vpop.permute.xlu0 %264  ;;  %507 = vmatpush1.msra.mxu0 %v343_v49  ;;  %573 = vmatprep.subr.mxu1 %v436_v50  ;;  %v267_v54 = vpop.permute.xlu1 %266  ;;  %v239_v50 = vrot.slane %v2585_v14, %v2543_v29 }
  0xae   :  { %v272_v55 = vsel %vm270_vm3, %v265_v53, %v267_v54  ;;  %574 = vmatpush1.msra.mxu1 %v435_v52  ;;  %v141_v52 = vrot.slane %v2616_v40, %v2525_v11 }
  0xaf   :  { %v299_v56 = vmul.f32 %v285_v51, %v272_v55  ;;  %v243_v51 = vrot.slane %v2585_v14, %v2545_v30 }
  0xb1   :  { %v359_v60 = vpop.permute.xlu0 %358  ;;  %508 = vmatprep.subr.mxu0 %v299_v56  ;;  %v263_v61 = vpop.permute.xlu1 %262 }
  0xb2   :  { %v361_v62 = vsel %vm360_vm1, %v357_v27, %v359_v60  ;;  %v364_v63 = vsel %vm360_vm1, %v359_v60, %v353_v28  ;;  %v273_v5 = vsel %vm270_vm3, %v263_v61, %v265_v53  ;;  %v92_v53 = vld [vmem:[#allocation7] sm:$0xf] }
  0xb3   :  { %v390_v7 = vmul.f32 %v379_v57, %v361_v62  ;;  %v391_v8 = vmul.f32 %v383_v58, %v364_v63  ;;  %v298_v12 = vmul.f32 %v281_v59, %v273_v5  ;;  %v101_v62 = vrot.slane %v92_v53, %v2523_v10 }
  0xb5   :  { %v314_v15 = vpop.permute.xlu0 %313  ;;  %509 = vmatpush1.msra.mxu0 %v298_v12  ;;  %575 = vmatprep.subr.mxu1 %v391_v8  ;;  %v213_v16 = vpop.permute.xlu1 %212 }
  0xb6   :  { %v316_v17 = vsel %vm315_vm2, %v312_v37, %v314_v15  ;;  %v319_v18 = vsel %vm315_vm2, %v314_v15, %v308_v45  ;;  %576 = vmatpush1.msra.mxu1 %v390_v7  ;;  %510 = vmatprep.subr.mxu0 %v2444_v0 }
  0xb7   :  { %v345_v20 = vmul.f32 %v334_v6, %v316_v17  ;;  %v346_v21 = vmul.f32 %v338_v13, %v319_v18  ;;  %511 = vmatpush1.msra.mxu0 %v2446_v1  ;;  %v2606_v1 = vld [vmem:[#allocation7 + $0x8] sm:$0xf]  ;;  %v97_v13 = vrot.slane %v92_v53, %v2525_v11 }
  0xb8   :  { %v190_v38 = vrot.slane %v2606_v1, %v2523_v10  ;;  %v186_v39 = vrot.slane %v2606_v1, %v2525_v11  ;;  %v194_v8 = vrot.slane %v2606_v1, %v2543_v29  ;;  %v198_v12 = vrot.slane %v2606_v1, %v2545_v30 }
  0xb9   :  { %v215_v24 = vpop.permute.xlu0 %214  ;;  %577 = vmatprep.subr.mxu1 %v346_v21  ;;  %v269_v25 = vpop.permute.xlu1 %268 }
  0xba   :  { %v223_v26 = vsel %vm220_vm4, %v213_v16, %v215_v24  ;;  %v271_v27 = vsel %vm270_vm3, %v267_v54, %v269_v25  ;;  %v274_v0 = vsel %vm270_vm3, %v269_v25, %v263_v61  ;;  %578 = vmatpush1.msra.mxu1 %v345_v20 }
  0xbb   :  { %v249_v28 = vmul.f32 %v235_v19, %v223_v26  ;;  %v300_v31 = vmul.f32 %v289_v22, %v271_v27  ;;  %v301_v32 = vmul.f32 %v293_v23, %v274_v0  ;;  %v149_v19 = vrot.slane %v2616_v40, %v2543_v29 }
  0xbc   :  { %v153_v23 = vrot.slane %v2616_v40, %v2545_v30  ;;  %v109_v26 = vrot.slane %v92_v53, %v2545_v30 }
  0xbd   :  { %v219_v34 = vpop.permute.xlu0 %218  ;;  %512 = vmatprep.subr.mxu0 %v249_v28  ;;  %579 = vmatprep.subr.mxu1 %v301_v32  ;;  %v168_v35 = vpop.permute.xlu1 %167 }
  0xbe   :  { %v224_v36 = vsel %vm220_vm4, %v219_v34, %v213_v16  ;;  %580 = vmatpush1.msra.mxu1 %v300_v31  ;;  %v105_v31 = vrot.slane %v92_v53, %v2543_v29 }
  0xbf   :  { %v248_v37 = vmul.f32 %v231_v33, %v224_v36  ;;  %581 = vmatprep.subr.mxu1 %v2466_v3  ;;  %v145_v3 = vrot.slane %v2616_v40, %v2523_v10 }
  0xc0   :  { %582 = vmatpush1.msra.mxu1 %v2452_v2 }
  0xc1   :  { %v170_v41 = vpop.permute.xlu0 %169  ;;  %513 = vmatpush1.msra.mxu0 %v248_v37  ;;  %v174_v42 = vpop.permute.xlu1 %173 }
  0xc2   :  { %v178_v43 = vsel %vm175_vm5, %v168_v35, %v170_v41  ;;  %v179_v44 = vsel %vm175_vm5, %v174_v42, %v168_v35 }
  0xc3   :  { %v204_v45 = vmul.f32 %v190_v38, %v178_v43  ;;  %v203_v46 = vmul.f32 %v186_v39, %v179_v44 }
  0xc5   :  { %v123_v47 = vpop.permute.xlu0 %122  ;;  %514 = vmatprep.subr.mxu0 %v204_v45  ;;  %v125_v48 = vpop.permute.xlu1 %124 }
  0xc6   :  { %v133_v2 = vsel %vm130_vm6, %v123_v47, %v125_v48  ;;  %515 = vmatpush1.msra.mxu0 %v203_v46 }
  0xc7   :  { %v159_v49 = vmul.f32 %v145_v3, %v133_v2 }
  0xc9   :  { %v217_v54 = vpop.permute.xlu0 %216  ;;  %516 = vmatprep.subr.mxu0 %v159_v49  ;;  %v129_v55 = vpop.permute.xlu1 %128 }
  0xca   :  { %v221_v56 = vsel %vm220_vm4, %v217_v54, %v219_v34  ;;  %v222_v57 = vsel %vm220_vm4, %v215_v24, %v217_v54  ;;  %v134_v58 = vsel %vm130_vm6, %v129_v55, %v123_v47  ;;  %v76_v24 = vld [vmem:[%s3934_s1] sm:$0xf] }
  0xcb   :  { %v250_v59 = vmul.f32 %v239_v50, %v222_v57  ;;  %v251_v60 = vmul.f32 %v243_v51, %v221_v56  ;;  %v158_v61 = vmul.f32 %v141_v52, %v134_v58 }
  0xcd   :  { %v78_v63 = vpop.permute.xlu0 %77  ;;  %517 = vmatpush1.msra.mxu0 %v158_v61  ;;  %583 = vmatprep.subr.mxu1 %v251_v60  ;;  %v80_v5 = vpop.permute.xlu1 %79  ;;  %v674_v61 = vld [vmem:[%s3937_s4] sm:$0xf] }
  0xce   :  { %v90_v6 = vsel %vm87_vm7, %v78_v63, %v80_v5  ;;  %584 = vmatpush1.msra.mxu1 %v250_v59 }
  0xcf   :  { %v115_v7 = vmul.f32 %v101_v62, %v90_v6 }
  0xd1   :  { %v172_v14 = vpop.permute.xlu0 %171  ;;  %518 = vmatprep.subr.mxu0 %v115_v7  ;;  %v84_v15 = vpop.permute.xlu1 %83 }
  0xd2   :  { %v176_v16 = vsel %vm175_vm5, %v172_v14, %v174_v42  ;;  %v177_v17 = vsel %vm175_vm5, %v170_v41, %v172_v14  ;;  %v91_v18 = vsel %vm87_vm7, %v84_v15, %v78_v63 }
  0xd3   :  { %v205_v20 = vmul.f32 %v194_v8, %v177_v17  ;;  %v206_v21 = vmul.f32 %v198_v12, %v176_v16  ;;  %v114_v22 = vmul.f32 %v97_v13, %v91_v18  ;;  %v657_v13 = vld [vmem:[%s3936_s3] sm:$0xf] }
  0xd5   :  { %v127_v25 = vpop.permute.xlu0 %126  ;;  %519 = vmatpush1.msra.mxu0 %v114_v22  ;;  %585 = vmatprep.subr.mxu1 %v206_v21  ;;  %v82_v27 = vpop.permute.xlu1 %81 }
  0xd6   :  { %v131_v0 = vsel %vm130_vm6, %v127_v25, %v129_v55  ;;  %v132_v28 = vsel %vm130_vm6, %v125_v48, %v127_v25  ;;  %v88_v32 = vsel %vm87_vm7, %v82_v27, %v84_v15  ;;  %586 = vmatpush1.msra.mxu1 %v205_v20  ;;  %v89_v34 = vsel %vm87_vm7, %v80_v5, %v82_v27 }
  0xd7   :  { %v160_v33 = vmul.f32 %v149_v19, %v132_v28  ;;  %v161_v1 = vmul.f32 %v153_v23, %v131_v0  ;;  %2204 = vmatmul.mubr.msk.f32.vlgmr.msra.gmra.mxu0 %vm484_vm8, %v76_v24  ;;  %v117_v35 = vmul.f32 %v109_v26, %v88_v32  ;;  %v116_v36 = vmul.f32 %v105_v31, %v89_v34  ;;  %v1109_v34 = vld [vmem:[%s3939_s6] sm:$0xf] }
  0xd8   :  { %1243 = vmatprep.mubr.f32.mxu0 %v2379_v4 }
  0xd9   :  { %587 = vmatprep.subr.mxu1 %v161_v1 }
  0xda   :  { %588 = vmatpush1.msra.mxu1 %v160_v33 }
  0xdb   :  { %589 = vmatprep.subr.mxu1 %v117_v35  ;;  %v2765_v35 = vld [vmem:[#allocation7 + $0x20] sm:$0xf] }
  0xdc   :  { %590 = vmatpush1.msra.mxu1 %v116_v36 }
  0xdd   :  { %2205 = vmatmul.mubr.msk.f32.vlgmr.msra.gmra.mxu1 %vm484_vm8, %v76_v24 }
  0xde   :  { %1314 = vmatprep.mubr.f32.mxu1 %v2379_v4 }
  0xe2   :  { %v482_v37 = vpop.permute.xlu0 %481 }
 0x197   :  { %v554_v38 = vpop.f32.mrf.mxu0 }
 0x198   :  { %v555_v39 = vadd.f32 %v554_v38, %v482_v37  ;;  %v1059_v38 = vrot.slane %v2765_v35, %v2525_v11 }
 0x199   :  { %v556_v40 = vpop.f32.mrf.mxu0 }
 0x19a   :  { %v557_v41 = vadd.f32 %v556_v40, %v482_v37  ;;  %v641_v42 = vmul.f32 %v555_v39, %v555_v39  ;;  %v631_v45 = vsel %vm630_vm9, %v555_v39, 0.0 }
 0x19c   :  { %v632_v43 = vsel %vm630_vm9, %v557_v41, 0.0  ;;  %v642_v44 = vmul.f32 %v557_v41, %v557_v41  ;;  %v645_v47 = vsel %vm630_vm9, %v641_v42, 0.0 }
 0x19d   :  { %v625_v46 = vpop.f32.mrf.mxu1  ;;  %v633_v4 = vadd.f32 %v632_v43, %v631_v45 }
 0x19e   :  { %v626_v3 = vadd.f32 %v625_v46, %v482_v37  ;;  %v646_v48 = vsel %vm630_vm9, %v642_v44, 0.0  ;;  %v2783_v46 = vld [vmem:[#allocation7 + $0x18] sm:$0xf] }
 0x19f   :  { %v627_v2 = vpop.f32.mrf.mxu1  ;;  %v647_v53 = vadd.f32 %v646_v48, %v645_v47 }
 0x1a0   :  { %v643_v49 = vmul.f32 %v626_v3, %v626_v3  ;;  %v628_v50 = vadd.f32 %v627_v2, %v482_v37  ;;  %v634_v51 = vsel %vm630_vm9, %v626_v3, 0.0 }
 0x1a1   :  { %v635_v52 = vadd.f32 %v634_v51, %v633_v4 }
 0x1a2   :  { %v636_v54 = vsel %vm630_vm9, %v628_v50, 0.0  ;;  %v644_v55 = vmul.f32 %v628_v50, %v628_v50  ;;  %v648_v56 = vsel %vm630_vm9, %v643_v49, 0.0  ;;  %v965_v49 = vrot.slane %v2783_v46, %v2523_v10 }
 0x1a3   :  { %v637_v57 = vadd.f32 %v636_v54, %v635_v52  ;;  %v649_v58 = vadd.f32 %v648_v56, %v647_v53 }
 0x1a4   :  { %v650_v59 = vsel %vm630_vm9, %v644_v55, 0.0 }
 0x1a5   :  { %638 = vadd.xlane.f32.xlu1 %v637_v57  ;;  %v651_v60 = vadd.f32 %v650_v59, %v649_v58  ;;  %v961_v58 = vrot.slane %v2783_v46, %v2525_v11 }
 0x1a7   :  { %652 = vadd.xlane.f32.xlu0 %v651_v60  ;;  %v2810_v60 = vld [vmem:[#allocation7 + $0x14] sm:$0xf] }
 0x1bd   :  { %677 = vperm.xlu0 %2249, %v674_v61  }
 0x22e   :  { %v639_v62 = vpop.xlane.xlu1 %638 }
 0x22f   :  { %v640_v63 = vmul.f32 0.001953125, %v639_v62 }
 0x230   :  { %v653_v5 = vpop.xlane.xlu0 %652 }
 0x231   :  { %v654_v6 = vmul.f32 0.001953125, %v653_v5  ;;  %v655_v7 = vmul.f32 %v640_v63, %v640_v63  ;;  %v661_v16 = vsub.f32 %v555_v39, %v640_v63  ;;  %v662_v17 = vsub.f32 %v557_v41, %v640_v63 }
 0x232   :  { %v663_v18 = vsub.f32 %v626_v3, %v640_v63  ;;  %v664_v31 = vsub.f32 %v628_v50, %v640_v63  ;;  %v1063_v39 = vrot.slane %v2765_v35, %v2523_v10  ;;  %v2785_v3 = vld [vmem:[#allocation7 + $0x1c] sm:$0xf] }
 0x233   :  { %v656_v8 = vsub.f32 %v654_v6, %v655_v7  ;;  %v1014_v50 = vrot.slane %v2785_v3, %v2523_v10  ;;  %v1010_v57 = vrot.slane %v2785_v3, %v2525_v11 }
 0x235   :  { %v658_v12 = vadd.f32 1e-05, %v656_v8  ;;  %v916_v8 = vrot.slane %v2810_v60, %v2523_v10 }
 0x237   :  { %2251 = vrsqrt.f32 %v658_v12 }
 0x238   :  { %v678_v23 = vpop.permute.xlu0 %677 }
 0x244   :  { %v2252_v14 = vpop.eup %2251 }
 0x245   :  { %v660_v15 = vmul.f32 %v2252_v14, %v657_v13 }
 0x247   :  { %667 = vperm.xlu1 %2250, %v660_v15  }
 0x2c2   :  { %v668_v19 = vpop.permute.xlu1 %667 }
 0x2c3   :  { %v670_v20 = vmul.f32 %v668_v19, %v661_v16  ;;  %v671_v21 = vmul.f32 %v668_v19, %v662_v17  ;;  %v672_v22 = vmul.f32 %v668_v19, %v663_v18  ;;  %v673_v32 = vmul.f32 %v668_v19, %v664_v31 }
 0x2c4   :  { %v912_v17 = vrot.slane %v2810_v60, %v2525_v11 }
 0x2c5   :  { %v680_v24 = vadd.f32 %v678_v23, %v670_v20  ;;  %v681_v25 = vadd.f32 %v678_v23, %v671_v21  ;;  %v682_v26 = vadd.f32 %v678_v23, %v672_v22  ;;  %v683_v33 = vadd.f32 %v678_v23, %v673_v32  ;;  %v2832_v23 = vld [vmem:[#allocation7 + $0x8] sm:$0xf] }
 0x2c6   :  { %v807_v32 = vrot.slane %v2832_v23, %v2523_v10 }
 0x2c7   :  { %v2690_v27 = vmax.f32 %v680_v24, 0.0  ;;  %v2692_v0 = vmax.f32 %v681_v25, 0.0  ;;  %v2698_v28 = vmax.f32 %v682_v26, 0.0  ;;  %v2724_v1 = vmax.f32 %v683_v33, 0.0  ;;  %v2834_v24 = vld [vmem:[#allocation7 + $0xc] sm:$0xf] }
 0x2c9   :  { %1044 = vrot.lane.b32.xlu1 %v2692_v0, %s2372_s0  ;;  %1042 = vrot.lane.b32.xlu0 %v2690_v27, %s2372_s0 }
 0x2cd   :  { %1046 = vrot.lane.b32.xlu1 %v2698_v28, %s2372_s0  ;;  %948 = vrot.lane.b32.xlu0 %v2698_v28, %s2374_s26 }
 0x2d1   :  { %946 = vrot.lane.b32.xlu1 %v2692_v0, %s2374_s26  ;;  %997 = vrot.lane.b32.xlu0 %v2698_v28, %s2373_s8 }
 0x2d5   :  { %995 = vrot.lane.b32.xlu1 %v2692_v0, %s2373_s8  ;;  %993 = vrot.lane.b32.xlu0 %v2690_v27, %s2373_s8 }
 0x2d9   :  { %944 = vrot.lane.b32.xlu1 %v2690_v27, %s2374_s26  ;;  %899 = vrot.lane.b32.xlu0 %v2698_v28, %s2375_s27 }
 0x2dd   :  { %897 = vrot.lane.b32.xlu1 %v2692_v0, %s2375_s27  ;;  %786 = vrot.lane.b32.xlu0 %v2690_v27, %s2377_s29 }
 0x2e1   :  { %895 = vrot.lane.b32.xlu1 %v2690_v27, %s2375_s27  ;;  %835 = vrot.lane.b32.xlu0 %v2690_v27, %s2376_s28 }
 0x2e5   :  { %788 = vrot.lane.b32.xlu1 %v2692_v0, %s2377_s29  ;;  %792 = vrot.lane.b32.xlu0 %v2724_v1, %s2377_s29 }
 0x2e9   :  { %837 = vrot.lane.b32.xlu1 %v2692_v0, %s2376_s28  ;;  %689 = vrot.lane.b32.xlu0 %v2690_v27, %s2380_s10 }
 0x2ed   :  { %841 = vrot.lane.b32.xlu1 %v2724_v1, %s2376_s28  ;;  %737 = vrot.lane.b32.xlu0 %v2690_v27, %s2378_s30 }
 0x2f1   :  { %691 = vrot.lane.b32.xlu1 %v2692_v0, %s2380_s10  ;;  %695 = vrot.lane.b32.xlu0 %v2724_v1, %s2380_s10 }
 0x2f5   :  { %739 = vrot.lane.b32.xlu1 %v2692_v0, %s2378_s30  ;;  %1048 = vrot.lane.b32.xlu0 %v2724_v1, %s2372_s0 }
 0x2f9   :  { %743 = vrot.lane.b32.xlu1 %v2724_v1, %s2378_s30  ;;  %999 = vrot.lane.b32.xlu0 %v2724_v1, %s2373_s8 }
 0x2fd   :  { %950 = vrot.lane.b32.xlu1 %v2724_v1, %s2374_s26  ;;  %790 = vrot.lane.b32.xlu0 %v2698_v28, %s2377_s29 }
 0x301   :  { %901 = vrot.lane.b32.xlu1 %v2724_v1, %s2375_s27  ;;  %693 = vrot.lane.b32.xlu0 %v2698_v28, %s2380_s10 }
 0x305   :  { %839 = vrot.lane.b32.xlu1 %v2698_v28, %s2376_s28  ;;  %1112 = vperm.xlu0 %2249, %v1109_v34  }
 0x309   :  { %741 = vrot.lane.b32.xlu1 %v2698_v28, %s2378_s30 }
 0x33b   :  { %v1045_v36 = vpop.permute.xlu1 %1044  ;;  %v2767_v37 = vpop.permute.xlu0 %1042 }
 0x33c   :  { %v1052_v40 = vsel %vm405_vm0, %v2767_v37, %v1045_v36 }
 0x33d   :  { %v1076_v44 = vmul.f32 %v1059_v38, %v1052_v40 }
 0x33f   :  { %v2776_v41 = vpop.permute.xlu1 %1046  ;;  %v2778_v42 = vpop.permute.xlu0 %948 }
 0x340   :  { %v1051_v43 = vsel %vm405_vm0, %v1045_v36, %v2776_v41 }
 0x341   :  { %v1077_v45 = vmul.f32 %v1063_v39, %v1051_v43  ;;  %v803_v39 = vrot.slane %v2832_v23, %v2525_v11  ;;  %v852_v43 = vrot.slane %v2834_v24, %v2525_v11 }
 0x343   :  { %v1084_v47 = vcombine.low %v1076_v44, %v1077_v45  ;;  %v2228_v48 = vcombine.low %v1077_v45, %v1077_v45  ;;  %v947_v2 = vpop.permute.xlu1 %946  ;;  %v2787_v4 = vpop.permute.xlu0 %997 }
 0x344   :  { %v953_v51 = vsel %vm315_vm2, %v947_v2, %v2778_v42 }
 0x345   :  { %2206 = vmatprep.subr.msk.mxu0 %vm630_vm9, %v2228_v48  ;;  %v979_v55 = vmul.f32 %v965_v49, %v953_v51  ;;  %v2865_v51 = vld [vmem:[#allocation7] sm:$0xf] }
 0x346   :  { %2207 = vmatpush1.msk.msra.mxu0 %vm630_vm9, %v1084_v47 }
 0x347   :  { %v996_v52 = vpop.permute.xlu1 %995  ;;  %v2798_v53 = vpop.permute.xlu0 %993 }
 0x348   :  { %v1002_v54 = vsel %vm360_vm1, %v996_v52, %v2787_v4  ;;  %v1003_v59 = vsel %vm360_vm1, %v2798_v53, %v996_v52  ;;  %v2867_v52 = vld [vmem:[#allocation7 + $0x4] sm:$0xf] }
 0x349   :  { %v1028_v56 = vmul.f32 %v1014_v50, %v1002_v54  ;;  %v1027_v6 = vmul.f32 %v1010_v57, %v1003_v59  ;;  %v710_v57 = vrot.slane %v2865_v51, %v2523_v10  ;;  %v1067_v59 = vrot.slane %v2765_v35, %v2543_v29 }
 0x34b   :  { %v2812_v61 = vpop.permute.xlu1 %944  ;;  %v2814_v62 = vpop.permute.xlu0 %899  ;;  %v2225_v63 = vcombine.low %v979_v55, %v1028_v56 }
 0x34c   :  { %v954_v5 = vsel %vm315_vm2, %v2812_v61, %v947_v2 }
 0x34d   :  { %v978_v7 = vmul.f32 %v961_v58, %v954_v5  ;;  %1203 = vmatprep.subr.mxu0 %v2225_v63  ;;  %v758_v58 = vrot.slane %v2867_v52, %v2523_v10  ;;  %v1071_v63 = vrot.slane %v2765_v35, %v2545_v30 }
 0x34f   :  { %v2224_v12 = vcombine.low %v978_v7, %v1027_v6  ;;  %v898_v13 = vpop.permute.xlu1 %897  ;;  %v787_v14 = vpop.permute.xlu0 %786  ;;  %v706_v6 = vrot.slane %v2865_v51, %v2525_v11 }
 0x350   :  { %v904_v15 = vsel %vm270_vm3, %v898_v13, %v2814_v62 }
 0x351   :  { %v930_v16 = vmul.f32 %v916_v8, %v904_v15  ;;  %1204 = vmatpush1.msra.mxu0 %v2224_v12 }
 0x353   :  { %v2826_v18 = vpop.permute.xlu1 %895  ;;  %v836_v19 = vpop.permute.xlu0 %835  ;;  %v2221_v20 = vcombine.low %v2692_v0, %v930_v16  ;;  %v856_v0 = vrot.slane %v2834_v24, %v2523_v10 }
 0x354   :  { %v905_v21 = vsel %vm270_vm3, %v2826_v18, %v898_v13  ;;  %v754_v13 = vrot.slane %v2867_v52, %v2525_v11  ;;  %v1018_v11 = vrot.slane %v2785_v3, %v2543_v29 }
 0x355   :  { %v929_v22 = vmul.f32 %v912_v17, %v905_v21  ;;  %1205 = vmatprep.subr.mxu0 %v2221_v20 }
 0x357   :  { %v2220_v25 = vcombine.low %v2690_v27, %v929_v22  ;;  %v2837_v26 = vpop.permute.xlu1 %788  ;;  %v2839_v31 = vpop.permute.xlu0 %792 }
 0x358   :  { %v796_v33 = vsel %vm175_vm5, %v787_v14, %v2837_v26  ;;  %v797_v44 = vsel %vm175_vm5, %v2839_v31, %v787_v14 }
 0x359   :  { %1206 = vmatpush1.msra.mxu0 %v2220_v25  ;;  %v821_v38 = vmul.f32 %v807_v32, %v796_v33  ;;  %v820_v49 = vmul.f32 %v803_v39, %v797_v44  ;;  %v1022_v32 = vrot.slane %v2785_v3, %v2545_v30  ;;  %v1442_v44 = vld [vmem:[#allocation9 + $0x3c8] sm:$0xff] }
 0x35b   :  { %v2848_v34 = vpop.permute.xlu1 %837  ;;  %v690_v36 = vpop.permute.xlu0 %689 }
 0x35c   :  { %v845_v27 = vsel %vm220_vm4, %v836_v19, %v2848_v34 }
 0x35d   :  { %v870_v40 = vmul.f32 %v856_v0, %v845_v27  ;;  %v969_v0 = vrot.slane %v2783_v46, %v2543_v29  ;;  %v973_v27 = vrot.slane %v2783_v46, %v2545_v30 }
 0x35f   :  { %v2860_v45 = vpop.permute.xlu1 %841  ;;  %v738_v47 = vpop.permute.xlu0 %737  ;;  %v2217_v48 = vcombine.low %v821_v38, %v870_v40 }
 0x360   :  { %v846_v2 = vsel %vm220_vm4, %v2860_v45, %v836_v19 }
 0x361   :  { %v869_v50 = vmul.f32 %v852_v43, %v846_v2  ;;  %1207 = vmatprep.subr.mxu0 %v2217_v48  ;;  %v2926_v43 = vld [vmem:[%s3938_s5] sm:$0xf]  ;;  %v924_v48 = vrot.slane %v2810_v60, %v2545_v30  ;;  %v1441_v2 = vld [vmem:[#allocation9 + $0x3c0] sm:$0xff]  ;;  %s2382_s5 = smov [#allocation10]  }
 0x362   :  { %s2191_s18 = sshll.u32 %s2382_s5, 4  ;;  %s2192_s18 = int_to_ptr.vmem [resolvable:$true] %s2191_s18 }
 0x363   :  { %v2216_v54 = vcombine.low %v820_v49, %v869_v50  ;;  %v2869_v55 = vpop.permute.xlu1 %691  ;;  %v2871_v56 = vpop.permute.xlu0 %695  ;;  %s2340_s19 = scalar_lea.vmem %s2192_s18, 1024  ;;  %p2345_p2 = scmp.lt.s32.totalorder %s2192_s18, %s2192_s18 }
 0x364   :  { %v699_v5 = vsel %vm87_vm7, %v690_v36, %v2869_v55  ;;  %v700_v19 = vsel %vm87_vm7, %v2871_v56, %v690_v36  ;;  %p2341_p1 = scmp.ne.s32.totalorder %s2192_s18, %s2340_s19  ;;  %p2346_p3 = scmp.lt.s32.totalorder %s2340_s19, %s2340_s19 }
 0x365   :  { %1208 = vmatpush1.msra.mxu0 %v2216_v54  ;;  %v724_v14 = vmul.f32 %v710_v57, %v699_v5  ;;  %v723_v33 = vmul.f32 %v706_v6, %v700_v19  ;;  %v1433_v5 = vld [vmem:[#allocation9 + $0x380] sm:$0xff] }
 0x366   :  { %p2347_p4 = por %p2346_p3, %p2345_p2 }
 0x367   :  { %v2886_v7 = vpop.permute.xlu1 %739  ;;  %v1049_v8 = vpop.permute.xlu0 %1048 }
 0x368   :  { %v747_v10 = vsel %vm130_vm6, %v738_v47, %v2886_v7  ;;  %v1050_v12 = vsel %vm405_vm0, %v2776_v41, %v1049_v8  ;;  %v1053_v35 = vsel %vm405_vm0, %v1049_v8, %v2767_v37  ;;  %p2348_p5 = pnand %p2347_p4, %p2341_p1 }
 0x369   :  { %v772_v15 = vmul.f32 %v758_v58, %v747_v10  ;;  %v1078_v16 = vmul.f32 %v1067_v59, %v1050_v12  ;;  %v1079_v17 = vmul.f32 %v1071_v63, %v1053_v35  ;;  %v1434_v58 = vld [vmem:[#allocation9 + $0x388] sm:$0xff]  ;;  %v815_v59 = vrot.slane %v2832_v23, %v2545_v30 }
 0x36a   :  { %v860_v10 = vrot.slane %v2834_v24, %v2543_v29  ;;  %v864_v12 = vrot.slane %v2834_v24, %v2545_v30  ;;  %v718_v24 = vrot.slane %v2865_v51, %v2545_v30 }
 0x36b   :  { %v1085_v20 = vcombine.low %v1078_v16, %v1079_v17  ;;  %v2229_v21 = vcombine.low %v1079_v17, %v1079_v17  ;;  %v2902_v22 = vpop.permute.xlu1 %743  ;;  %v1000_v41 = vpop.permute.xlu0 %999  ;;  %v2213_v25 = vcombine.low %v724_v14, %v772_v15  ;;  %v714_v15 = vrot.slane %v2865_v51, %v2543_v29  ;;  %v1418_v17 = vld [vmem:[#allocation9 + $0x308] sm:$0xff] }
 0x36c   :  { %v748_v37 = vsel %vm130_vm6, %v2902_v22, %v738_v47  ;;  %v1001_v38 = vsel %vm360_vm1, %v2787_v4, %v1000_v41  ;;  %v1004_v39 = vsel %vm360_vm1, %v1000_v41, %v2798_v53  ;;  %v920_v47 = vrot.slane %v2810_v60, %v2543_v29  ;;  %v1417_v41 = vld [vmem:[#allocation9 + $0x300] sm:$0xff] }
 0x36d   :  { %v771_v36 = vmul.f32 %v754_v13, %v748_v37  ;;  %1209 = vmatprep.subr.mxu0 %v2213_v25  ;;  %2209 = vmatprep.subr.msk.mxu1 %vm630_vm9, %v2229_v21  ;;  %v1029_v49 = vmul.f32 %v1018_v11, %v1001_v38  ;;  %v1030_v50 = vmul.f32 %v1022_v32, %v1004_v39  ;;  %v1394_v39 = vld [vmem:[#allocation9 + $0x248] sm:$0xff] }
 0x36e   :  { %2210 = vmatpush1.msk.msra.mxu1 %vm630_vm9, %v1085_v20  ;;  %v766_v21 = vrot.slane %v2867_v52, %v2545_v30 }
 0x36f   :  { %v2212_v3 = vcombine.low %v723_v33, %v771_v36  ;;  %v951_v40 = vpop.permute.xlu1 %950  ;;  %v791_v53 = vpop.permute.xlu0 %790  ;;  %v1401_v36 = vld [vmem:[#allocation9 + $0x280] sm:$0xff] }
 0x370   :  { %v952_v46 = vsel %vm315_vm2, %v2778_v42, %v951_v40  ;;  %v955_v4 = vsel %vm315_vm2, %v951_v40, %v2812_v61  ;;  %v811_v61 = vrot.slane %v2832_v23, %v2543_v29  ;;  %v1426_v23 = vld [vmem:[#allocation9 + $0x348] sm:$0xff]  ;;  %v794_v35 = vsel %vm175_vm5, %v791_v53, %v2839_v31 }
 0x371   :  { %v980_v54 = vmul.f32 %v969_v0, %v952_v46  ;;  %v981_v57 = vmul.f32 %v973_v27, %v955_v4  ;;  %1210 = vmatpush1.msra.mxu0 %v2212_v3  ;;  %v823_v37 = vmul.f32 %v815_v59, %v794_v35  ;;  %v1386_v46 = vld [vmem:[#allocation9 + $0x208] sm:$0xff]  ;;  %v3009_v59 = vld [vmem:[#allocation9 + $0x310] sm:$0xff] }
 0x372   :  { %2208 = vmatmul.mubr.msk.f32.vlgmr.msra.gmra.mxu0 %vm1167_vm10, %v2926_v43  ;;  %1577 = vmatprep.subr.mxu0 %v1442_v44  ;;  %v1393_v44 = vld [vmem:[#allocation9 + $0x240] sm:$0xff]  ;;  %v1338_v35 = vld [vmem:[#allocation9 + $0x88] sm:$0xff] }
 0x373   :  { %v2226_v42 = vcombine.low %v980_v54, %v1029_v49  ;;  %v902_v63 = vpop.permute.xlu1 %901  ;;  %v2227_v60 = vcombine.low %v981_v57, %v1030_v50  ;;  %1578 = vmatpush1.msra.mxu0 %v1441_v2  ;;  %v694_v16 = vpop.permute.xlu0 %693  ;;  %v1377_v2 = vld [vmem:[#allocation9 + $0x1c0] sm:$0xff]  ;;  %v2997_v49 = vld [vmem:[#allocation9 + $0x390] sm:$0xff]  ;;  %v1370_v50 = vld [vmem:[#allocation9 + $0x188] sm:$0xff] }
 0x374   :  { %v903_v6 = vsel %vm270_vm3, %v2814_v62, %v902_v63  ;;  %v906_v8 = vsel %vm270_vm3, %v902_v63, %v2826_v18  ;;  %1579 = vmatprep.subr.mxu0 %v1434_v58  ;;  %v795_v62 = vsel %vm175_vm5, %v2837_v26, %v791_v53  ;;  %v1425_v18 = vld [vmem:[#allocation9 + $0x340] sm:$0xff]  ;;  %v762_v26 = vrot.slane %v2867_v52, %v2543_v29  ;;  %v3000_v54 = vld [vmem:[#allocation9 + $0x358] sm:$0xff]  ;;  %v3003_v58 = vld [vmem:[#allocation9 + $0x350] sm:$0xff] }
 0x375   :  { %v931_v13 = vmul.f32 %v920_v47, %v903_v6  ;;  %v932_v14 = vmul.f32 %v924_v48, %v906_v8  ;;  %1274 = vmatprep.subr.mxu1 %v2227_v60  ;;  %1580 = vmatpush1.msra.mxu0 %v1433_v5  ;;  %v822_v25 = vmul.f32 %v811_v61, %v795_v62  ;;  %v1409_v52 = vld [vmem:[#allocation9 + $0x2c0] sm:$0xff]  ;;  %v2992_v48 = vld [vmem:[#allocation9 + $0x398] sm:$0xff]  ;;  %v1354_v63 = vld [vmem:[#allocation9 + $0x108] sm:$0xff] }
 0x376   :  { %1275 = vmatpush1.msra.mxu1 %v2226_v42  ;;  %1581 = vmatprep.subr.mxu0 %v1426_v23  ;;  %v698_v29 = vsel %vm87_vm7, %v2869_v55, %v694_v16  ;;  %v697_v32 = vsel %vm87_vm7, %v694_v16, %v2871_v56  ;;  %v1385_v47 = vld [vmem:[#allocation9 + $0x200] sm:$0xff]  ;;  %v1362_v42 = vld [vmem:[#allocation9 + $0x148] sm:$0xff]  ;;  %v3012_v60 = vld [vmem:[#allocation9 + $0x2d8] sm:$0xff] }
 0x377   :  { %v2222_v31 = vcombine.low %v2698_v28, %v931_v13  ;;  %v840_v19 = vpop.permute.xlu1 %839  ;;  %v2223_v20 = vcombine.low %v2724_v1, %v932_v14  ;;  %1582 = vmatpush1.msra.mxu0 %v1425_v18  ;;  %v1410_v1 = vld [vmem:[#allocation9 + $0x2c8] sm:$0xff]  ;;  %v725_v27 = vmul.f32 %v714_v15, %v698_v29  ;;  %v726_v56 = vmul.f32 %v718_v24, %v697_v32  ;;  %v1369_v57 = vld [vmem:[#allocation9 + $0x180] sm:$0xff]  ;;  %v3015_v6 = vld [vmem:[#allocation9 + $0x2d0] sm:$0xff] }
 0x378   :  { %v843_v51 = vsel %vm220_vm4, %v840_v19, %v2860_v45  ;;  %v844_v28 = vsel %vm220_vm4, %v2848_v34, %v840_v19  ;;  %1583 = vmatprep.subr.mxu0 %v1418_v17  ;;  %v1402_v45 = vld [vmem:[#allocation9 + $0x288] sm:$0xff]  ;;  %v1361_v61 = vld [vmem:[#allocation9 + $0x140] sm:$0xff]  ;;  %v3021_v23 = vld [vmem:[#allocation9 + $0x290] sm:$0xff] }
 0x379   :  { %v871_v11 = vmul.f32 %v860_v10, %v844_v28  ;;  %v872_v30 = vmul.f32 %v864_v12, %v843_v51  ;;  %1276 = vmatprep.subr.mxu1 %v2223_v20  ;;  %1584 = vmatpush1.msra.mxu0 %v1417_v41  ;;  %v1353_v5 = vld [vmem:[#allocation9 + $0x100] sm:$0xff]  ;;  %v1346_v8 = vld [vmem:[#allocation9 + $0xc8] sm:$0xff]  ;;  %v3018_v10 = vld [vmem:[#allocation9 + $0x298] sm:$0xff] }
 0x37a   :  { %1277 = vmatpush1.msra.mxu1 %v2222_v31  ;;  %1585 = vmatprep.subr.mxu0 %v1410_v1  ;;  %v1345_v12 = vld [vmem:[#allocation9 + $0xc0] sm:$0xff]  ;;  %v3024_v62 = vld [vmem:[#allocation9 + $0x258] sm:$0xff]  ;;  %v3029_v14 = vld [vmem:[#allocation9 + $0x250] sm:$0xff] }
 0x37b   :  { %v2218_v0 = vcombine.low %v822_v25, %v871_v11  ;;  %v742_v34 = vpop.permute.xlu1 %741  ;;  %v2219_v33 = vcombine.low %v823_v37, %v872_v30  ;;  %1586 = vmatpush1.msra.mxu0 %v1409_v52  ;;  %v3026_v13 = vld [vmem:[#allocation9 + $0x80] sm:$0xff]  ;;  %v3031_v18 = vld [vmem:[#allocation9 + $0x48] sm:$0xff]  ;;  %v3034_v15 = vld [vmem:[#allocation9 + $0x218] sm:$0xff] }
 0x37c   :  { %v745_v55 = vsel %vm130_vm6, %v742_v34, %v2902_v22  ;;  %v746_v38 = vsel %vm130_vm6, %v2886_v7, %v742_v34  ;;  %1587 = vmatprep.subr.mxu0 %v1402_v45  ;;  %v2988_v22 = vld [vmem:[#allocation9 + $0x3d8] sm:$0xff]  ;;  %v1378_v7 = vld [vmem:[#allocation9 + $0x1c8] sm:$0xff]  ;;  %v3036_v24 = vld [vmem:[#allocation9 + $0x40] sm:$0xff] }
 0x37d   :  { %v773_v3 = vmul.f32 %v762_v26, %v746_v38  ;;  %v774_v40 = vmul.f32 %v766_v21, %v745_v55  ;;  %1278 = vmatprep.subr.mxu1 %v2219_v33  ;;  %1588 = vmatpush1.msra.mxu0 %v1401_v36  ;;  %v3039_v16 = vld [vmem:[#allocation9 + $0x210] sm:$0xff]  ;;  %v3042_v17 = vld [vmem:[#allocation9 + $0x8] sm:$0xff]  ;;  %v3045_v31 = vld [vmem:[#allocation9 + $0x1d8] sm:$0xff] }
 0x37e   :  { %1279 = vmatpush1.msra.mxu1 %v2218_v0  ;;  %1589 = vmatprep.subr.mxu0 %v1394_v39  ;;  %v3048_v19 = vld [vmem:[#allocation9] sm:$0xff]  ;;  %v3051_v20 = vld [vmem:[#allocation9 + $0x1d0] sm:$0xff]  ;;  %v3054_v26 = vld [vmem:[#allocation9 + $0x7c8] sm:$0xff] }
 0x37f   :  { %v2214_v4 = vcombine.low %v725_v27, %v773_v3  ;;  %v2215_v53 = vcombine.low %v726_v56, %v774_v40  ;;  %1590 = vmatpush1.msra.mxu0 %v1393_v44  ;;  %v3057_v21 = vld [vmem:[#allocation9 + $0x198] sm:$0xff]  ;;  %v3060_v41 = vld [vmem:[#allocation9 + $0x7c0] sm:$0xff]  ;;  %v3063_v25 = vld [vmem:[#allocation9 + $0x190] sm:$0xff] }
 0x380   :  { %1591 = vmatprep.subr.mxu0 %v1386_v46  ;;  %v3066_v37 = vld [vmem:[#allocation9 + $0x788] sm:$0xff]  ;;  %v3069_v51 = vld [vmem:[#allocation9 + $0x158] sm:$0xff]  ;;  %v3072_v28 = vld [vmem:[#allocation9 + $0x780] sm:$0xff] }
 0x381   :  { %1280 = vmatprep.subr.mxu1 %v2215_v53  ;;  %1592 = vmatpush1.msra.mxu0 %v1385_v47  ;;  %v3075_v1 = vld [vmem:[#allocation9 + $0x150] sm:$0xff]  ;;  %v3078_v29 = vld [vmem:[#allocation9 + $0x748] sm:$0xff]  ;;  %v3081_v11 = vld [vmem:[#allocation9 + $0x118] sm:$0xff] }
 0x382   :  { %1281 = vmatpush1.msra.mxu1 %v2214_v4  ;;  %1593 = vmatprep.subr.mxu0 %v1378_v7  ;;  %v3084_v30 = vld [vmem:[#allocation9 + $0x740] sm:$0xff]  ;;  %v3087_v52 = vld [vmem:[#allocation9 + $0x110] sm:$0xff]  ;;  %v3090_v32 = vld [vmem:[#allocation9 + $0x708] sm:$0xff] }
 0x383   :  { %2211 = vmatmul.mubr.msk.f32.vlgmr.msra.gmra.mxu1 %vm1167_vm10, %v2926_v43  ;;  %1648 = vmatprep.subr.mxu1 %v2988_v22  ;;  %v3006_v43 = vld [vmem:[#allocation9 + $0x318] sm:$0xff]  ;;  %v3096_v0 = vld [vmem:[#allocation9 + $0x700] sm:$0xff]  ;;  %v3099_v34 = vld [vmem:[#allocation9 + $0xd0] sm:$0xff] }
 0x384   :  { %1649 = vmatpush1.msra.mxu1 %v2990_v9  ;;  %1594 = vmatpush1.msra.mxu0 %v1377_v2  ;;  %v3093_v45 = vld [vmem:[#allocation9 + $0xd8] sm:$0xff]  ;;  %4116 = vst [vmem:[#allocation14_spill] sm:$0xff] %v3096_v0  ;;  %v3102_v33 = vld [vmem:[#allocation9 + $0x6c8] sm:$0xff]  ;;  %v3108_v27 = vld [vmem:[#allocation9 + $0x6c0] sm:$0xff] }
 0x385   :  { %1650 = vmatprep.subr.mxu1 %v2992_v48  ;;  %1595 = vmatprep.subr.mxu0 %v1370_v50  ;;  %4117 = vst [vmem:[#allocation15_spill] sm:$0xff] %v3102_v33  ;;  %v3105_v36 = vld [vmem:[#allocation9 + $0x98] sm:$0xff]  ;;  %4118 = vst [vmem:[#allocation16_spill] sm:$0xff] %v3108_v27  ;;  %v3111_v55 = vld [vmem:[#allocation9 + $0x90] sm:$0xff] }
 0x386   :  { %1651 = vmatpush1.msra.mxu1 %v2997_v49  ;;  %1596 = vmatpush1.msra.mxu0 %v1369_v57  ;;  %v3114_v38 = vld [vmem:[#allocation9 + $0x688] sm:$0xff]  ;;  %v3117_v39 = vld [vmem:[#allocation9 + $0x58] sm:$0xff]  ;;  %v3120_v56 = vld [vmem:[#allocation9 + $0x680] sm:$0xff] }
 0x387   :  { %1652 = vmatprep.subr.mxu1 %v3000_v54  ;;  %1597 = vmatprep.subr.mxu0 %v1362_v42  ;;  %4119 = vst [vmem:[#allocation17_spill] sm:$0xff] %v3114_v38  ;;  %4120 = vst [vmem:[#allocation18_spill] sm:$0xff] %v3120_v56  ;;  %v3123_v3 = vld [vmem:[#allocation9 + $0x50] sm:$0xff]  ;;  %v3126_v40 = vld [vmem:[#allocation9 + $0x648] sm:$0xff] }
 0x388   :  { %1653 = vmatpush1.msra.mxu1 %v3003_v58  ;;  %1598 = vmatpush1.msra.mxu0 %v1361_v61  ;;  %4121 = vst [vmem:[#allocation19_spill] sm:$0xff] %v3126_v40  ;;  %v3129_v44 = vld [vmem:[#allocation9 + $0x18] sm:$0xff]  ;;  %v3132_v46 = vld [vmem:[#allocation9 + $0x640] sm:$0xff]  ;;  %v3135_v4 = vld [vmem:[#allocation9 + $0x10] sm:$0xff] }
 0x389   :  { %1654 = vmatprep.subr.mxu1 %v3006_v43  ;;  %1599 = vmatprep.subr.mxu0 %v1354_v63  ;;  %4122 = vst [vmem:[#allocation20_spill] sm:$0xff] %v3132_v46  ;;  %v3138_v53 = vld [vmem:[#allocation9 + $0x608] sm:$0xff]  ;;  %v3141_v47 = vld [vmem:[#allocation9 + $0x7d8] sm:$0xff]  ;;  %v3144_v7 = vld [vmem:[#allocation9 + $0x600] sm:$0xff] }
 0x38a   :  { %1655 = vmatpush1.msra.mxu1 %v3009_v59  ;;  %1600 = vmatpush1.msra.mxu0 %v1353_v5  ;;  %4123 = vst [vmem:[#allocation21_spill] sm:$0xff] %v3138_v53  ;;  %4124 = vst [vmem:[#allocation22_spill] sm:$0xff] %v3144_v7  ;;  %v3147_v2 = vld [vmem:[#allocation9 + $0x7d0] sm:$0xff]  ;;  %v3150_v50 = vld [vmem:[#allocation9 + $0x5c8] sm:$0xff] }
 0x38b   :  { %1656 = vmatprep.subr.mxu1 %v3012_v60  ;;  %1601 = vmatprep.subr.mxu0 %v1346_v8  ;;  %4125 = vst [vmem:[#allocation23_spill] sm:$0xff] %v3150_v50  ;;  %v3153_v57 = vld [vmem:[#allocation9 + $0x798] sm:$0xff]  ;;  %v3156_v42 = vld [vmem:[#allocation9 + $0x5c0] sm:$0xff]  ;;  %v3159_v61 = vld [vmem:[#allocation9 + $0x790] sm:$0xff] }
 0x38c   :  { %1657 = vmatpush1.msra.mxu1 %v3015_v6  ;;  %1602 = vmatpush1.msra.mxu0 %v1345_v12  ;;  %4126 = vst [vmem:[#allocation24_spill] sm:$0xff] %v3156_v42  ;;  %v3162_v63 = vld [vmem:[#allocation9 + $0x588] sm:$0xff]  ;;  %v3165_v5 = vld [vmem:[#allocation9 + $0x758] sm:$0xff]  ;;  %v3168_v8 = vld [vmem:[#allocation9 + $0x580] sm:$0xff] }
 0x38d   :  { %1658 = vmatprep.subr.mxu1 %v3018_v10  ;;  %1603 = vmatprep.subr.mxu0 %v1338_v35  ;;  %4127 = vst [vmem:[#allocation25_spill] sm:$0xff] %v3162_v63  ;;  %4128 = vst [vmem:[#allocation26_spill] sm:$0xff] %v3168_v8  ;;  %v3171_v12 = vld [vmem:[#allocation9 + $0x750] sm:$0xff]  ;;  %v3174_v35 = vld [vmem:[#allocation9 + $0x548] sm:$0xff] }
 0x38e   :  { %1659 = vmatpush1.msra.mxu1 %v3021_v23  ;;  %1604 = vmatpush1.msra.mxu0 %v3026_v13  ;;  %4129 = vst [vmem:[#allocation27_spill] sm:$0xff] %v3174_v35 }
 0x38f   :  { %1660 = vmatprep.subr.mxu1 %v3024_v62  ;;  %1605 = vmatprep.subr.mxu0 %v3031_v18 }
 0x390   :  { %1661 = vmatpush1.msra.mxu1 %v3029_v14  ;;  %1606 = vmatpush1.msra.mxu0 %v3036_v24 }
 0x391   :  { %1662 = vmatprep.subr.mxu1 %v3034_v15  ;;  %1607 = vmatprep.subr.mxu0 %v3042_v17 }
 0x392   :  { %1663 = vmatpush1.msra.mxu1 %v3039_v16  ;;  %1608 = vmatpush1.msra.mxu0 %v3048_v19 }
 0x393   :  { %1664 = vmatprep.subr.mxu1 %v3045_v31  ;;  %1609 = vmatprep.subr.mxu0 %v3054_v26 }
 0x394   :  { %1665 = vmatpush1.msra.mxu1 %v3051_v20  ;;  %1610 = vmatpush2.msra.mxu0 %v3060_v41 }
 0x395   :  { %1666 = vmatprep.subr.mxu1 %v3057_v21  ;;  %1611 = vmatprep.subr.mxu0 %v3066_v37 }
 0x396   :  { %1667 = vmatpush1.msra.mxu1 %v3063_v25  ;;  %1612 = vmatpush2.msra.mxu0 %v3072_v28 }
 0x397   :  { %1668 = vmatprep.subr.mxu1 %v3069_v51  ;;  %1613 = vmatprep.subr.mxu0 %v3078_v29 }
 0x398   :  { %1669 = vmatpush1.msra.mxu1 %v3075_v1  ;;  %1614 = vmatpush2.msra.mxu0 %v3084_v30 }
 0x399   :  { %1670 = vmatprep.subr.mxu1 %v3081_v11  ;;  %1615 = vmatprep.subr.mxu0 %v3090_v32 }
 0x39a   :  { %1671 = vmatpush1.msra.mxu1 %v3087_v52  ;;  %1616 = vmatpush2.msra.mxu0 %v3096_v0  ;;  %v3329_v0 = vld [vmem:[#allocation9 + $0x370] sm:$0xff] }
 0x39b   :  { %1672 = vmatprep.subr.mxu1 %v3093_v45  ;;  %1617 = vmatprep.subr.mxu0 %v3102_v33  ;;  %v3217_v33 = vld [vmem:[#allocation9 + $0x650] sm:$0xff]  ;;  %4178 = vst [vmem:[#allocation76_spill] sm:$0xff] %v3329_v0 }
 0x39c   :  { %1673 = vmatpush1.msra.mxu1 %v3099_v34  ;;  %1618 = vmatpush2.msra.mxu0 %v3108_v27  ;;  %v3210_v27 = vld [vmem:[#allocation9 + $0x488] sm:$0xff]  ;;  %4143 = vst [vmem:[#allocation41_spill] sm:$0xff] %v3217_v33 }
 0x39d   :  { %1674 = vmatprep.subr.mxu1 %v3105_v36  ;;  %1619 = vmatprep.subr.mxu0 %v3114_v38  ;;  %v3204_v38 = vld [vmem:[#allocation9 + $0x4c0] sm:$0xff]  ;;  %4141 = vst [vmem:[#allocation39_spill] sm:$0xff] %v3210_v27 }
 0x39e   :  { %1675 = vmatpush1.msra.mxu1 %v3111_v55  ;;  %1620 = vmatpush2.msra.mxu0 %v3120_v56  ;;  %v3198_v56 = vld [vmem:[#allocation9 + $0x4c8] sm:$0xff]  ;;  %4139 = vst [vmem:[#allocation37_spill] sm:$0xff] %v3204_v38 }
 0x39f   :  { %1676 = vmatprep.subr.mxu1 %v3117_v39  ;;  %1621 = vmatprep.subr.mxu0 %v3126_v40  ;;  %v3192_v40 = vld [vmem:[#allocation9 + $0x500] sm:$0xff]  ;;  %4137 = vst [vmem:[#allocation35_spill] sm:$0xff] %v3198_v56 }
 0x3a0   :  { %1677 = vmatpush1.msra.mxu1 %v3123_v3  ;;  %1622 = vmatpush2.msra.mxu0 %v3132_v46  ;;  %v3186_v46 = vld [vmem:[#allocation9 + $0x508] sm:$0xff]  ;;  %4135 = vst [vmem:[#allocation33_spill] sm:$0xff] %v3192_v40 }
 0x3a1   :  { %1678 = vmatprep.subr.mxu1 %v3129_v44  ;;  %1623 = vmatprep.subr.mxu0 %v3138_v53  ;;  %v3180_v53 = vld [vmem:[#allocation9 + $0x540] sm:$0xff]  ;;  %4133 = vst [vmem:[#allocation31_spill] sm:$0xff] %v3186_v46 }
 0x3a2   :  { %1679 = vmatpush1.msra.mxu1 %v3135_v4  ;;  %1624 = vmatpush2.msra.mxu0 %v3144_v7  ;;  %v3177_v7 = vld [vmem:[#allocation9 + $0x718] sm:$0xff]  ;;  %4131 = vst [vmem:[#allocation29_spill] sm:$0xff] %v3180_v53 }
 0x3a3   :  { %1680 = vmatprep.subr.mxu1 %v3141_v47  ;;  %1625 = vmatprep.subr.mxu0 %v3150_v50  ;;  %4130 = vst [vmem:[#allocation28_spill] sm:$0xff] %v3177_v7  ;;  %v3183_v50 = vld [vmem:[#allocation9 + $0x710] sm:$0xff] }
 0x3a4   :  { %1681 = vmatpush2.msra.mxu1 %v3147_v2  ;;  %1626 = vmatpush2.msra.mxu0 %v3156_v42  ;;  %4132 = vst [vmem:[#allocation30_spill] sm:$0xff] %v3183_v50  ;;  %v3189_v42 = vld [vmem:[#allocation9 + $0x6d8] sm:$0xff] }
 0x3a5   :  { %1682 = vmatprep.subr.mxu1 %v3153_v57  ;;  %1627 = vmatprep.subr.mxu0 %v3162_v63  ;;  %4134 = vst [vmem:[#allocation32_spill] sm:$0xff] %v3189_v42  ;;  %v3195_v63 = vld [vmem:[#allocation9 + $0x6d0] sm:$0xff] }
 0x3a6   :  { %1683 = vmatpush2.msra.mxu1 %v3159_v61  ;;  %1628 = vmatpush2.msra.mxu0 %v3168_v8  ;;  %4136 = vst [vmem:[#allocation34_spill] sm:$0xff] %v3195_v63  ;;  %v3201_v8 = vld [vmem:[#allocation9 + $0x698] sm:$0xff] }
 0x3a7   :  { %1684 = vmatprep.subr.mxu1 %v3165_v5  ;;  %1629 = vmatprep.subr.mxu0 %v3174_v35  ;;  %4138 = vst [vmem:[#allocation36_spill] sm:$0xff] %v3201_v8  ;;  %v3207_v35 = vld [vmem:[#allocation9 + $0x690] sm:$0xff] }
 0x3a8   :  { %1685 = vmatpush2.msra.mxu1 %v3171_v12  ;;  %1630 = vmatpush2.msra.mxu0 %v3180_v53  ;;  %4140 = vst [vmem:[#allocation38_spill] sm:$0xff] %v3207_v35  ;;  %v3213_v53 = vld [vmem:[#allocation9 + $0x658] sm:$0xff] }
 0x3a9   :  { %1686 = vmatprep.subr.mxu1 %v3177_v7  ;;  %1631 = vmatprep.subr.mxu0 %v3186_v46  ;;  %4142 = vst [vmem:[#allocation40_spill] sm:$0xff] %v3213_v53  ;;  %v3221_v46 = vld [vmem:[#allocation9 + $0x618] sm:$0xff] }
 0x3aa   :  { %1687 = vmatpush2.msra.mxu1 %v3183_v50  ;;  %1632 = vmatpush2.msra.mxu0 %v3192_v40  ;;  %4144 = vst [vmem:[#allocation42_spill] sm:$0xff] %v3221_v46  ;;  %v3225_v40 = vld [vmem:[#allocation9 + $0x610] sm:$0xff]  ;;  %v3327_v50 = vld [vmem:[#allocation9 + $0x360] sm:$0xff]  ;;  %v3386_v7 = vld [vmem:[#allocation9 + $0x238] sm:$0xff] }
 0x3ab   :  { %1688 = vmatprep.subr.mxu1 %v3189_v42  ;;  %1633 = vmatprep.subr.mxu0 %v3198_v56  ;;  %4145 = vst [vmem:[#allocation43_spill] sm:$0xff] %v3225_v40  ;;  %v3231_v56 = vld [vmem:[#allocation9 + $0x5d0] sm:$0xff]  ;;  %v3324_v42 = vld [vmem:[#allocation9 + $0x378] sm:$0xff]  ;;  %4177 = vst [vmem:[#allocation75_spill] sm:$0xff] %v3327_v50 }
 0x3ac   :  { %1689 = vmatpush2.msra.mxu1 %v3195_v63  ;;  %1634 = vmatpush2.msra.mxu0 %v3204_v38  ;;  %v3228_v63 = vld [vmem:[#allocation9 + $0x5d8] sm:$0xff]  ;;  %4147 = vst [vmem:[#allocation45_spill] sm:$0xff] %v3231_v56  ;;  %4176 = vst [vmem:[#allocation74_spill] sm:$0xff] %v3324_v42 }
 0x3ad   :  { %1690 = vmatprep.subr.mxu1 %v3201_v8  ;;  %1635 = vmatprep.subr.mxu0 %v3210_v27  ;;  %4146 = vst [vmem:[#allocation44_spill] sm:$0xff] %v3228_v63  ;;  %v3234_v38 = vld [vmem:[#allocation9 + $0x598] sm:$0xff]  ;;  %v3239_v27 = vld [vmem:[#allocation9 + $0x590] sm:$0xff]  ;;  %v3256_v8 = vld [vmem:[#allocation9 + $0x400] sm:$0xff] }
 0x3ae   :  { %1691 = vmatpush2.msra.mxu1 %v3207_v35  ;;  %4148 = vst [vmem:[#allocation46_spill] sm:$0xff] %v3234_v38  ;;  %v3236_v35 = vld [vmem:[#allocation9 + $0x480] sm:$0xff]  ;;  %4150 = vst [vmem:[#allocation48_spill] sm:$0xff] %v3239_v27 }
 0x3af   :  { %1692 = vmatprep.subr.mxu1 %v3213_v53  ;;  %4149 = vst [vmem:[#allocation47_spill] sm:$0xff] %v3236_v35  ;;  %1636 = vmatpush2.msra.mxu0 %v3236_v35  ;;  %v3242_v53 = vld [vmem:[#allocation9 + $0x448] sm:$0xff]  ;;  %4156 = vst [vmem:[#allocation54_spill] sm:$0xff] %v3256_v8  ;;  %v3259_v35 = vld [vmem:[#allocation9 + $0x518] sm:$0xff] }
 0x3b0   :  { %1693 = vmatpush2.msra.mxu1 %v3217_v33  ;;  %4151 = vst [vmem:[#allocation49_spill] sm:$0xff] %v3242_v53  ;;  %v3245_v33 = vld [vmem:[#allocation9 + $0x558] sm:$0xff]  ;;  %1637 = vmatprep.subr.mxu0 %v3242_v53  ;;  %4157 = vst [vmem:[#allocation55_spill] sm:$0xff] %v3259_v35  ;;  %v3263_v53 = vld [vmem:[#allocation9 + $0x510] sm:$0xff] }
 0x3b1   :  { %1694 = vmatprep.subr.mxu1 %v3221_v46  ;;  %4152 = vst [vmem:[#allocation50_spill] sm:$0xff] %v3245_v33  ;;  %v3248_v46 = vld [vmem:[#allocation9 + $0x440] sm:$0xff]  ;;  %4158 = vst [vmem:[#allocation56_spill] sm:$0xff] %v3263_v53 }
 0x3b2   :  { %1695 = vmatpush2.msra.mxu1 %v3225_v40  ;;  %4153 = vst [vmem:[#allocation51_spill] sm:$0xff] %v3248_v46  ;;  %v3251_v40 = vld [vmem:[#allocation9 + $0x550] sm:$0xff]  ;;  %1638 = vmatpush2.msra.mxu0 %v3248_v46  ;;  %v3269_v46 = vld [vmem:[#allocation9 + $0x4d8] sm:$0xff]  ;;  %4196 = vst [vmem:[#allocation94_spill] sm:$0xff] %v3386_v7 }
 0x3b3   :  { %1696 = vmatprep.subr.mxu1 %v3228_v63  ;;  %4154 = vst [vmem:[#allocation52_spill] sm:$0xff] %v3251_v40  ;;  %v3254_v63 = vld [vmem:[#allocation9 + $0x408] sm:$0xff]  ;;  %4160 = vst [vmem:[#allocation58_spill] sm:$0xff] %v3269_v46 }
 0x3b4   :  { %1697 = vmatpush2.msra.mxu1 %v3231_v56  ;;  %4155 = vst [vmem:[#allocation53_spill] sm:$0xff] %v3254_v63  ;;  %1639 = vmatprep.subr.mxu0 %v3254_v63  ;;  %v3276_v63 = vld [vmem:[#allocation9 + $0x498] sm:$0xff]  ;;  %v3305_v56 = vld [vmem:[#allocation9 + $0x3e0] sm:$0xff] }
 0x3b5   :  { %1698 = vmatprep.subr.mxu1 %v3234_v38  ;;  %1640 = vmatpush2.msra.mxu0 %v3256_v8  ;;  %v3266_v38 = vld [vmem:[#allocation9 + $0x3e8] sm:$0xff]  ;;  %4162 = vst [vmem:[#allocation60_spill] sm:$0xff] %v3276_v63  ;;  %v3282_v8 = vld [vmem:[#allocation9 + $0x458] sm:$0xff]  ;;  %4169 = vst [vmem:[#allocation67_spill] sm:$0xff] %v3305_v56 }
 0x3b6   :  { %1699 = vmatpush2.msra.mxu1 %v3239_v27  ;;  %4159 = vst [vmem:[#allocation57_spill] sm:$0xff] %v3266_v38  ;;  %1719 = vmatprep.subr.mxu0 %v3266_v38  ;;  %v3273_v27 = vld [vmem:[#allocation9 + $0x4d0] sm:$0xff]  ;;  %4164 = vst [vmem:[#allocation62_spill] sm:$0xff] %v3282_v8  ;;  %v3288_v38 = vld [vmem:[#allocation9 + $0x418] sm:$0xff] }
 0x3b7   :  { %1700 = vmatprep.subr.mxu1 %v3245_v33  ;;  %4161 = vst [vmem:[#allocation59_spill] sm:$0xff] %v3273_v27  ;;  %v3279_v33 = vld [vmem:[#allocation9 + $0x490] sm:$0xff]  ;;  %4166 = vst [vmem:[#allocation64_spill] sm:$0xff] %v3288_v38 }
 0x3b8   :  { %1701 = vmatpush2.msra.mxu1 %v3251_v40  ;;  %4163 = vst [vmem:[#allocation61_spill] sm:$0xff] %v3279_v33  ;;  %v3285_v40 = vld [vmem:[#allocation9 + $0x450] sm:$0xff] }
 0x3b9   :  { %1702 = vmatprep.subr.mxu1 %v3259_v35  ;;  %4165 = vst [vmem:[#allocation63_spill] sm:$0xff] %v3285_v40 }
 0x3ba   :  { %1703 = vmatpush2.msra.mxu1 %v3263_v53  ;;  %v3291_v53 = vld [vmem:[#allocation9 + $0x410] sm:$0xff] }
 0x3bb   :  { %1704 = vmatprep.subr.mxu1 %v3269_v46  ;;  %4167 = vst [vmem:[#allocation65_spill] sm:$0xff] %v3291_v53  ;;  %v3294_v46 = vld [vmem:[#allocation9 + $0x3f8] sm:$0xff] }
 0x3bc   :  { %1705 = vmatpush2.msra.mxu1 %v3273_v27  ;;  %4168 = vst [vmem:[#allocation66_spill] sm:$0xff] %v3294_v46  ;;  %v3299_v27 = vpop.permute.xlu0 %1112 }
 0x3bd   :  { %1706 = vmatprep.subr.mxu1 %v3276_v63 }
 0x3be   :  { %1707 = vmatpush2.msra.mxu1 %v3279_v33 }
 0x3bf   :  { %1708 = vmatprep.subr.mxu1 %v3282_v8 }
 0x3c0   :  { %1709 = vmatpush2.msra.mxu1 %v3285_v40  ;;  %v3307_v40 = vld [vmem:[#allocation9 + $0x3f0] sm:$0xff] }
 0x3c1   :  { %1710 = vmatprep.subr.mxu1 %v3288_v38  ;;  %4170 = vst [vmem:[#allocation68_spill] sm:$0xff] %v3307_v40  ;;  %v3309_v38 = vld [vmem:[#allocation9 + $0x3a8] sm:$0xff] }
 0x3c2   :  { %1711 = vmatpush2.msra.mxu1 %v3291_v53  ;;  %4171 = vst [vmem:[#allocation69_spill] sm:$0xff] %v3309_v38  ;;  %v3322_v53 = vld [vmem:[#allocation9 + $0x368] sm:$0xff] }
 0x3c3   :  { %1790 = vmatprep.subr.mxu1 %v3294_v46  ;;  %v3313_v46 = vld [vmem:[#allocation9 + $0x3b8] sm:$0xff]  ;;  %4175 = vst [vmem:[#allocation73_spill] sm:$0xff] %v3322_v53 }
 0x3c4   :  { %4172 = vst [vmem:[#allocation70_spill] sm:$0xff] %v3313_v46 }
 0x432   :  { %v1245_v63 = vpop.f32.mrf.mxu0 }
 0x433   :  { %v3303_v8 = vadd.f32 %v1245_v63, %v3299_v27  ;;  %v3319_v63 = vld [vmem:[#allocation9 + $0x3b0] sm:$0xff] }
 0x434   :  { %v1247_v33 = vpop.f32.mrf.mxu0  ;;  %4174 = vst [vmem:[#allocation72_spill] sm:$0xff] %v3319_v63 }
 0x435   :  { %v1248_v35 = vadd.f32 %v1247_v33, %v3299_v27  ;;  %v3317_v33 = vld [vmem:[#allocation9 + $0x3a0] sm:$0xff] }
 0x436   :  { %4173 = vst [vmem:[#allocation71_spill] sm:$0xff] %v3317_v33 }
 0x437   :  { %1641 = vmatprep.mubr.f32.mxu0 %v1248_v35  ;;  %1712 = vmatprep.mubr.f32.mxu1 %v1248_v35 }
 0x438   :  { %1642 = vmatmul.mubr.f32.vlgmr.msra.gmra.mxu0 %v3303_v8  ;;  %1713 = vmatmul.mubr.f32.vlgmr.msra.gmra.mxu1 %v3303_v8 }
 0x439   :  { %1720 = vmatpush1.msra.mxu0 %v3305_v56  ;;  %1791 = vmatpush1.msra.mxu1 %v3307_v40  ;;  %v3333_v40 = vld [vmem:[#allocation9 + $0x328] sm:$0xff]  ;;  %v3335_v56 = vld [vmem:[#allocation9 + $0x338] sm:$0xff] }
 0x43a   :  { %1721 = vmatprep.subr.mxu0 %v3309_v38  ;;  %1783 = vmatprep.mubr.f32.mxu0 %v1248_v35  ;;  %4179 = vst [vmem:[#allocation77_spill] sm:$0xff] %v3333_v40  ;;  %4180 = vst [vmem:[#allocation78_spill] sm:$0xff] %v3335_v56  ;;  %v3339_v38 = vld [vmem:[#allocation9 + $0x320] sm:$0xff] }
 0x43b   :  { %1792 = vmatprep.subr.mxu1 %v3313_v46  ;;  %1854 = vmatprep.mubr.f32.mxu1 %v1248_v35  ;;  %4181 = vst [vmem:[#allocation79_spill] sm:$0xff] %v3339_v38  ;;  %v3341_v46 = vld [vmem:[#allocation9 + $0x330] sm:$0xff]  ;;  %v3345_v35 = vld [vmem:[#allocation9 + $0x2e8] sm:$0xff] }
 0x43c   :  { %1722 = vmatpush1.msra.mxu0 %v3317_v33  ;;  %1793 = vmatpush1.msra.mxu1 %v3319_v63  ;;  %4182 = vst [vmem:[#allocation80_spill] sm:$0xff] %v3341_v46  ;;  %4183 = vst [vmem:[#allocation81_spill] sm:$0xff] %v3345_v35  ;;  %v3347_v33 = vld [vmem:[#allocation9 + $0x2f8] sm:$0xff]  ;;  %v3351_v63 = vld [vmem:[#allocation9 + $0x2e0] sm:$0xff] }
 0x43d   :  { %1723 = vmatprep.subr.mxu0 %v3322_v53  ;;  %1794 = vmatprep.subr.mxu1 %v3324_v42  ;;  %4184 = vst [vmem:[#allocation82_spill] sm:$0xff] %v3347_v33  ;;  %4185 = vst [vmem:[#allocation83_spill] sm:$0xff] %v3351_v63  ;;  %v3353_v53 = vld [vmem:[#allocation9 + $0x2f0] sm:$0xff]  ;;  %v3357_v42 = vld [vmem:[#allocation9 + $0x2a8] sm:$0xff] }
 0x43e   :  { %1724 = vmatpush1.msra.mxu0 %v3327_v50  ;;  %1795 = vmatpush1.msra.mxu1 %v3329_v0  ;;  %4186 = vst [vmem:[#allocation84_spill] sm:$0xff] %v3353_v53  ;;  %4187 = vst [vmem:[#allocation85_spill] sm:$0xff] %v3357_v42  ;;  %v3359_v50 = vld [vmem:[#allocation9 + $0x2b8] sm:$0xff]  ;;  %v3363_v0 = vld [vmem:[#allocation9 + $0x2a0] sm:$0xff] }
 0x43f   :  { %1725 = vmatprep.subr.mxu0 %v3333_v40  ;;  %1796 = vmatprep.subr.mxu1 %v3335_v56  ;;  %4188 = vst [vmem:[#allocation86_spill] sm:$0xff] %v3359_v50  ;;  %4189 = vst [vmem:[#allocation87_spill] sm:$0xff] %v3363_v0  ;;  %v3365_v40 = vld [vmem:[#allocation9 + $0x2b0] sm:$0xff]  ;;  %v3369_v56 = vld [vmem:[#allocation9 + $0x268] sm:$0xff] }
 0x440   :  { %1726 = vmatpush1.msra.mxu0 %v3339_v38  ;;  %1797 = vmatpush1.msra.mxu1 %v3341_v46  ;;  %4190 = vst [vmem:[#allocation88_spill] sm:$0xff] %v3365_v40  ;;  %4191 = vst [vmem:[#allocation89_spill] sm:$0xff] %v3369_v56  ;;  %v3371_v38 = vld [vmem:[#allocation9 + $0x278] sm:$0xff] }
 0x441   :  { %1727 = vmatprep.subr.mxu0 %v3345_v35  ;;  %1798 = vmatprep.subr.mxu1 %v3347_v33  ;;  %4192 = vst [vmem:[#allocation90_spill] sm:$0xff] %v3371_v38  ;;  %v3375_v35 = vld [vmem:[#allocation9 + $0x260] sm:$0xff]  ;;  %v3377_v33 = vld [vmem:[#allocation9 + $0x270] sm:$0xff] }
 0x442   :  { %1728 = vmatpush1.msra.mxu0 %v3351_v63  ;;  %1799 = vmatpush1.msra.mxu1 %v3353_v53  ;;  %4193 = vst [vmem:[#allocation91_spill] sm:$0xff] %v3375_v35  ;;  %4194 = vst [vmem:[#allocation92_spill] sm:$0xff] %v3377_v33  ;;  %v3384_v53 = vld [vmem:[#allocation9 + $0x228] sm:$0xff] }
 0x443   :  { %1729 = vmatprep.subr.mxu0 %v3357_v42  ;;  %1800 = vmatprep.subr.mxu1 %v3359_v50  ;;  %v1316_v46 = vpop.f32.mrf.mxu1  ;;  %4195 = vst [vmem:[#allocation93_spill] sm:$0xff] %v3384_v53  ;;  %v3390_v50 = vld [vmem:[#allocation9 + $0x220] sm:$0xff]  ;;  %v3392_v42 = vld [vmem:[#allocation9 + $0x230] sm:$0xff] }
 0x444   :  { %1730 = vmatpush1.msra.mxu0 %v3363_v0  ;;  %1801 = vmatpush1.msra.mxu1 %v3365_v40  ;;  %v3382_v63 = vadd.f32 %v1316_v46, %v3299_v27  ;;  %4197 = vst [vmem:[#allocation95_spill] sm:$0xff] %v3390_v50  ;;  %4198 = vst [vmem:[#allocation96_spill] sm:$0xff] %v3392_v42  ;;  %v3396_v40 = vld [vmem:[#allocation9 + $0x1e8] sm:$0xff]  ;;  %v3398_v46 = vld [vmem:[#allocation9 + $0x1f8] sm:$0xff] }
 0x445   :  { %1731 = vmatprep.subr.mxu0 %v3369_v56  ;;  %1802 = vmatprep.subr.mxu1 %v3371_v38  ;;  %4199 = vst [vmem:[#allocation97_spill] sm:$0xff] %v3396_v40  ;;  %4200 = vst [vmem:[#allocation98_spill] sm:$0xff] %v3398_v46  ;;  %v3402_v0 = vld [vmem:[#allocation9 + $0x1e0] sm:$0xff]  ;;  %v3404_v56 = vld [vmem:[#allocation9 + $0x1f0] sm:$0xff] }
 0x446   :  { %1732 = vmatpush1.msra.mxu0 %v3375_v35  ;;  %1803 = vmatpush1.msra.mxu1 %v3377_v33  ;;  %4201 = vst [vmem:[#allocation99_spill] sm:$0xff] %v3402_v0  ;;  %4202 = vst [vmem:[#allocation100_spill] sm:$0xff] %v3404_v56  ;;  %v3408_v38 = vld [vmem:[#allocation9 + $0x1a8] sm:$0xff]  ;;  %v3410_v35 = vld [vmem:[#allocation9 + $0x1b8] sm:$0xff] }
 0x447   :  { %1733 = vmatprep.subr.mxu0 %v3384_v53  ;;  %1804 = vmatprep.subr.mxu1 %v3386_v7  ;;  %4203 = vst [vmem:[#allocation101_spill] sm:$0xff] %v3408_v38  ;;  %4204 = vst [vmem:[#allocation102_spill] sm:$0xff] %v3410_v35  ;;  %v3414_v33 = vld [vmem:[#allocation9 + $0x1a0] sm:$0xff]  ;;  %v3416_v53 = vld [vmem:[#allocation9 + $0x1b0] sm:$0xff] }
 0x448   :  { %1734 = vmatpush1.msra.mxu0 %v3390_v50  ;;  %1805 = vmatpush1.msra.mxu1 %v3392_v42  ;;  %4205 = vst [vmem:[#allocation103_spill] sm:$0xff] %v3414_v33  ;;  %4206 = vst [vmem:[#allocation104_spill] sm:$0xff] %v3416_v53  ;;  %v3420_v7 = vld [vmem:[#allocation9 + $0x168] sm:$0xff]  ;;  %v3422_v50 = vld [vmem:[#allocation9 + $0x178] sm:$0xff] }
 0x449   :  { %1735 = vmatprep.subr.mxu0 %v3396_v40  ;;  %1806 = vmatprep.subr.mxu1 %v3398_v46  ;;  %4207 = vst [vmem:[#allocation105_spill] sm:$0xff] %v3420_v7  ;;  %4208 = vst [vmem:[#allocation106_spill] sm:$0xff] %v3422_v50  ;;  %v3426_v42 = vld [vmem:[#allocation9 + $0x160] sm:$0xff]  ;;  %v3428_v40 = vld [vmem:[#allocation9 + $0x170] sm:$0xff] }
 0x44a   :  { %1736 = vmatpush1.msra.mxu0 %v3402_v0  ;;  %1807 = vmatpush1.msra.mxu1 %v3404_v56  ;;  %4209 = vst [vmem:[#allocation107_spill] sm:$0xff] %v3426_v42  ;;  %4210 = vst [vmem:[#allocation108_spill] sm:$0xff] %v3428_v40  ;;  %v3432_v46 = vld [vmem:[#allocation9 + $0x128] sm:$0xff]  ;;  %v3434_v0 = vld [vmem:[#allocation9 + $0x138] sm:$0xff] }
 0x44b   :  { %1737 = vmatprep.subr.mxu0 %v3408_v38  ;;  %1808 = vmatprep.subr.mxu1 %v3410_v35  ;;  %4211 = vst [vmem:[#allocation109_spill] sm:$0xff] %v3432_v46  ;;  %4212 = vst [vmem:[#allocation110_spill] sm:$0xff] %v3434_v0  ;;  %v3438_v56 = vld [vmem:[#allocation9 + $0x120] sm:$0xff]  ;;  %v3440_v38 = vld [vmem:[#allocation9 + $0x130] sm:$0xff] }
 0x44c   :  { %1738 = vmatpush1.msra.mxu0 %v3414_v33  ;;  %1809 = vmatpush1.msra.mxu1 %v3416_v53  ;;  %4213 = vst [vmem:[#allocation111_spill] sm:$0xff] %v3438_v56  ;;  %4214 = vst [vmem:[#allocation112_spill] sm:$0xff] %v3440_v38  ;;  %v3444_v35 = vld [vmem:[#allocation9 + $0xe8] sm:$0xff]  ;;  %v3446_v33 = vld [vmem:[#allocation9 + $0xf8] sm:$0xff] }
 0x44d   :  { %1739 = vmatprep.subr.mxu0 %v3420_v7  ;;  %1810 = vmatprep.subr.mxu1 %v3422_v50  ;;  %4215 = vst [vmem:[#allocation113_spill] sm:$0xff] %v3444_v35  ;;  %4216 = vst [vmem:[#allocation114_spill] sm:$0xff] %v3446_v33  ;;  %v3450_v53 = vld [vmem:[#allocation9 + $0xe0] sm:$0xff]  ;;  %v3452_v7 = vld [vmem:[#allocation9 + $0xf0] sm:$0xff] }
 0x44e   :  { %1740 = vmatpush1.msra.mxu0 %v3426_v42  ;;  %1811 = vmatpush1.msra.mxu1 %v3428_v40  ;;  %4217 = vst [vmem:[#allocation115_spill] sm:$0xff] %v3450_v53  ;;  %4218 = vst [vmem:[#allocation116_spill] sm:$0xff] %v3452_v7  ;;  %v3456_v50 = vld [vmem:[#allocation9 + $0xa8] sm:$0xff]  ;;  %v3458_v42 = vld [vmem:[#allocation9 + $0xb8] sm:$0xff] }
 0x44f   :  { %1741 = vmatprep.subr.mxu0 %v3432_v46  ;;  %1812 = vmatprep.subr.mxu1 %v3434_v0  ;;  %4219 = vst [vmem:[#allocation117_spill] sm:$0xff] %v3456_v50  ;;  %4220 = vst [vmem:[#allocation118_spill] sm:$0xff] %v3458_v42  ;;  %v3462_v40 = vld [vmem:[#allocation9 + $0xa0] sm:$0xff]  ;;  %v3464_v46 = vld [vmem:[#allocation9 + $0xb0] sm:$0xff] }
 0x450   :  { %1742 = vmatpush1.msra.mxu0 %v3438_v56  ;;  %1813 = vmatpush1.msra.mxu1 %v3440_v38  ;;  %4221 = vst [vmem:[#allocation119_spill] sm:$0xff] %v3462_v40  ;;  %4222 = vst [vmem:[#allocation120_spill] sm:$0xff] %v3464_v46  ;;  %v3468_v0 = vld [vmem:[#allocation9 + $0x68] sm:$0xff]  ;;  %v3470_v56 = vld [vmem:[#allocation9 + $0x78] sm:$0xff] }
 0x451   :  { %1743 = vmatprep.subr.mxu0 %v3444_v35  ;;  %1814 = vmatprep.subr.mxu1 %v3446_v33  ;;  %4223 = vst [vmem:[#allocation121_spill] sm:$0xff] %v3468_v0  ;;  %4224 = vst [vmem:[#allocation122_spill] sm:$0xff] %v3470_v56  ;;  %v3474_v38 = vld [vmem:[#allocation9 + $0x60] sm:$0xff]  ;;  %v3476_v35 = vld [vmem:[#allocation9 + $0x70] sm:$0xff] }
 0x452   :  { %1744 = vmatpush1.msra.mxu0 %v3450_v53  ;;  %1815 = vmatpush1.msra.mxu1 %v3452_v7  ;;  %4225 = vst [vmem:[#allocation123_spill] sm:$0xff] %v3474_v38  ;;  %4226 = vst [vmem:[#allocation124_spill] sm:$0xff] %v3476_v35  ;;  %v3480_v33 = vld [vmem:[#allocation9 + $0x28] sm:$0xff]  ;;  %v3482_v53 = vld [vmem:[#allocation9 + $0x38] sm:$0xff] }
 0x453   :  { %1745 = vmatprep.subr.mxu0 %v3456_v50  ;;  %1816 = vmatprep.subr.mxu1 %v3458_v42  ;;  %4227 = vst [vmem:[#allocation125_spill] sm:$0xff] %v3480_v33  ;;  %4228 = vst [vmem:[#allocation126_spill] sm:$0xff] %v3482_v53  ;;  %v3486_v7 = vld [vmem:[#allocation9 + $0x20] sm:$0xff]  ;;  %v3488_v50 = vld [vmem:[#allocation9 + $0x30] sm:$0xff] }
 0x454   :  { %1746 = vmatpush1.msra.mxu0 %v3462_v40  ;;  %1817 = vmatpush1.msra.mxu1 %v3464_v46  ;;  %4229 = vst [vmem:[#allocation127_spill] sm:$0xff] %v3486_v7  ;;  %4230 = vst [vmem:[#allocation128_spill] sm:$0xff] %v3488_v50  ;;  %v3492_v42 = vld [vmem:[#allocation9 + $0x7e8] sm:$0xff]  ;;  %v3494_v40 = vld [vmem:[#allocation9 + $0x7f8] sm:$0xff] }
 0x455   :  { %1747 = vmatprep.subr.mxu0 %v3468_v0  ;;  %1818 = vmatprep.subr.mxu1 %v3470_v56  ;;  %4231 = vst [vmem:[#allocation129_spill] sm:$0xff] %v3492_v42  ;;  %4232 = vst [vmem:[#allocation130_spill] sm:$0xff] %v3494_v40  ;;  %v3498_v46 = vld [vmem:[#allocation9 + $0x7e0] sm:$0xff]  ;;  %v3500_v0 = vld [vmem:[#allocation9 + $0x7f0] sm:$0xff] }
 0x456   :  { %1748 = vmatpush1.msra.mxu0 %v3474_v38  ;;  %1819 = vmatpush1.msra.mxu1 %v3476_v35  ;;  %4233 = vst [vmem:[#allocation131_spill] sm:$0xff] %v3498_v46  ;;  %4234 = vst [vmem:[#allocation132_spill] sm:$0xff] %v3500_v0  ;;  %v3504_v56 = vld [vmem:[#allocation9 + $0x7a8] sm:$0xff]  ;;  %v3506_v38 = vld [vmem:[#allocation9 + $0x7b8] sm:$0xff] }
 0x457   :  { %1749 = vmatprep.subr.mxu0 %v3480_v33  ;;  %1820 = vmatprep.subr.mxu1 %v3482_v53  ;;  %4235 = vst [vmem:[#allocation133_spill] sm:$0xff] %v3504_v56  ;;  %4236 = vst [vmem:[#allocation134_spill] sm:$0xff] %v3506_v38  ;;  %v3510_v35 = vld [vmem:[#allocation9 + $0x7a0] sm:$0xff]  ;;  %v3512_v33 = vld [vmem:[#allocation9 + $0x7b0] sm:$0xff] }
 0x458   :  { %1750 = vmatpush1.msra.mxu0 %v3486_v7  ;;  %1821 = vmatpush1.msra.mxu1 %v3488_v50  ;;  %4237 = vst [vmem:[#allocation135_spill] sm:$0xff] %v3510_v35  ;;  %4238 = vst [vmem:[#allocation136_spill] sm:$0xff] %v3512_v33  ;;  %v3516_v53 = vld [vmem:[#allocation9 + $0x768] sm:$0xff]  ;;  %v3518_v7 = vld [vmem:[#allocation9 + $0x778] sm:$0xff] }
 0x459   :  { %1751 = vmatprep.subr.mxu0 %v3492_v42  ;;  %1822 = vmatprep.subr.mxu1 %v3494_v40  ;;  %4239 = vst [vmem:[#allocation137_spill] sm:$0xff] %v3516_v53  ;;  %4240 = vst [vmem:[#allocation138_spill] sm:$0xff] %v3518_v7  ;;  %v3522_v50 = vld [vmem:[#allocation9 + $0x760] sm:$0xff]  ;;  %v3524_v42 = vld [vmem:[#allocation9 + $0x770] sm:$0xff] }
 0x45a   :  { %1752 = vmatpush2.msra.mxu0 %v3498_v46  ;;  %1823 = vmatpush2.msra.mxu1 %v3500_v0  ;;  %4241 = vst [vmem:[#allocation139_spill] sm:$0xff] %v3522_v50  ;;  %4242 = vst [vmem:[#allocation140_spill] sm:$0xff] %v3524_v42  ;;  %v3528_v40 = vld [vmem:[#allocation9 + $0x728] sm:$0xff]  ;;  %v3530_v46 = vld [vmem:[#allocation9 + $0x738] sm:$0xff] }
 0x45b   :  { %1753 = vmatprep.subr.mxu0 %v3504_v56  ;;  %1824 = vmatprep.subr.mxu1 %v3506_v38  ;;  %4243 = vst [vmem:[#allocation141_spill] sm:$0xff] %v3528_v40  ;;  %4244 = vst [vmem:[#allocation142_spill] sm:$0xff] %v3530_v46  ;;  %v3534_v0 = vld [vmem:[#allocation9 + $0x720] sm:$0xff]  ;;  %v3536_v56 = vld [vmem:[#allocation9 + $0x730] sm:$0xff] }
 0x45c   :  { %1754 = vmatpush2.msra.mxu0 %v3510_v35  ;;  %1825 = vmatpush2.msra.mxu1 %v3512_v33  ;;  %4245 = vst [vmem:[#allocation143_spill] sm:$0xff] %v3534_v0  ;;  %4246 = vst [vmem:[#allocation144_spill] sm:$0xff] %v3536_v56  ;;  %v3540_v38 = vld [vmem:[#allocation9 + $0x6e8] sm:$0xff]  ;;  %v3542_v35 = vld [vmem:[#allocation9 + $0x6f8] sm:$0xff] }
 0x45d   :  { %1755 = vmatprep.subr.mxu0 %v3516_v53  ;;  %1826 = vmatprep.subr.mxu1 %v3518_v7  ;;  %4247 = vst [vmem:[#allocation145_spill] sm:$0xff] %v3540_v38  ;;  %4248 = vst [vmem:[#allocation146_spill] sm:$0xff] %v3542_v35  ;;  %v3546_v33 = vld [vmem:[#allocation9 + $0x6e0] sm:$0xff]  ;;  %v3548_v53 = vld [vmem:[#allocation9 + $0x6f0] sm:$0xff] }
 0x45e   :  { %1756 = vmatpush2.msra.mxu0 %v3522_v50  ;;  %1827 = vmatpush2.msra.mxu1 %v3524_v42  ;;  %4249 = vst [vmem:[#allocation147_spill] sm:$0xff] %v3546_v33  ;;  %4250 = vst [vmem:[#allocation148_spill] sm:$0xff] %v3548_v53  ;;  %v3552_v7 = vld [vmem:[#allocation9 + $0x6a8] sm:$0xff]  ;;  %v3554_v50 = vld [vmem:[#allocation9 + $0x6b8] sm:$0xff] }
 0x45f   :  { %1757 = vmatprep.subr.mxu0 %v3528_v40  ;;  %1828 = vmatprep.subr.mxu1 %v3530_v46  ;;  %4251 = vst [vmem:[#allocation149_spill] sm:$0xff] %v3552_v7  ;;  %4252 = vst [vmem:[#allocation150_spill] sm:$0xff] %v3554_v50  ;;  %v3558_v42 = vld [vmem:[#allocation9 + $0x6a0] sm:$0xff]  ;;  %v3560_v40 = vld [vmem:[#allocation9 + $0x6b0] sm:$0xff] }
 0x460   :  { %1758 = vmatpush2.msra.mxu0 %v3534_v0  ;;  %1829 = vmatpush2.msra.mxu1 %v3536_v56  ;;  %4253 = vst [vmem:[#allocation151_spill] sm:$0xff] %v3558_v42  ;;  %4254 = vst [vmem:[#allocation152_spill] sm:$0xff] %v3560_v40  ;;  %v3564_v46 = vld [vmem:[#allocation9 + $0x668] sm:$0xff]  ;;  %v3566_v0 = vld [vmem:[#allocation9 + $0x678] sm:$0xff] }
 0x461   :  { %1759 = vmatprep.subr.mxu0 %v3540_v38  ;;  %1830 = vmatprep.subr.mxu1 %v3542_v35  ;;  %4255 = vst [vmem:[#allocation153_spill] sm:$0xff] %v3564_v46  ;;  %4256 = vst [vmem:[#allocation154_spill] sm:$0xff] %v3566_v0  ;;  %v3570_v56 = vld [vmem:[#allocation9 + $0x660] sm:$0xff]  ;;  %v3572_v38 = vld [vmem:[#allocation9 + $0x670] sm:$0xff] }
 0x462   :  { %1760 = vmatpush2.msra.mxu0 %v3546_v33  ;;  %1831 = vmatpush2.msra.mxu1 %v3548_v53  ;;  %4257 = vst [vmem:[#allocation155_spill] sm:$0xff] %v3570_v56  ;;  %4258 = vst [vmem:[#allocation156_spill] sm:$0xff] %v3572_v38  ;;  %v3576_v35 = vld [vmem:[#allocation9 + $0x628] sm:$0xff]  ;;  %v3578_v33 = vld [vmem:[#allocation9 + $0x638] sm:$0xff] }
 0x463   :  { %1761 = vmatprep.subr.mxu0 %v3552_v7  ;;  %1832 = vmatprep.subr.mxu1 %v3554_v50  ;;  %4259 = vst [vmem:[#allocation157_spill] sm:$0xff] %v3576_v35  ;;  %4260 = vst [vmem:[#allocation158_spill] sm:$0xff] %v3578_v33  ;;  %v3582_v53 = vld [vmem:[#allocation9 + $0x620] sm:$0xff]  ;;  %v3584_v7 = vld [vmem:[#allocation9 + $0x630] sm:$0xff] }
 0x464   :  { %1762 = vmatpush2.msra.mxu0 %v3558_v42  ;;  %1833 = vmatpush2.msra.mxu1 %v3560_v40  ;;  %4261 = vst [vmem:[#allocation159_spill] sm:$0xff] %v3582_v53  ;;  %4262 = vst [vmem:[#allocation160_spill] sm:$0xff] %v3584_v7  ;;  %v3588_v50 = vld [vmem:[#allocation9 + $0x5e8] sm:$0xff]  ;;  %v3590_v42 = vld [vmem:[#allocation9 + $0x5f8] sm:$0xff] }
 0x465   :  { %1763 = vmatprep.subr.mxu0 %v3564_v46  ;;  %1834 = vmatprep.subr.mxu1 %v3566_v0  ;;  %4263 = vst [vmem:[#allocation161_spill] sm:$0xff] %v3588_v50  ;;  %4264 = vst [vmem:[#allocation162_spill] sm:$0xff] %v3590_v42  ;;  %v3594_v40 = vld [vmem:[#allocation9 + $0x5e0] sm:$0xff]  ;;  %v3596_v46 = vld [vmem:[#allocation9 + $0x5f0] sm:$0xff] }
 0x466   :  { %1764 = vmatpush2.msra.mxu0 %v3570_v56  ;;  %1835 = vmatpush2.msra.mxu1 %v3572_v38  ;;  %4265 = vst [vmem:[#allocation163_spill] sm:$0xff] %v3594_v40  ;;  %4266 = vst [vmem:[#allocation164_spill] sm:$0xff] %v3596_v46  ;;  %v3600_v0 = vld [vmem:[#allocation9 + $0x5a8] sm:$0xff]  ;;  %v3602_v56 = vld [vmem:[#allocation9 + $0x5b8] sm:$0xff] }
 0x467   :  { %1765 = vmatprep.subr.mxu0 %v3576_v35  ;;  %1836 = vmatprep.subr.mxu1 %v3578_v33  ;;  %4267 = vst [vmem:[#allocation165_spill] sm:$0xff] %v3600_v0  ;;  %4268 = vst [vmem:[#allocation166_spill] sm:$0xff] %v3602_v56  ;;  %v3606_v38 = vld [vmem:[#allocation9 + $0x5a0] sm:$0xff]  ;;  %v3608_v35 = vld [vmem:[#allocation9 + $0x5b0] sm:$0xff] }
 0x468   :  { %1766 = vmatpush2.msra.mxu0 %v3582_v53  ;;  %1837 = vmatpush2.msra.mxu1 %v3584_v7  ;;  %4269 = vst [vmem:[#allocation167_spill] sm:$0xff] %v3606_v38  ;;  %4270 = vst [vmem:[#allocation168_spill] sm:$0xff] %v3608_v35  ;;  %v3612_v33 = vld [vmem:[#allocation9 + $0x568] sm:$0xff]  ;;  %v3614_v53 = vld [vmem:[#allocation9 + $0x578] sm:$0xff] }
 0x469   :  { %1767 = vmatprep.subr.mxu0 %v3588_v50  ;;  %1838 = vmatprep.subr.mxu1 %v3590_v42  ;;  %4271 = vst [vmem:[#allocation169_spill] sm:$0xff] %v3612_v33  ;;  %4272 = vst [vmem:[#allocation170_spill] sm:$0xff] %v3614_v53  ;;  %v3618_v7 = vld [vmem:[#allocation9 + $0x560] sm:$0xff]  ;;  %v3620_v50 = vld [vmem:[#allocation9 + $0x570] sm:$0xff] }
 0x46a   :  { %1768 = vmatpush2.msra.mxu0 %v3594_v40  ;;  %1839 = vmatpush2.msra.mxu1 %v3596_v46  ;;  %4273 = vst [vmem:[#allocation171_spill] sm:$0xff] %v3618_v7  ;;  %4274 = vst [vmem:[#allocation172_spill] sm:$0xff] %v3620_v50  ;;  %v3624_v42 = vld [vmem:[#allocation9 + $0x528] sm:$0xff]  ;;  %v3626_v40 = vld [vmem:[#allocation9 + $0x538] sm:$0xff] }
 0x46b   :  { %1769 = vmatprep.subr.mxu0 %v3600_v0  ;;  %1840 = vmatprep.subr.mxu1 %v3602_v56  ;;  %4275 = vst [vmem:[#allocation173_spill] sm:$0xff] %v3624_v42  ;;  %4276 = vst [vmem:[#allocation174_spill] sm:$0xff] %v3626_v40  ;;  %v3630_v46 = vld [vmem:[#allocation9 + $0x520] sm:$0xff]  ;;  %v3632_v0 = vld [vmem:[#allocation9 + $0x530] sm:$0xff] }
 0x46c   :  { %1770 = vmatpush2.msra.mxu0 %v3606_v38  ;;  %1841 = vmatpush2.msra.mxu1 %v3608_v35  ;;  %4277 = vst [vmem:[#allocation175_spill] sm:$0xff] %v3630_v46  ;;  %4278 = vst [vmem:[#allocation176_spill] sm:$0xff] %v3632_v0  ;;  %v3636_v56 = vld [vmem:[#allocation9 + $0x4e8] sm:$0xff]  ;;  %v3638_v38 = vld [vmem:[#allocation9 + $0x4f8] sm:$0xff] }
 0x46d   :  { %1771 = vmatprep.subr.mxu0 %v3612_v33  ;;  %1842 = vmatprep.subr.mxu1 %v3614_v53  ;;  %4279 = vst [vmem:[#allocation177_spill] sm:$0xff] %v3636_v56  ;;  %4280 = vst [vmem:[#allocation178_spill] sm:$0xff] %v3638_v38  ;;  %v3642_v35 = vld [vmem:[#allocation9 + $0x4e0] sm:$0xff]  ;;  %v3644_v33 = vld [vmem:[#allocation9 + $0x4f0] sm:$0xff] }
 0x46e   :  { %1772 = vmatpush2.msra.mxu0 %v3618_v7  ;;  %1843 = vmatpush2.msra.mxu1 %v3620_v50  ;;  %4281 = vst [vmem:[#allocation179_spill] sm:$0xff] %v3642_v35  ;;  %4282 = vst [vmem:[#allocation180_spill] sm:$0xff] %v3644_v33  ;;  %v3648_v53 = vld [vmem:[#allocation9 + $0x4a8] sm:$0xff]  ;;  %v3650_v7 = vld [vmem:[#allocation9 + $0x4b8] sm:$0xff] }
 0x46f   :  { %1773 = vmatprep.subr.mxu0 %v3624_v42  ;;  %1844 = vmatprep.subr.mxu1 %v3626_v40  ;;  %4283 = vst [vmem:[#allocation181_spill] sm:$0xff] %v3648_v53  ;;  %4284 = vst [vmem:[#allocation182_spill] sm:$0xff] %v3650_v7  ;;  %v3654_v50 = vld [vmem:[#allocation9 + $0x4a0] sm:$0xff]  ;;  %v3656_v42 = vld [vmem:[#allocation9 + $0x4b0] sm:$0xff] }
 0x470   :  { %1774 = vmatpush2.msra.mxu0 %v3630_v46  ;;  %1845 = vmatpush2.msra.mxu1 %v3632_v0  ;;  %v3660_v40 = vld [vmem:[#allocation9 + $0x468] sm:$0xff]  ;;  %v3662_v46 = vld [vmem:[#allocation9 + $0x478] sm:$0xff]  ;;  %v3666_v0 = vld [vmem:[#allocation9 + $0x460] sm:$0xff] }
 0x471   :  { %1775 = vmatprep.subr.mxu0 %v3636_v56  ;;  %1846 = vmatprep.subr.mxu1 %v3638_v38  ;;  %4285 = vst [vmem:[#allocation183_spill] sm:$0xff] %v3660_v40  ;;  %4286 = vst [vmem:[#allocation184_spill] sm:$0xff] %v3662_v46  ;;  %v3668_v56 = vld [vmem:[#allocation9 + $0x470] sm:$0xff]  ;;  %v3672_v38 = vld [vmem:[#allocation9 + $0x428] sm:$0xff] }
 0x472   :  { %1776 = vmatpush2.msra.mxu0 %v3642_v35  ;;  %1847 = vmatpush2.msra.mxu1 %v3644_v33  ;;  %4287 = vst [vmem:[#allocation185_spill] sm:$0xff] %v3668_v56  ;;  %v3674_v35 = vld [vmem:[#allocation9 + $0x438] sm:$0xff]  ;;  %v3678_v33 = vld [vmem:[#allocation9 + $0x420] sm:$0xff] }
 0x473   :  { %1777 = vmatprep.subr.mxu0 %v3648_v53  ;;  %1848 = vmatprep.subr.mxu1 %v3650_v7  ;;  %v3680_v53 = vld [vmem:[#allocation9 + $0x430] sm:$0xff]  ;;  %v1318_v7 = vpop.f32.mrf.mxu1 }
 0x474   :  { %1778 = vmatpush2.msra.mxu0 %v3654_v50  ;;  %1849 = vmatpush2.msra.mxu1 %v3656_v42  ;;  %4288 = vst [vmem:[#allocation186_spill] sm:$0xff] %v3680_v53 }
 0x475   :  { %1779 = vmatprep.subr.mxu0 %v3660_v40  ;;  %1850 = vmatprep.subr.mxu1 %v3662_v46  ;;  %v3689_v40 = vadd.f32 %v1318_v7, %v3299_v27  ;;  %v2253_v46 = vld [vmem:[#allocation9 + $0x3c8] sm:$0xff]  ;;  %v2256_v27 = vld [vmem:[#allocation9 + $0x380] sm:$0xff] }
 0x476   :  { %1780 = vmatpush2.msra.mxu0 %v3666_v0  ;;  %1851 = vmatpush2.msra.mxu1 %v3668_v56  ;;  %v2254_v56 = vld [vmem:[#allocation9 + $0x3c0] sm:$0xff]  ;;  %v2257_v7 = vld [vmem:[#allocation9 + $0x348] sm:$0xff] }
 0x477   :  { %1781 = vmatprep.subr.mxu0 %v3672_v38  ;;  %1852 = vmatprep.subr.mxu1 %v3674_v35 }
 0x478   :  { %1782 = vmatpush2.msra.mxu0 %v3678_v33  ;;  %1853 = vmatpush2.msra.mxu1 %v3680_v53  ;;  %v2255_v53 = vld [vmem:[#allocation9 + $0x388] sm:$0xff] }
 0x479   :  { %1784 = vmatmul.mubr.f32.vlgmr.msra.gmra.mxu0 %v3303_v8  ;;  %1855 = vmatmul.mubr.f32.vlgmr.msra.gmra.mxu1 %v3303_v8  ;;  %v4318_v8 = vld [vmem:[#allocation29_spill] sm:$0xff] }
 0x47a   :  { %1881 = vmatprep.subr.mxu0 %v2253_v46  ;;  %1952 = vmatprep.subr.mxu1 %v2988_v22  ;;  %v2258_v22 = vld [vmem:[#allocation9 + $0x340] sm:$0xff]  ;;  %v4320_v46 = vld [vmem:[#allocation31_spill] sm:$0xff] }
 0x47b   :  { %1882 = vmatpush1.msra.mxu0 %v2254_v56  ;;  %1945 = vmatprep.mubr.f32.mxu0 %v3689_v40  ;;  %v2259_v56 = vld [vmem:[#allocation9 + $0x308] sm:$0xff] }
 0x47c   :  { %1953 = vmatpush1.msra.mxu1 %v2990_v9  ;;  %2016 = vmatprep.mubr.f32.mxu1 %v3689_v40  ;;  %v2260_v9 = vld [vmem:[#allocation9 + $0x300] sm:$0xff] }
 0x47d   :  { %1883 = vmatprep.subr.mxu0 %v2255_v53  ;;  %1954 = vmatprep.subr.mxu1 %v2992_v48  ;;  %v2261_v48 = vld [vmem:[#allocation9 + $0x2c8] sm:$0xff]  ;;  %v4312_v53 = vld [vmem:[#allocation25_spill] sm:$0xff] }
 0x47e   :  { %1884 = vmatpush1.msra.mxu0 %v2256_v27  ;;  %1955 = vmatpush1.msra.mxu1 %v2997_v49  ;;  %v2262_v49 = vld [vmem:[#allocation9 + $0x2c0] sm:$0xff]  ;;  %v4321_v27 = vld [vmem:[#allocation55_spill] sm:$0xff] }
 0x47f   :  { %1885 = vmatprep.subr.mxu0 %v2257_v7  ;;  %1956 = vmatprep.subr.mxu1 %v3000_v54  ;;  %v2263_v54 = vld [vmem:[#allocation9 + $0x288] sm:$0xff]  ;;  %v4322_v7 = vld [vmem:[#allocation33_spill] sm:$0xff] }
 0x480   :  { %1886 = vmatpush1.msra.mxu0 %v2258_v22  ;;  %1957 = vmatpush1.msra.mxu1 %v3003_v58  ;;  %v2264_v58 = vld [vmem:[#allocation9 + $0x280] sm:$0xff]  ;;  %v4323_v22 = vld [vmem:[#allocation56_spill] sm:$0xff] }
 0x481   :  { %1887 = vmatprep.subr.mxu0 %v2259_v56  ;;  %1958 = vmatprep.subr.mxu1 %v3006_v43  ;;  %v2265_v43 = vld [vmem:[#allocation9 + $0x248] sm:$0xff] }
 0x482   :  { %1888 = vmatpush1.msra.mxu0 %v2260_v9  ;;  %1959 = vmatpush1.msra.mxu1 %v3009_v59  ;;  %v2266_v59 = vld [vmem:[#allocation9 + $0x240] sm:$0xff]  ;;  %v4324_v56 = vld [vmem:[#allocation35_spill] sm:$0xff] }
 0x483   :  { %1889 = vmatprep.subr.mxu0 %v2261_v48  ;;  %1960 = vmatprep.subr.mxu1 %v3012_v60  ;;  %v2267_v60 = vld [vmem:[#allocation9 + $0x208] sm:$0xff]  ;;  %v4325_v9 = vld [vmem:[#allocation58_spill] sm:$0xff]  ;;  %v4326_v48 = vld [vmem:[#allocation37_spill] sm:$0xff] }
 0x484   :  { %1890 = vmatpush1.msra.mxu0 %v2262_v49  ;;  %1961 = vmatpush1.msra.mxu1 %v3015_v6  ;;  %v2268_v6 = vld [vmem:[#allocation9 + $0x200] sm:$0xff]  ;;  %v4327_v49 = vld [vmem:[#allocation59_spill] sm:$0xff] }
 0x485   :  { %1891 = vmatprep.subr.mxu0 %v2263_v54  ;;  %1962 = vmatprep.subr.mxu1 %v3018_v10  ;;  %v2269_v10 = vld [vmem:[#allocation9 + $0x1c8] sm:$0xff] }
 0x486   :  { %1892 = vmatpush1.msra.mxu0 %v2264_v58  ;;  %1963 = vmatpush1.msra.mxu1 %v3021_v23  ;;  %v2270_v23 = vld [vmem:[#allocation9 + $0x1c0] sm:$0xff]  ;;  %v4328_v54 = vld [vmem:[#allocation39_spill] sm:$0xff]  ;;  %v4329_v58 = vld [vmem:[#allocation60_spill] sm:$0xff] }
 0x487   :  { %1893 = vmatprep.subr.mxu0 %v2265_v43  ;;  %1964 = vmatprep.subr.mxu1 %v3024_v62  ;;  %v2271_v62 = vld [vmem:[#allocation9 + $0x188] sm:$0xff] }
 0x488   :  { %1894 = vmatpush1.msra.mxu0 %v2266_v59  ;;  %1965 = vmatpush1.msra.mxu1 %v3029_v14  ;;  %v2272_v14 = vld [vmem:[#allocation9 + $0x180] sm:$0xff]  ;;  %v4330_v43 = vld [vmem:[#allocation47_spill] sm:$0xff]  ;;  %v4331_v59 = vld [vmem:[#allocation61_spill] sm:$0xff] }
 0x489   :  { %1895 = vmatprep.subr.mxu0 %v2267_v60  ;;  %1966 = vmatprep.subr.mxu1 %v3034_v15  ;;  %v2273_v15 = vld [vmem:[#allocation9 + $0x148] sm:$0xff]  ;;  %v4332_v60 = vld [vmem:[#allocation49_spill] sm:$0xff] }
 0x48a   :  { %1896 = vmatpush1.msra.mxu0 %v2268_v6  ;;  %1967 = vmatpush1.msra.mxu1 %v3039_v16  ;;  %v2274_v16 = vld [vmem:[#allocation9 + $0x140] sm:$0xff] }
 0x48b   :  { %1897 = vmatprep.subr.mxu0 %v2269_v10  ;;  %1968 = vmatprep.subr.mxu1 %v3045_v31  ;;  %v2275_v31 = vld [vmem:[#allocation9 + $0x108] sm:$0xff]  ;;  %v4333_v6 = vld [vmem:[#allocation62_spill] sm:$0xff] }
 0x48c   :  { %1898 = vmatpush1.msra.mxu0 %v2270_v23  ;;  %1969 = vmatpush1.msra.mxu1 %v3051_v20  ;;  %v2276_v20 = vld [vmem:[#allocation9 + $0x100] sm:$0xff]  ;;  %v4334_v10 = vld [vmem:[#allocation51_spill] sm:$0xff] }
 0x48d   :  { %1899 = vmatprep.subr.mxu0 %v2271_v62  ;;  %1970 = vmatprep.subr.mxu1 %v3057_v21  ;;  %v2277_v21 = vld [vmem:[#allocation9 + $0xc8] sm:$0xff]  ;;  %v4336_v62 = vld [vmem:[#allocation53_spill] sm:$0xff] }
 0x48e   :  { %1900 = vmatpush1.msra.mxu0 %v2272_v14  ;;  %1971 = vmatpush1.msra.mxu1 %v3063_v25  ;;  %v2278_v25 = vld [vmem:[#allocation9 + $0xc0] sm:$0xff]  ;;  %v4335_v23 = vld [vmem:[#allocation63_spill] sm:$0xff]  ;;  %v4337_v14 = vld [vmem:[#allocation64_spill] sm:$0xff] }
 0x48f   :  { %1901 = vmatprep.subr.mxu0 %v2273_v15  ;;  %1972 = vmatprep.subr.mxu1 %v3069_v51  ;;  %v2279_v51 = vld [vmem:[#allocation9 + $0x88] sm:$0xff]  ;;  %v4338_v15 = vld [vmem:[#allocation54_spill] sm:$0xff] }
 0x490   :  { %1902 = vmatpush1.msra.mxu0 %v2274_v16  ;;  %1973 = vmatpush1.msra.mxu1 %v3075_v1  ;;  %v4298_v1 = vld [vmem:[#allocation18_spill] sm:$0xff]  ;;  %v4339_v16 = vld [vmem:[#allocation65_spill] sm:$0xff] }
 0x491   :  { %1903 = vmatprep.subr.mxu0 %v2275_v31  ;;  %1974 = vmatprep.subr.mxu1 %v3081_v11  ;;  %v4300_v11 = vld [vmem:[#allocation19_spill] sm:$0xff]  ;;  %v4340_v31 = vld [vmem:[#allocation57_spill] sm:$0xff] }
 0x492   :  { %1904 = vmatpush1.msra.mxu0 %v2276_v20  ;;  %1975 = vmatpush1.msra.mxu1 %v3087_v52  ;;  %v4302_v52 = vld [vmem:[#allocation20_spill] sm:$0xff]  ;;  %v4341_v20 = vld [vmem:[#allocation66_spill] sm:$0xff] }
 0x493   :  { %1905 = vmatprep.subr.mxu0 %v2277_v21  ;;  %1976 = vmatprep.subr.mxu1 %v3093_v45  ;;  %v4304_v45 = vld [vmem:[#allocation21_spill] sm:$0xff]  ;;  %v4342_v21 = vld [vmem:[#allocation67_spill] sm:$0xff] }
 0x494   :  { %1906 = vmatpush1.msra.mxu0 %v2278_v25  ;;  %1977 = vmatpush1.msra.mxu1 %v3099_v34  ;;  %v4305_v34 = vld [vmem:[#allocation42_spill] sm:$0xff]  ;;  %v4343_v25 = vld [vmem:[#allocation68_spill] sm:$0xff] }
 0x495   :  { %1907 = vmatprep.subr.mxu0 %v2279_v51  ;;  %1978 = vmatprep.subr.mxu1 %v3105_v36  ;;  %v4306_v36 = vld [vmem:[#allocation22_spill] sm:$0xff]  ;;  %v4344_v51 = vld [vmem:[#allocation69_spill] sm:$0xff] }
 0x496   :  { %1908 = vmatpush1.msra.mxu0 %v3026_v13  ;;  %1979 = vmatpush1.msra.mxu1 %v3111_v55  ;;  %v4289_v13 = vld [vmem:[#allocation28_spill] sm:$0xff]  ;;  %v4307_v55 = vld [vmem:[#allocation43_spill] sm:$0xff] }
 0x497   :  { %1909 = vmatprep.subr.mxu0 %v3031_v18  ;;  %1980 = vmatprep.subr.mxu1 %v3117_v39  ;;  %v4290_v18 = vld [vmem:[#allocation14_spill] sm:$0xff]  ;;  %v4308_v39 = vld [vmem:[#allocation23_spill] sm:$0xff] }
 0x498   :  { %1910 = vmatpush1.msra.mxu0 %v3036_v24  ;;  %1981 = vmatpush1.msra.mxu1 %v3123_v3  ;;  %v4291_v24 = vld [vmem:[#allocation30_spill] sm:$0xff]  ;;  %v4309_v3 = vld [vmem:[#allocation44_spill] sm:$0xff] }
 0x499   :  { %1911 = vmatprep.subr.mxu0 %v3042_v17  ;;  %1982 = vmatprep.subr.mxu1 %v3129_v44  ;;  %v4292_v17 = vld [vmem:[#allocation15_spill] sm:$0xff]  ;;  %v4310_v44 = vld [vmem:[#allocation24_spill] sm:$0xff] }
 0x49a   :  { %1912 = vmatpush1.msra.mxu0 %v3048_v19  ;;  %1983 = vmatpush1.msra.mxu1 %v3135_v4  ;;  %v4293_v19 = vld [vmem:[#allocation32_spill] sm:$0xff]  ;;  %v4311_v4 = vld [vmem:[#allocation45_spill] sm:$0xff] }
 0x49b   :  { %1913 = vmatprep.subr.mxu0 %v3054_v26  ;;  %1984 = vmatprep.subr.mxu1 %v3141_v47  ;;  %v4294_v26 = vld [vmem:[#allocation16_spill] sm:$0xff]  ;;  %v4313_v47 = vld [vmem:[#allocation46_spill] sm:$0xff] }
 0x49c   :  { %1914 = vmatpush2.msra.mxu0 %v3060_v41  ;;  %1985 = vmatpush2.msra.mxu1 %v3147_v2  ;;  %v4295_v41 = vld [vmem:[#allocation34_spill] sm:$0xff] }
 0x49d   :  { %1915 = vmatprep.subr.mxu0 %v3066_v37  ;;  %1986 = vmatprep.subr.mxu1 %v3153_v57  ;;  %v4296_v37 = vld [vmem:[#allocation17_spill] sm:$0xff]  ;;  %v4314_v2 = vld [vmem:[#allocation26_spill] sm:$0xff]  ;;  %v4315_v57 = vld [vmem:[#allocation48_spill] sm:$0xff] }
 0x49e   :  { %1916 = vmatpush2.msra.mxu0 %v3072_v28  ;;  %1987 = vmatpush2.msra.mxu1 %v3159_v61  ;;  %v4297_v28 = vld [vmem:[#allocation36_spill] sm:$0xff]  ;;  %v4316_v61 = vld [vmem:[#allocation27_spill] sm:$0xff] }
 0x49f   :  { %1917 = vmatprep.subr.mxu0 %v3078_v29  ;;  %1988 = vmatprep.subr.mxu1 %v3165_v5  ;;  %v4299_v29 = vld [vmem:[#allocation38_spill] sm:$0xff] }
 0x4a0   :  { %1918 = vmatpush2.msra.mxu0 %v3084_v30  ;;  %1989 = vmatpush2.msra.mxu1 %v3171_v12  ;;  %v4301_v30 = vld [vmem:[#allocation40_spill] sm:$0xff]  ;;  %v4317_v5 = vld [vmem:[#allocation50_spill] sm:$0xff] }
 0x4a1   :  { %1919 = vmatprep.subr.mxu0 %v3090_v32  ;;  %1990 = vmatprep.subr.mxu1 %v4289_v13  ;;  %v4303_v32 = vld [vmem:[#allocation41_spill] sm:$0xff]  ;;  %v4319_v12 = vld [vmem:[#allocation52_spill] sm:$0xff]  ;;  %v4345_v13 = vld [vmem:[#allocation70_spill] sm:$0xff] }
 0x4a2   :  { %1920 = vmatpush2.msra.mxu0 %v4290_v18  ;;  %1991 = vmatpush2.msra.mxu1 %v4291_v24  ;;  %v4346_v18 = vld [vmem:[#allocation71_spill] sm:$0xff]  ;;  %v4347_v24 = vld [vmem:[#allocation72_spill] sm:$0xff] }
 0x4a3   :  { %1921 = vmatprep.subr.mxu0 %v4292_v17  ;;  %1992 = vmatprep.subr.mxu1 %v4293_v19  ;;  %v4348_v17 = vld [vmem:[#allocation73_spill] sm:$0xff]  ;;  %v4349_v19 = vld [vmem:[#allocation74_spill] sm:$0xff] }
 0x4a4   :  { %1922 = vmatpush2.msra.mxu0 %v4294_v26  ;;  %1993 = vmatpush2.msra.mxu1 %v4295_v41  ;;  %v4350_v26 = vld [vmem:[#allocation75_spill] sm:$0xff]  ;;  %v4351_v41 = vld [vmem:[#allocation76_spill] sm:$0xff] }
 0x4a5   :  { %1923 = vmatprep.subr.mxu0 %v4296_v37  ;;  %1994 = vmatprep.subr.mxu1 %v4297_v28  ;;  %v4352_v37 = vld [vmem:[#allocation77_spill] sm:$0xff]  ;;  %v4353_v28 = vld [vmem:[#allocation78_spill] sm:$0xff] }
 0x4a6   :  { %1924 = vmatpush2.msra.mxu0 %v4298_v1  ;;  %1995 = vmatpush2.msra.mxu1 %v4299_v29  ;;  %v4355_v1 = vld [vmem:[#allocation80_spill] sm:$0xff]  ;;  %v4356_v29 = vld [vmem:[#allocation81_spill] sm:$0xff] }
 0x4a7   :  { %1925 = vmatprep.subr.mxu0 %v4300_v11  ;;  %1996 = vmatprep.subr.mxu1 %v4301_v30  ;;  %v4357_v11 = vld [vmem:[#allocation82_spill] sm:$0xff]  ;;  %v4358_v30 = vld [vmem:[#allocation83_spill] sm:$0xff] }
 0x4a8   :  { %1926 = vmatpush2.msra.mxu0 %v4302_v52  ;;  %1997 = vmatpush2.msra.mxu1 %v4303_v32  ;;  %v4359_v52 = vld [vmem:[#allocation84_spill] sm:$0xff]  ;;  %v4360_v32 = vld [vmem:[#allocation85_spill] sm:$0xff] }
 0x4a9   :  { %1927 = vmatprep.subr.mxu0 %v4304_v45  ;;  %1998 = vmatprep.subr.mxu1 %v4305_v34  ;;  %v4361_v45 = vld [vmem:[#allocation86_spill] sm:$0xff]  ;;  %v4362_v34 = vld [vmem:[#allocation87_spill] sm:$0xff] }
 0x4aa   :  { %1928 = vmatpush2.msra.mxu0 %v4306_v36  ;;  %1999 = vmatpush2.msra.mxu1 %v4307_v55  ;;  %v4363_v36 = vld [vmem:[#allocation88_spill] sm:$0xff]  ;;  %v4364_v55 = vld [vmem:[#allocation89_spill] sm:$0xff] }
 0x4ab   :  { %1929 = vmatprep.subr.mxu0 %v4308_v39  ;;  %2000 = vmatprep.subr.mxu1 %v4309_v3  ;;  %v4365_v39 = vld [vmem:[#allocation90_spill] sm:$0xff]  ;;  %v4366_v3 = vld [vmem:[#allocation91_spill] sm:$0xff] }
 0x4ac   :  { %1930 = vmatpush2.msra.mxu0 %v4310_v44  ;;  %2001 = vmatpush2.msra.mxu1 %v4311_v4  ;;  %v4367_v44 = vld [vmem:[#allocation92_spill] sm:$0xff]  ;;  %v4368_v4 = vld [vmem:[#allocation93_spill] sm:$0xff] }
 0x4ad   :  { %1931 = vmatprep.subr.mxu0 %v4312_v53  ;;  %2002 = vmatprep.subr.mxu1 %v4313_v47  ;;  %v4369_v53 = vld [vmem:[#allocation94_spill] sm:$0xff]  ;;  %v4370_v47 = vld [vmem:[#allocation95_spill] sm:$0xff] }
 0x4ae   :  { %1932 = vmatpush2.msra.mxu0 %v4314_v2  ;;  %2003 = vmatpush2.msra.mxu1 %v4315_v57  ;;  %v4371_v2 = vld [vmem:[#allocation96_spill] sm:$0xff]  ;;  %v4372_v57 = vld [vmem:[#allocation97_spill] sm:$0xff] }
 0x4af   :  { %1933 = vmatprep.subr.mxu0 %v4316_v61  ;;  %2004 = vmatprep.subr.mxu1 %v4317_v5  ;;  %v4373_v61 = vld [vmem:[#allocation98_spill] sm:$0xff]  ;;  %v4374_v5 = vld [vmem:[#allocation99_spill] sm:$0xff] }
 0x4b0   :  { %1934 = vmatpush2.msra.mxu0 %v4318_v8  ;;  %2005 = vmatpush2.msra.mxu1 %v4319_v12  ;;  %v4375_v8 = vld [vmem:[#allocation100_spill] sm:$0xff]  ;;  %v4376_v12 = vld [vmem:[#allocation101_spill] sm:$0xff] }
 0x4b1   :  { %1935 = vmatprep.subr.mxu0 %v4320_v46  ;;  %2006 = vmatprep.subr.mxu1 %v4321_v27  ;;  %v4377_v46 = vld [vmem:[#allocation102_spill] sm:$0xff]  ;;  %v4378_v27 = vld [vmem:[#allocation103_spill] sm:$0xff] }
 0x4b2   :  { %1936 = vmatpush2.msra.mxu0 %v4322_v7  ;;  %2007 = vmatpush2.msra.mxu1 %v4323_v22  ;;  %v4379_v7 = vld [vmem:[#allocation104_spill] sm:$0xff]  ;;  %v4380_v22 = vld [vmem:[#allocation105_spill] sm:$0xff] }
 0x4b3   :  { %1937 = vmatprep.subr.mxu0 %v4324_v56  ;;  %2008 = vmatprep.subr.mxu1 %v4325_v9  ;;  %v4381_v56 = vld [vmem:[#allocation106_spill] sm:$0xff]  ;;  %v4382_v9 = vld [vmem:[#allocation107_spill] sm:$0xff] }
 0x4b4   :  { %1938 = vmatpush2.msra.mxu0 %v4326_v48  ;;  %2009 = vmatpush2.msra.mxu1 %v4327_v49  ;;  %v4383_v48 = vld [vmem:[#allocation108_spill] sm:$0xff]  ;;  %v4384_v49 = vld [vmem:[#allocation109_spill] sm:$0xff] }
 0x4b5   :  { %1939 = vmatprep.subr.mxu0 %v4328_v54  ;;  %2010 = vmatprep.subr.mxu1 %v4329_v58  ;;  %v4385_v54 = vld [vmem:[#allocation110_spill] sm:$0xff]  ;;  %v4386_v58 = vld [vmem:[#allocation111_spill] sm:$0xff] }
 0x4b6   :  { %1940 = vmatpush2.msra.mxu0 %v4330_v43  ;;  %2011 = vmatpush2.msra.mxu1 %v4331_v59  ;;  %v4387_v43 = vld [vmem:[#allocation112_spill] sm:$0xff]  ;;  %v4388_v59 = vld [vmem:[#allocation113_spill] sm:$0xff] }
 0x4b7   :  { %1941 = vmatprep.subr.mxu0 %v4332_v60  ;;  %2012 = vmatprep.subr.mxu1 %v4333_v6  ;;  %v4389_v60 = vld [vmem:[#allocation114_spill] sm:$0xff]  ;;  %v4390_v6 = vld [vmem:[#allocation115_spill] sm:$0xff] }
 0x4b8   :  { %1942 = vmatpush2.msra.mxu0 %v4334_v10  ;;  %2013 = vmatpush2.msra.mxu1 %v4335_v23  ;;  %v4391_v10 = vld [vmem:[#allocation116_spill] sm:$0xff]  ;;  %v4392_v23 = vld [vmem:[#allocation117_spill] sm:$0xff] }
 0x4b9   :  { %1943 = vmatprep.subr.mxu0 %v4336_v62  ;;  %2014 = vmatprep.subr.mxu1 %v4337_v14  ;;  %v4393_v62 = vld [vmem:[#allocation118_spill] sm:$0xff]  ;;  %v4394_v14 = vld [vmem:[#allocation119_spill] sm:$0xff] }
 0x4ba   :  { %1944 = vmatpush2.msra.mxu0 %v4338_v15  ;;  %2015 = vmatpush2.msra.mxu1 %v4339_v16  ;;  %v4395_v15 = vld [vmem:[#allocation120_spill] sm:$0xff]  ;;  %v4396_v16 = vld [vmem:[#allocation121_spill] sm:$0xff] }
 0x4bb   :  { %1946 = vmatmul.mubr.f32.vlgmr.msra.gmra.mxu0 %v3382_v63  ;;  %2017 = vmatmul.mubr.f32.vlgmr.msra.gmra.mxu1 %v3382_v63 }
 0x4bc   :  { %2023 = vmatprep.subr.mxu0 %v4340_v31  ;;  %2094 = vmatprep.subr.mxu1 %v4341_v20  ;;  %v4397_v31 = vld [vmem:[#allocation122_spill] sm:$0xff]  ;;  %v4398_v20 = vld [vmem:[#allocation123_spill] sm:$0xff] }
 0x4bd   :  { %2024 = vmatpush1.msra.mxu0 %v4342_v21  ;;  %2087 = vmatprep.mubr.f32.mxu0 %v3689_v40  ;;  %v4399_v21 = vld [vmem:[#allocation124_spill] sm:$0xff] }
 0x4be   :  { %2095 = vmatpush1.msra.mxu1 %v4343_v25  ;;  %2158 = vmatprep.mubr.f32.mxu1 %v3689_v40  ;;  %v4354_v40 = vld [vmem:[#allocation79_spill] sm:$0xff]  ;;  %v4400_v25 = vld [vmem:[#allocation125_spill] sm:$0xff] }
 0x4bf   :  { %2025 = vmatprep.subr.mxu0 %v4344_v51  ;;  %2096 = vmatprep.subr.mxu1 %v4345_v13  ;;  %v4401_v51 = vld [vmem:[#allocation126_spill] sm:$0xff]  ;;  %v4402_v13 = vld [vmem:[#allocation127_spill] sm:$0xff] }
 0x4c0   :  { %2026 = vmatpush1.msra.mxu0 %v4346_v18  ;;  %2097 = vmatpush1.msra.mxu1 %v4347_v24  ;;  %v4403_v18 = vld [vmem:[#allocation128_spill] sm:$0xff]  ;;  %v4404_v24 = vld [vmem:[#allocation129_spill] sm:$0xff] }
 0x4c1   :  { %2027 = vmatprep.subr.mxu0 %v4348_v17  ;;  %2098 = vmatprep.subr.mxu1 %v4349_v19  ;;  %v4405_v17 = vld [vmem:[#allocation130_spill] sm:$0xff]  ;;  %v4406_v19 = vld [vmem:[#allocation131_spill] sm:$0xff] }
 0x4c2   :  { %2028 = vmatpush1.msra.mxu0 %v4350_v26  ;;  %2099 = vmatpush1.msra.mxu1 %v4351_v41  ;;  %v4407_v26 = vld [vmem:[#allocation132_spill] sm:$0xff]  ;;  %v4408_v41 = vld [vmem:[#allocation133_spill] sm:$0xff] }
 0x4c3   :  { %2029 = vmatprep.subr.mxu0 %v4352_v37  ;;  %2100 = vmatprep.subr.mxu1 %v4353_v28  ;;  %v4409_v37 = vld [vmem:[#allocation134_spill] sm:$0xff]  ;;  %v4410_v28 = vld [vmem:[#allocation135_spill] sm:$0xff] }
 0x4c4   :  { %2030 = vmatpush1.msra.mxu0 %v4354_v40  ;;  %2101 = vmatpush1.msra.mxu1 %v4355_v1  ;;  %v4411_v40 = vld [vmem:[#allocation136_spill] sm:$0xff]  ;;  %v4412_v1 = vld [vmem:[#allocation137_spill] sm:$0xff] }
 0x4c5   :  { %2031 = vmatprep.subr.mxu0 %v4356_v29  ;;  %2102 = vmatprep.subr.mxu1 %v4357_v11  ;;  %v4413_v29 = vld [vmem:[#allocation138_spill] sm:$0xff]  ;;  %v4414_v11 = vld [vmem:[#allocation139_spill] sm:$0xff] }
 0x4c6   :  { %2032 = vmatpush1.msra.mxu0 %v4358_v30  ;;  %2103 = vmatpush1.msra.mxu1 %v4359_v52  ;;  %v4415_v30 = vld [vmem:[#allocation140_spill] sm:$0xff]  ;;  %v4416_v52 = vld [vmem:[#allocation141_spill] sm:$0xff] }
 0x4c7   :  { %2033 = vmatprep.subr.mxu0 %v4360_v32  ;;  %2104 = vmatprep.subr.mxu1 %v4361_v45  ;;  %v4417_v32 = vld [vmem:[#allocation142_spill] sm:$0xff]  ;;  %v4418_v45 = vld [vmem:[#allocation143_spill] sm:$0xff] }
 0x4c8   :  { %2034 = vmatpush1.msra.mxu0 %v4362_v34  ;;  %2105 = vmatpush1.msra.mxu1 %v4363_v36  ;;  %v4419_v34 = vld [vmem:[#allocation144_spill] sm:$0xff]  ;;  %v4420_v36 = vld [vmem:[#allocation145_spill] sm:$0xff] }
 0x4c9   :  { %2035 = vmatprep.subr.mxu0 %v4364_v55  ;;  %2106 = vmatprep.subr.mxu1 %v4365_v39  ;;  %v4421_v55 = vld [vmem:[#allocation146_spill] sm:$0xff]  ;;  %v4422_v39 = vld [vmem:[#allocation147_spill] sm:$0xff] }
 0x4ca   :  { %2036 = vmatpush1.msra.mxu0 %v4366_v3  ;;  %2107 = vmatpush1.msra.mxu1 %v4367_v44  ;;  %v4423_v3 = vld [vmem:[#allocation148_spill] sm:$0xff]  ;;  %v4424_v44 = vld [vmem:[#allocation149_spill] sm:$0xff] }
 0x4cb   :  { %2037 = vmatprep.subr.mxu0 %v4368_v4  ;;  %2108 = vmatprep.subr.mxu1 %v4369_v53  ;;  %v4425_v4 = vld [vmem:[#allocation150_spill] sm:$0xff]  ;;  %v4426_v53 = vld [vmem:[#allocation151_spill] sm:$0xff] }
 0x4cc   :  { %2038 = vmatpush1.msra.mxu0 %v4370_v47  ;;  %2109 = vmatpush1.msra.mxu1 %v4371_v2  ;;  %v4427_v47 = vld [vmem:[#allocation152_spill] sm:$0xff]  ;;  %v4428_v2 = vld [vmem:[#allocation153_spill] sm:$0xff] }
 0x4cd   :  { %2039 = vmatprep.subr.mxu0 %v4372_v57  ;;  %2110 = vmatprep.subr.mxu1 %v4373_v61  ;;  %v4429_v57 = vld [vmem:[#allocation154_spill] sm:$0xff]  ;;  %v4430_v61 = vld [vmem:[#allocation155_spill] sm:$0xff] }
 0x4ce   :  { %2040 = vmatpush1.msra.mxu0 %v4374_v5  ;;  %2111 = vmatpush1.msra.mxu1 %v4375_v8  ;;  %v4431_v5 = vld [vmem:[#allocation156_spill] sm:$0xff]  ;;  %v4432_v8 = vld [vmem:[#allocation157_spill] sm:$0xff] }
 0x4cf   :  { %2041 = vmatprep.subr.mxu0 %v4376_v12  ;;  %2112 = vmatprep.subr.mxu1 %v4377_v46  ;;  %v4433_v12 = vld [vmem:[#allocation158_spill] sm:$0xff]  ;;  %v4434_v46 = vld [vmem:[#allocation159_spill] sm:$0xff] }
 0x4d0   :  { %2042 = vmatpush1.msra.mxu0 %v4378_v27  ;;  %2113 = vmatpush1.msra.mxu1 %v4379_v7  ;;  %v4435_v27 = vld [vmem:[#allocation160_spill] sm:$0xff]  ;;  %v4436_v7 = vld [vmem:[#allocation161_spill] sm:$0xff] }
 0x4d1   :  { %2043 = vmatprep.subr.mxu0 %v4380_v22  ;;  %2114 = vmatprep.subr.mxu1 %v4381_v56  ;;  %v4437_v22 = vld [vmem:[#allocation162_spill] sm:$0xff]  ;;  %v4438_v56 = vld [vmem:[#allocation163_spill] sm:$0xff] }
 0x4d2   :  { %2044 = vmatpush1.msra.mxu0 %v4382_v9  ;;  %2115 = vmatpush1.msra.mxu1 %v4383_v48  ;;  %v4439_v9 = vld [vmem:[#allocation164_spill] sm:$0xff]  ;;  %v4440_v48 = vld [vmem:[#allocation165_spill] sm:$0xff] }
 0x4d3   :  { %2045 = vmatprep.subr.mxu0 %v4384_v49  ;;  %2116 = vmatprep.subr.mxu1 %v4385_v54  ;;  %v4441_v49 = vld [vmem:[#allocation166_spill] sm:$0xff]  ;;  %v4442_v54 = vld [vmem:[#allocation167_spill] sm:$0xff] }
 0x4d4   :  { %2046 = vmatpush1.msra.mxu0 %v4386_v58  ;;  %2117 = vmatpush1.msra.mxu1 %v4387_v43  ;;  %v4443_v58 = vld [vmem:[#allocation168_spill] sm:$0xff]  ;;  %v4444_v43 = vld [vmem:[#allocation169_spill] sm:$0xff] }
 0x4d5   :  { %2047 = vmatprep.subr.mxu0 %v4388_v59  ;;  %2118 = vmatprep.subr.mxu1 %v4389_v60  ;;  %v4445_v59 = vld [vmem:[#allocation170_spill] sm:$0xff]  ;;  %v4446_v60 = vld [vmem:[#allocation171_spill] sm:$0xff] }
 0x4d6   :  { %2048 = vmatpush1.msra.mxu0 %v4390_v6  ;;  %2119 = vmatpush1.msra.mxu1 %v4391_v10  ;;  %v4447_v6 = vld [vmem:[#allocation172_spill] sm:$0xff]  ;;  %v4448_v10 = vld [vmem:[#allocation173_spill] sm:$0xff] }
 0x4d7   :  { %2049 = vmatprep.subr.mxu0 %v4392_v23  ;;  %2120 = vmatprep.subr.mxu1 %v4393_v62  ;;  %v4449_v23 = vld [vmem:[#allocation174_spill] sm:$0xff]  ;;  %v4450_v62 = vld [vmem:[#allocation175_spill] sm:$0xff] }
 0x4d8   :  { %2050 = vmatpush1.msra.mxu0 %v4394_v14  ;;  %2121 = vmatpush1.msra.mxu1 %v4395_v15  ;;  %v4451_v14 = vld [vmem:[#allocation176_spill] sm:$0xff]  ;;  %v4452_v15 = vld [vmem:[#allocation177_spill] sm:$0xff] }
 0x4d9   :  { %2051 = vmatprep.subr.mxu0 %v4396_v16  ;;  %2122 = vmatprep.subr.mxu1 %v4397_v31  ;;  %v4453_v16 = vld [vmem:[#allocation178_spill] sm:$0xff]  ;;  %v4454_v31 = vld [vmem:[#allocation179_spill] sm:$0xff] }
 0x4da   :  { %2052 = vmatpush1.msra.mxu0 %v4398_v20  ;;  %2123 = vmatpush1.msra.mxu1 %v4399_v21  ;;  %v4455_v20 = vld [vmem:[#allocation180_spill] sm:$0xff]  ;;  %v4456_v21 = vld [vmem:[#allocation181_spill] sm:$0xff] }
 0x4db   :  { %2053 = vmatprep.subr.mxu0 %v4400_v25  ;;  %2124 = vmatprep.subr.mxu1 %v4401_v51  ;;  %v4457_v25 = vld [vmem:[#allocation182_spill] sm:$0xff] }
 0x4dc   :  { %2054 = vmatpush1.msra.mxu0 %v4402_v13  ;;  %2125 = vmatpush1.msra.mxu1 %v4403_v18  ;;  %v4458_v18 = vld [vmem:[#allocation183_spill] sm:$0xff] }
 0x4dd   :  { %2055 = vmatprep.subr.mxu0 %v4404_v24  ;;  %2126 = vmatprep.subr.mxu1 %v4405_v17  ;;  %v4459_v24 = vld [vmem:[#allocation184_spill] sm:$0xff]  ;;  %v4460_v17 = vld [vmem:[#allocation185_spill] sm:$0xff] }
 0x4de   :  { %2056 = vmatpush2.msra.mxu0 %v4406_v19  ;;  %2127 = vmatpush2.msra.mxu1 %v4407_v26 }
 0x4df   :  { %2057 = vmatprep.subr.mxu0 %v4408_v41  ;;  %2128 = vmatprep.subr.mxu1 %v4409_v37 }
 0x4e0   :  { %2058 = vmatpush2.msra.mxu0 %v4410_v28  ;;  %2129 = vmatpush2.msra.mxu1 %v4411_v40 }
 0x4e1   :  { %2059 = vmatprep.subr.mxu0 %v4412_v1  ;;  %2130 = vmatprep.subr.mxu1 %v4413_v29 }
 0x4e2   :  { %2060 = vmatpush2.msra.mxu0 %v4414_v11  ;;  %2131 = vmatpush2.msra.mxu1 %v4415_v30 }
 0x4e3   :  { %2061 = vmatprep.subr.mxu0 %v4416_v52  ;;  %2132 = vmatprep.subr.mxu1 %v4417_v32 }
 0x4e4   :  { %2062 = vmatpush2.msra.mxu0 %v4418_v45  ;;  %2133 = vmatpush2.msra.mxu1 %v4419_v34 }
 0x4e5   :  { %2063 = vmatprep.subr.mxu0 %v4420_v36  ;;  %2134 = vmatprep.subr.mxu1 %v4421_v55 }
 0x4e6   :  { %2064 = vmatpush2.msra.mxu0 %v4422_v39  ;;  %2135 = vmatpush2.msra.mxu1 %v4423_v3 }
 0x4e7   :  { %2065 = vmatprep.subr.mxu0 %v4424_v44  ;;  %2136 = vmatprep.subr.mxu1 %v4425_v4 }
 0x4e8   :  { %2066 = vmatpush2.msra.mxu0 %v4426_v53  ;;  %2137 = vmatpush2.msra.mxu1 %v4427_v47 }
 0x4e9   :  { %2067 = vmatprep.subr.mxu0 %v4428_v2  ;;  %2138 = vmatprep.subr.mxu1 %v4429_v57 }
 0x4ea   :  { %2068 = vmatpush2.msra.mxu0 %v4430_v61  ;;  %2139 = vmatpush2.msra.mxu1 %v4431_v5 }
 0x4eb   :  { %2069 = vmatprep.subr.mxu0 %v4432_v8  ;;  %2140 = vmatprep.subr.mxu1 %v4433_v12 }
 0x4ec   :  { %2070 = vmatpush2.msra.mxu0 %v4434_v46  ;;  %2141 = vmatpush2.msra.mxu1 %v4435_v27 }
 0x4ed   :  { %2071 = vmatprep.subr.mxu0 %v4436_v7  ;;  %2142 = vmatprep.subr.mxu1 %v4437_v22 }
 0x4ee   :  { %2072 = vmatpush2.msra.mxu0 %v4438_v56  ;;  %2143 = vmatpush2.msra.mxu1 %v4439_v9 }
 0x4ef   :  { %2073 = vmatprep.subr.mxu0 %v4440_v48  ;;  %2144 = vmatprep.subr.mxu1 %v4441_v49 }
 0x4f0   :  { %2074 = vmatpush2.msra.mxu0 %v4442_v54  ;;  %2145 = vmatpush2.msra.mxu1 %v4443_v58 }
 0x4f1   :  { %2075 = vmatprep.subr.mxu0 %v4444_v43  ;;  %2146 = vmatprep.subr.mxu1 %v4445_v59 }
 0x4f2   :  { %2076 = vmatpush2.msra.mxu0 %v4446_v60  ;;  %2147 = vmatpush2.msra.mxu1 %v4447_v6 }
 0x4f3   :  { %2077 = vmatprep.subr.mxu0 %v4448_v10  ;;  %2148 = vmatprep.subr.mxu1 %v4449_v23 }
 0x4f4   :  { %2078 = vmatpush2.msra.mxu0 %v4450_v62  ;;  %2149 = vmatpush2.msra.mxu1 %v4451_v14 }
 0x4f5   :  { %2079 = vmatprep.subr.mxu0 %v4452_v15  ;;  %2150 = vmatprep.subr.mxu1 %v4453_v16 }
 0x4f6   :  { %2080 = vmatpush2.msra.mxu0 %v4454_v31  ;;  %2151 = vmatpush2.msra.mxu1 %v4455_v20 }
 0x4f7   :  { %2081 = vmatprep.subr.mxu0 %v4456_v21  ;;  %2152 = vmatprep.subr.mxu1 %v4457_v25 }
 0x4f8   :  { %2082 = vmatpush2.msra.mxu0 %v3654_v50  ;;  %2153 = vmatpush2.msra.mxu1 %v3656_v42  ;;  %v1643_v51 = vpop.f32.mrf.mxu0  ;;  %v1714_v13 = vpop.f32.mrf.mxu1  ;;  %v4461_v42 = vld [vmem:[#allocation186_spill] sm:$0xff] }
 0x4f9   :  { %2083 = vmatprep.subr.mxu0 %v4458_v18  ;;  %2154 = vmatprep.subr.mxu1 %v4459_v24 }
 0x4fa   :  { %2084 = vmatpush2.msra.mxu0 %v3666_v0  ;;  %2155 = vmatpush2.msra.mxu1 %v4460_v17  ;;  %v1645_v19 = vpop.f32.mrf.mxu0  ;;  %v1716_v26 = vpop.f32.mrf.mxu1 }
 0x4fb   :  { %2085 = vmatprep.subr.mxu0 %v3672_v38  ;;  %2156 = vmatprep.subr.mxu1 %v3674_v35  ;;  %v1869_v41 = vcombine.low %v1643_v51, %v1645_v19  ;;  %v1870_v50 = vcombine.low %v1714_v13, %v1716_v26 }
 0x4fc   :  { %2086 = vmatpush2.msra.mxu0 %v3678_v33  ;;  %2157 = vmatpush2.msra.mxu1 %v4461_v42 }
 0x4fd   :  { %2088 = vmatmul.mubr.f32.vlgmr.msra.gmra.mxu0 %v3382_v63  ;;  %2159 = vmatmul.mubr.f32.vlgmr.msra.gmra.mxu1 %v3382_v63  ;;  %1877 = vst [vmem:[#allocation10] sm:$0xff] %v1869_v41  ;;  %1878 = vst [vmem:[#allocation10 + $0x8] sm:$0xff] %v1870_v50 }
 0x539   :  { %v1785_v0 = vpop.f32.mrf.mxu0  ;;  %v1856_v37 = vpop.f32.mrf.mxu1 }
 0x53b   :  { %v1787_v28 = vpop.f32.mrf.mxu0  ;;  %v1858_v40 = vpop.f32.mrf.mxu1 }
 0x53c   :  { %v1871_v1 = vcombine.low %v1785_v0, %v1787_v28  ;;  %v1872_v38 = vcombine.low %v1856_v37, %v1858_v40 }
 0x53e   :  { %1879 = vst [vmem:[#allocation10 + $0x10] sm:$0xff] %v1871_v1  ;;  %1880 = vst [vmem:[#allocation10 + $0x18] sm:$0xff] %v1872_v38 }
 0x57b   :  { %v1947_v35 = vpop.f32.mrf.mxu0  ;;  %v2018_v29 = vpop.f32.mrf.mxu1 }
 0x57d   :  { %v1949_v11 = vpop.f32.mrf.mxu0  ;;  %v2020_v33 = vpop.f32.mrf.mxu1 }
 0x57e   :  { %v2173_v30 = vcombine.low %v1947_v35, %v1949_v11  ;;  %v2174_v52 = vcombine.low %v2018_v29, %v2020_v33 }
 0x580   :  { %2182 = vst [vmem:[#allocation10 + $0x20] sm:$0xff] %v2173_v30  ;;  %2183 = vst [vmem:[#allocation10 + $0x28] sm:$0xff] %v2174_v52 }
 0x5bd   :  { %v2089_v63 = vpop.f32.mrf.mxu0  ;;  %v2160_v32 = vpop.f32.mrf.mxu1 }
 0x5bf   :  { %v2091_v45 = vpop.f32.mrf.mxu0  ;;  %v2162_v34 = vpop.f32.mrf.mxu1 }
 0x5c0   :  { %v2175_v36 = vcombine.low %v2089_v63, %v2091_v45  ;;  %v2176_v55 = vcombine.low %v2160_v32, %v2162_v34 }
 0x5c2   :  { %2184 = vst [vmem:[#allocation10 + $0x30] sm:$0xff] %v2175_v36  ;;  %2185 = vst [vmem:[#allocation10 + $0x38] sm:$0xff] %v2176_v55 }
 0x5c3   :  { %2351 = shalt.err (!%p2348_p5)
}
 0x5c4   :  { %s2383_s20 = smov 512   ;;  %s2384_s21 = smov 32  }
 0x5c5   :  { %2197 = dma.vmem_to_hbm [thread:$0]  %s2192_s18, 1024, %s3942_s9, [#allocation6], %s2383_s20, %s2383_s20, %s2384_s21  }
 0x5c6   :  { %2364 = dma.done.wait [#allocation6], 1024  }
 0x5c7   :  { %2365 = vsyncadd [#allocation6], 4294966272 }
 0x5c8   :  { %2201 = vsyncpa [#allocation5], 1 }
 0x5c9   :  { %2202 = vsyncpa [#allocation8], 1 }
 0x5ca   :  { %2203 = vsyncpa [#allocation6], 1 }

</bundles_post_ra>
